<compile_context>
chip_gen: v7x
topology: tpu7x:2x2x1
jax: 0.10.0
libtpu: 0.0.40
codegen_flags: <defaults>
</compile_context>

<pallas_src>
import math

import jax
import jax.numpy as jnp
from jax.experimental import pallas as pl
from jax.experimental.pallas import tpu as pltpu


def _mp_subg3d_kernel(x_ref, a_ref, mx_ref, ma_ref, mt_ref, o_ref):
    """One (batch, row-tile) grid step, channels-last.

    x_ref : (1, TM, n, d)   X rows (i,j) x k x channels
    a_ref : (1, n,  n, d)   A: k x l x channels (resident across row tiles)
    mx_ref: (1, TM, n) int8 X mask
    ma_ref: (1, n,  n) int8 A mask
    mt_ref: (1, TM, n) int8 target (tarX) mask
    o_ref : (1, TM, n, d)   output
    """
    n = a_ref.shape[1]

    xf = x_ref[0].astype(jnp.float32)                       # (TM, n, d)
    af = a_ref[0].astype(jnp.float32)                       # (n,  n, d)

    # fill_masked(0): zero masked entries (including NaN/Inf) before contracting.
    mxf = jnp.broadcast_to(mx_ref[0].astype(jnp.float32)[:, :, None], xf.shape)
    maf = jnp.broadcast_to(ma_ref[0].astype(jnp.float32)[:, :, None], af.shape)
    xz = jnp.where(mxf > 0.0, xf, 0.0)
    az = jnp.where(maf > 0.0, af, 0.0)

    # out[m, l, c] = sum_k xz[m, k, c] * az[k, l, c]
    # VPU multiply-accumulate over k with the channel dim on the lane axis
    # (the MXU would be ~all padding at realistic subgraph sizes n << 128).
    acc = xz[:, 0:1, :] * az[0:1, :, :]                     # (TM, n, d)
    for k in range(1, n):                                   # n is small & static
        acc = acc + xz[:, k:k + 1, :] * az[k:k + 1, :, :]

    mtf = jnp.broadcast_to(mt_ref[0].astype(jnp.float32)[:, :, None], acc.shape)
    o_ref[0] = jnp.where(mtf > 0.0, acc, 0.0).astype(o_ref.dtype)


def _pick_tile_m(nsq, n, d, x_item, o_item, a_item):
    """Largest row tile (multiple of 8 dividing n^2, or n^2 itself) fitting the VMEM budget."""
    n_sub = -(-n // 8) * 8          # sublane padding of the second-to-minor dim
    d_lane = -(-d // 128) * 128     # lane padding of the minor (channel) dim
    budget = 24 * 1024 * 1024       # stay well under v7x's 64 MiB physical VMEM
    fixed = 2 * n * n_sub * d_lane * a_item + (1 << 20)      # resident A + masks/slack
    per_row = 2 * (x_item + o_item) * n_sub * d_lane         # X + out tiles, double-buffered
    cap = max(8, (budget - fixed) // per_row)
    if nsq <= cap:
        return nsq
    best = None
    t = 8
    top = min(cap, nsq)
    while t <= top:
        if nsq % t == 0:
            best = t
        t += 8
    # No multiple-of-8 divisor of n^2 below the cap: fall back to the full dim
    # (still correct; only suboptimal for rare "n^2 not divisible by 8" shapes).
    return best if best is not None else nsq


@jax.jit
def op_message_passing_on_subg3d(A_data, A_mask, X_data, X_mask, tar_mask):
    """Pallas implementation of OpMessagePassingOnSubg3D.forward.

    A_data  : (b, n, n, *dense1)     adjacency values
    A_mask  : (b, n, n)              bool
    X_data  : (b, n, n, n, *dense2)  3D tuple-representation values
    X_mask  : (b, n, n, n)           bool
    tar_mask: (b, n, n, n)           bool
    Returns : (b, n, n, n, *broadcast(dense1, dense2)), dtype = result dtype of A/X,
              positions masked by tar_mask are zeroed.
    """
    b, n = X_data.shape[0], X_data.shape[1]
    nsq = n * n

    # Broadcast the trailing dense dims of A and X to a common shape and fold them
    # into one channel axis d.  When dense1 == dense2 (the usual case) broadcast_to
    # is a no-op and everything below is free reshapes (no transposes, no dtype copies).
    dense_a = A_data.shape[3:]
    dense_x = X_data.shape[4:]
    dense = jnp.broadcast_shapes(dense_a, dense_x)
    d = math.prod(dense) if dense else 1
    out_dtype = jnp.result_type(A_data.dtype, X_data.dtype)

    da = (1,) * (len(dense) - len(dense_a)) + dense_a
    dx = (1,) * (len(dense) - len(dense_x)) + dense_x
    Ar = jnp.broadcast_to(A_data.reshape((b, n, n) + da), (b, n, n) + dense)
    Ar = Ar.reshape(b, n, n, d)
    Xr = jnp.broadcast_to(X_data.reshape((b, n, n, n) + dx), (b, n, n, n) + dense)
    Xr = Xr.reshape(b, nsq, n, d)

    mX = X_mask.reshape(b, nsq, n).astype(jnp.int8)
    mA = A_mask.astype(jnp.int8)
    mT = tar_mask.reshape(b, nsq, n).astype(jnp.int8)

    x_item = jnp.dtype(X_data.dtype).itemsize
    a_item = jnp.dtype(A_data.dtype).itemsize
    o_item = jnp.dtype(out_dtype).itemsize
    tile_m = _pick_tile_m(nsq, n, d, x_item, o_item, a_item)
    grid = (b, nsq // tile_m)

    # Explicit VMEM budget (reviewer: mandatory for v7x's 64 MiB physical VMEM).
    n_sub = -(-n // 8) * 8
    d_lane = -(-d // 128) * 128
    est = (2 * tile_m * n_sub * d_lane * (x_item + o_item)    # X + out tiles (double-buffered)
           + 2 * n * n_sub * d_lane * a_item                  # resident A (double-buffered)
           + 8 * tile_m * 128 + 4 * n_sub * 128 + (2 << 20))  # int8 mask tiles + slack
    vmem_limit = int(min(100 * 2 ** 20, max(32 * 2 ** 20, est * 3 // 2)))

    grid_spec = pltpu.PrefetchScalarGridSpec(
        num_scalar_prefetch=0,
        grid=grid,
        in_specs=[
            pl.BlockSpec((1, tile_m, n, d), lambda ib, im: (ib, im, 0, 0)),  # X rows
            pl.BlockSpec((1, n, n, d), lambda ib, im: (ib, 0, 0, 0)),        # A (resident)
            pl.BlockSpec((1, tile_m, n), lambda ib, im: (ib, im, 0)),        # X mask
            pl.BlockSpec((1, n, n), lambda ib, im: (ib, 0, 0)),              # A mask (resident)
            pl.BlockSpec((1, tile_m, n), lambda ib, im: (ib, im, 0)),        # tar mask
        ],
        out_specs=pl.BlockSpec((1, tile_m, n, d), lambda ib, im: (ib, im, 0, 0)),
    )

    out = pl.pallas_call(
        _mp_subg3d_kernel,
        out_shape=jax.ShapeDtypeStruct((b, nsq, n, d), out_dtype),
        grid_spec=grid_spec,
        compiler_params=pltpu.CompilerParams(
            dimension_semantics=("parallel", "parallel"),
            vmem_limit_bytes=vmem_limit,
        ),
    )(Xr, Ar, mX, mA, mT)

    # Back to the pygho convention (b, n, n, n, *dense) — a free reshape, no transpose.
    return out.reshape((b, n, n, n) + dense)


def _reference(A_data, A_mask, X_data, X_mask, tar_mask):
    Af = jnp.where(A_mask[..., None], A_data, 0.0).astype(jnp.float32)
    Xf = jnp.where(X_mask[..., None], X_data, 0.0).astype(jnp.float32)
    out = jnp.einsum("bijkd,bkld->bijld", Xf, Af)
    return jnp.where(tar_mask[..., None], out, 0.0)


if __name__ == "__main__":
    key = jax.random.PRNGKey(0)
    b, n, d = 2, 8, 4   # batch, nodes per graph, dense (feature) channels

    k1, k2, k3, k4, k5 = jax.random.split(key, 5)
    A_data = jax.random.normal(k1, (b, n, n, d), dtype=jnp.float32)
    X_data = jax.random.normal(k2, (b, n, n, n, d), dtype=jnp.float32)
    A_mask = jax.random.bernoulli(k3, 0.8, (b, n, n))
    X_mask = jax.random.bernoulli(k4, 0.8, (b, n, n, n))
    tar_mask = jax.random.bernoulli(k5, 0.8, (b, n, n, n))

    # Fill masked positions with NaN to exercise MaskedTensor.fill_masked(0) semantics.
    A_data = jnp.where(A_mask[..., None], A_data, jnp.nan)
    X_data = jnp.where(X_mask[..., None], X_data, jnp.nan)

    out = op_message_passing_on_subg3d(A_data, A_mask, X_data, X_mask, tar_mask)
    out = jax.block_until_ready(out)

    ref = _reference(A_data, A_mask, X_data, X_mask, tar_mask)
    assert out.shape == (b, n, n, n, d)
    assert out.dtype == jnp.float32
    assert jnp.allclose(out, ref, atol=1e-5, rtol=1e-5)

    print("KERNEL_OK")
</pallas_src>

<mosaic_0001>
module attributes {stable_mosaic.version = 11 : i64} {
  func.func @_mp_subg3d_kernel(%arg0: i32, %arg1: i32, %arg2: memref<1x64x8x4xf32, #tpu.memory_space<vmem>>, %arg3: memref<1x8x8x4xf32, #tpu.memory_space<vmem>>, %arg4: memref<1x64x8xi8, #tpu.memory_space<vmem>>, %arg5: memref<1x8x8xi8, #tpu.memory_space<vmem>>, %arg6: memref<1x64x8xi8, #tpu.memory_space<vmem>>, %arg7: memref<1x64x8x4xf32, #tpu.memory_space<vmem>>) attributes {dimension_semantics = [#tpu.dimension_semantics<parallel>, #tpu.dimension_semantics<parallel>], iteration_bounds = array<i64: 2, 1>, scalar_prefetch = 0 : i64, scratch_operands = 0 : i64, tpu.core_type = #tpu.core_type<tc>, window_params = [{transform_indices = @transform_0, window_bounds = array<i64: 1, 64, 8, 4>}, {transform_indices = @transform_1, window_bounds = array<i64: 1, 8, 8, 4>}, {transform_indices = @transform_2, window_bounds = array<i64: 1, 64, 8>}, {transform_indices = @transform_3, window_bounds = array<i64: 1, 8, 8>}, {transform_indices = @transform_4, window_bounds = array<i64: 1, 64, 8>}, {transform_indices = @transform_5, window_bounds = array<i64: 1, 64, 8, 4>}]} {
    %c0 = arith.constant 0 : index
    %c0_0 = arith.constant 0 : index
    %c0_1 = arith.constant 0 : index
    %c0_2 = arith.constant 0 : index
    %0 = vector.load %arg2[%c0, %c0_0, %c0_1, %c0_2] : memref<1x64x8x4xf32, #tpu.memory_space<vmem>>, vector<1x64x8x4xf32>
    %1 = vector.shape_cast %0 : vector<1x64x8x4xf32> to vector<64x8x4xf32>
    %c0_3 = arith.constant 0 : index
    %c0_4 = arith.constant 0 : index
    %c0_5 = arith.constant 0 : index
    %c0_6 = arith.constant 0 : index
    %2 = vector.load %arg3[%c0_3, %c0_4, %c0_5, %c0_6] : memref<1x8x8x4xf32, #tpu.memory_space<vmem>>, vector<1x8x8x4xf32>
    %3 = vector.shape_cast %2 : vector<1x8x8x4xf32> to vector<8x8x4xf32>
    %c0_7 = arith.constant 0 : index
    %c0_8 = arith.constant 0 : index
    %c0_9 = arith.constant 0 : index
    %4 = vector.load %arg4[%c0_7, %c0_8, %c0_9] : memref<1x64x8xi8, #tpu.memory_space<vmem>>, vector<1x64x8xi8>
    %5 = vector.shape_cast %4 : vector<1x64x8xi8> to vector<64x8xi8>
    %6 = arith.sitofp %5 : vector<64x8xi8> to vector<64x8xf32>
    %7 = vector.shape_cast %6 : vector<64x8xf32> to vector<64x8x1xf32>
    %8 = vector.shape_cast %7 : vector<64x8x1xf32> to vector<64x8x1xf32>
    %9 = vector.broadcast %8 : vector<64x8x1xf32> to vector<64x8x4xf32>
    %c0_10 = arith.constant 0 : index
    %c0_11 = arith.constant 0 : index
    %c0_12 = arith.constant 0 : index
    %10 = vector.load %arg5[%c0_10, %c0_11, %c0_12] : memref<1x8x8xi8, #tpu.memory_space<vmem>>, vector<1x8x8xi8>
    %11 = vector.shape_cast %10 : vector<1x8x8xi8> to vector<8x8xi8>
    %12 = arith.sitofp %11 : vector<8x8xi8> to vector<8x8xf32>
    %13 = vector.shape_cast %12 : vector<8x8xf32> to vector<8x8x1xf32>
    %14 = vector.shape_cast %13 : vector<8x8x1xf32> to vector<8x8x1xf32>
    %15 = vector.broadcast %14 : vector<8x8x1xf32> to vector<8x8x4xf32>
    %cst = arith.constant 0.000000e+00 : f32
    %16 = vector.broadcast %cst : f32 to vector<64x8x4xf32>
    %17 = arith.cmpf ogt, %9, %16 : vector<64x8x4xf32>
    %cst_13 = arith.constant 0.000000e+00 : f32
    %18 = vector.broadcast %cst_13 : f32 to vector<64x8x4xf32>
    %19 = arith.select %17, %1, %18 : vector<64x8x4xi1>, vector<64x8x4xf32>
    %cst_14 = arith.constant 0.000000e+00 : f32
    %20 = vector.broadcast %cst_14 : f32 to vector<8x8x4xf32>
    %21 = arith.cmpf ogt, %15, %20 : vector<8x8x4xf32>
    %cst_15 = arith.constant 0.000000e+00 : f32
    %22 = vector.broadcast %cst_15 : f32 to vector<8x8x4xf32>
    %23 = arith.select %21, %3, %22 : vector<8x8x4xi1>, vector<8x8x4xf32>
    %24 = vector.extract_strided_slice %19 {offsets = [0, 0, 0], sizes = [64, 1, 4], strides = [1, 1, 1]} : vector<64x8x4xf32> to vector<64x1x4xf32>
    %25 = vector.extract_strided_slice %23 {offsets = [0, 0, 0], sizes = [1, 8, 4], strides = [1, 1, 1]} : vector<8x8x4xf32> to vector<1x8x4xf32>
    %26 = vector.broadcast %24 : vector<64x1x4xf32> to vector<64x8x4xf32>
    %27 = vector.broadcast %25 : vector<1x8x4xf32> to vector<64x8x4xf32>
    %28 = arith.mulf %26, %27 : vector<64x8x4xf32>
    %29 = vector.extract_strided_slice %19 {offsets = [0, 1, 0], sizes = [64, 1, 4], strides = [1, 1, 1]} : vector<64x8x4xf32> to vector<64x1x4xf32>
    %30 = vector.extract_strided_slice %23 {offsets = [1, 0, 0], sizes = [1, 8, 4], strides = [1, 1, 1]} : vector<8x8x4xf32> to vector<1x8x4xf32>
    %31 = vector.broadcast %29 : vector<64x1x4xf32> to vector<64x8x4xf32>
    %32 = vector.broadcast %30 : vector<1x8x4xf32> to vector<64x8x4xf32>
    %33 = arith.mulf %31, %32 : vector<64x8x4xf32>
    %34 = arith.addf %28, %33 : vector<64x8x4xf32>
    %35 = vector.extract_strided_slice %19 {offsets = [0, 2, 0], sizes = [64, 1, 4], strides = [1, 1, 1]} : vector<64x8x4xf32> to vector<64x1x4xf32>
    %36 = vector.extract_strided_slice %23 {offsets = [2, 0, 0], sizes = [1, 8, 4], strides = [1, 1, 1]} : vector<8x8x4xf32> to vector<1x8x4xf32>
    %37 = vector.broadcast %35 : vector<64x1x4xf32> to vector<64x8x4xf32>
    %38 = vector.broadcast %36 : vector<1x8x4xf32> to vector<64x8x4xf32>
    %39 = arith.mulf %37, %38 : vector<64x8x4xf32>
    %40 = arith.addf %34, %39 : vector<64x8x4xf32>
    %41 = vector.extract_strided_slice %19 {offsets = [0, 3, 0], sizes = [64, 1, 4], strides = [1, 1, 1]} : vector<64x8x4xf32> to vector<64x1x4xf32>
    %42 = vector.extract_strided_slice %23 {offsets = [3, 0, 0], sizes = [1, 8, 4], strides = [1, 1, 1]} : vector<8x8x4xf32> to vector<1x8x4xf32>
    %43 = vector.broadcast %41 : vector<64x1x4xf32> to vector<64x8x4xf32>
    %44 = vector.broadcast %42 : vector<1x8x4xf32> to vector<64x8x4xf32>
    %45 = arith.mulf %43, %44 : vector<64x8x4xf32>
    %46 = arith.addf %40, %45 : vector<64x8x4xf32>
    %47 = vector.extract_strided_slice %19 {offsets = [0, 4, 0], sizes = [64, 1, 4], strides = [1, 1, 1]} : vector<64x8x4xf32> to vector<64x1x4xf32>
    %48 = vector.extract_strided_slice %23 {offsets = [4, 0, 0], sizes = [1, 8, 4], strides = [1, 1, 1]} : vector<8x8x4xf32> to vector<1x8x4xf32>
    %49 = vector.broadcast %47 : vector<64x1x4xf32> to vector<64x8x4xf32>
    %50 = vector.broadcast %48 : vector<1x8x4xf32> to vector<64x8x4xf32>
    %51 = arith.mulf %49, %50 : vector<64x8x4xf32>
    %52 = arith.addf %46, %51 : vector<64x8x4xf32>
    %53 = vector.extract_strided_slice %19 {offsets = [0, 5, 0], sizes = [64, 1, 4], strides = [1, 1, 1]} : vector<64x8x4xf32> to vector<64x1x4xf32>
    %54 = vector.extract_strided_slice %23 {offsets = [5, 0, 0], sizes = [1, 8, 4], strides = [1, 1, 1]} : vector<8x8x4xf32> to vector<1x8x4xf32>
    %55 = vector.broadcast %53 : vector<64x1x4xf32> to vector<64x8x4xf32>
    %56 = vector.broadcast %54 : vector<1x8x4xf32> to vector<64x8x4xf32>
    %57 = arith.mulf %55, %56 : vector<64x8x4xf32>
    %58 = arith.addf %52, %57 : vector<64x8x4xf32>
    %59 = vector.extract_strided_slice %19 {offsets = [0, 6, 0], sizes = [64, 1, 4], strides = [1, 1, 1]} : vector<64x8x4xf32> to vector<64x1x4xf32>
    %60 = vector.extract_strided_slice %23 {offsets = [6, 0, 0], sizes = [1, 8, 4], strides = [1, 1, 1]} : vector<8x8x4xf32> to vector<1x8x4xf32>
    %61 = vector.broadcast %59 : vector<64x1x4xf32> to vector<64x8x4xf32>
    %62 = vector.broadcast %60 : vector<1x8x4xf32> to vector<64x8x4xf32>
    %63 = arith.mulf %61, %62 : vector<64x8x4xf32>
    %64 = arith.addf %58, %63 : vector<64x8x4xf32>
    %65 = vector.extract_strided_slice %19 {offsets = [0, 7, 0], sizes = [64, 1, 4], strides = [1, 1, 1]} : vector<64x8x4xf32> to vector<64x1x4xf32>
    %66 = vector.extract_strided_slice %23 {offsets = [7, 0, 0], sizes = [1, 8, 4], strides = [1, 1, 1]} : vector<8x8x4xf32> to vector<1x8x4xf32>
    %67 = vector.broadcast %65 : vector<64x1x4xf32> to vector<64x8x4xf32>
    %68 = vector.broadcast %66 : vector<1x8x4xf32> to vector<64x8x4xf32>
    %69 = arith.mulf %67, %68 : vector<64x8x4xf32>
    %70 = arith.addf %64, %69 : vector<64x8x4xf32>
    %c0_16 = arith.constant 0 : index
    %c0_17 = arith.constant 0 : index
    %c0_18 = arith.constant 0 : index
    %71 = vector.load %arg6[%c0_16, %c0_17, %c0_18] : memref<1x64x8xi8, #tpu.memory_space<vmem>>, vector<1x64x8xi8>
    %72 = vector.shape_cast %71 : vector<1x64x8xi8> to vector<64x8xi8>
    %73 = arith.sitofp %72 : vector<64x8xi8> to vector<64x8xf32>
    %74 = vector.shape_cast %73 : vector<64x8xf32> to vector<64x8x1xf32>
    %75 = vector.shape_cast %74 : vector<64x8x1xf32> to vector<64x8x1xf32>
    %76 = vector.broadcast %75 : vector<64x8x1xf32> to vector<64x8x4xf32>
    %cst_19 = arith.constant 0.000000e+00 : f32
    %77 = vector.broadcast %cst_19 : f32 to vector<64x8x4xf32>
    %78 = arith.cmpf ogt, %76, %77 : vector<64x8x4xf32>
    %cst_20 = arith.constant 0.000000e+00 : f32
    %79 = vector.broadcast %cst_20 : f32 to vector<64x8x4xf32>
    %80 = arith.select %78, %70, %79 : vector<64x8x4xi1>, vector<64x8x4xf32>
    %c0_21 = arith.constant 0 : index
    %c0_22 = arith.constant 0 : index
    %c0_23 = arith.constant 0 : index
    %c0_24 = arith.constant 0 : index
    %81 = vector.load %arg7[%c0_21, %c0_22, %c0_23, %c0_24] : memref<1x64x8x4xf32, #tpu.memory_space<vmem>>, vector<1x64x8x4xf32>
    %82 = vector.shape_cast %81 : vector<1x64x8x4xf32> to vector<64x8x4xf32>
    %83 = vector.shape_cast %80 : vector<64x8x4xf32> to vector<1x64x8x4xf32>
    tpu.vector_store %arg7[%c0_21, %c0_22, %c0_23, %c0_24], %83 {strides = array<i32>} : memref<1x64x8x4xf32, #tpu.memory_space<vmem>>, vector<1x64x8x4xf32>,
    return
  }
  func.func @transform_0(%arg0: i32, %arg1: i32) -> (i32, i32, i32, i32) {
    %c0_i32 = arith.constant 0 : i32
    %c0_i32_0 = arith.constant 0 : i32
    %c0_i32_1 = arith.constant 0 : i32
    return %arg0, %arg1, %c0_i32, %c0_i32_0 : i32, i32, i32, i32
  }
  func.func @transform_1(%arg0: i32, %arg1: i32) -> (i32, i32, i32, i32) {
    %c0_i32 = arith.constant 0 : i32
    %c0_i32_0 = arith.constant 0 : i32
    %c0_i32_1 = arith.constant 0 : i32
    %c0_i32_2 = arith.constant 0 : i32
    return %arg0, %c0_i32, %c0_i32_0, %c0_i32_1 : i32, i32, i32, i32
  }
  func.func @transform_2(%arg0: i32, %arg1: i32) -> (i32, i32, i32) {
    %c0_i32 = arith.constant 0 : i32
    %c0_i32_0 = arith.constant 0 : i32
    return %arg0, %arg1, %c0_i32 : i32, i32, i32
  }
  func.func @transform_3(%arg0: i32, %arg1: i32) -> (i32, i32, i32) {
    %c0_i32 = arith.constant 0 : i32
    %c0_i32_0 = arith.constant 0 : i32
    %c0_i32_1 = arith.constant 0 : i32
    return %arg0, %c0_i32, %c0_i32_0 : i32, i32, i32
  }
  func.func @transform_4(%arg0: i32, %arg1: i32) -> (i32, i32, i32) {
    %c0_i32 = arith.constant 0 : i32
    %c0_i32_0 = arith.constant 0 : i32
    return %arg0, %arg1, %c0_i32 : i32, i32, i32
  }
  func.func @transform_5(%arg0: i32, %arg1: i32) -> (i32, i32, i32, i32) {
    %c0_i32 = arith.constant 0 : i32
    %c0_i32_0 = arith.constant 0 : i32
    %c0_i32_1 = arith.constant 0 : i32
    return %arg0, %arg1, %c0_i32, %c0_i32_0 : i32, i32, i32, i32
  }
}

</mosaic_0001>

<bundles_post_ra>
// kernel: op_message_passing_on_subg3d.1
= control target key start
LH: loop header
LB: loop body
LE: loop exit
PB: predicated region body
PF: predicated region fallthrough
CT: control target
= control target key end

     0   :  { %s5029_s18 = smov 0   ;;  %s5031_s19 = smov 0   ;;  %s8659_s0 = inlined_call_operand.vmem [shape: f32[2,64,8,4], index: 0, kind: input, shape index: {}]   ;;  %s8660_s1 = inlined_call_operand.vmem [shape: f32[2,8,8,4], index: 1, kind: input, shape index: {}]   ;;  %s8661_s2 = inlined_call_operand.vmem [shape: s8[2,64,8], index: 2, kind: input, shape index: {}]   ;;  %s8662_s3 = inlined_call_operand.vmem [shape: s8[2,8,8], index: 3, kind: input, shape index: {}]   ;;  %s8663_s4 = inlined_call_operand.vmem [shape: s8[2,64,8], index: 4, kind: input, shape index: {}]   ;;  %s8664_s5 = inlined_call_operand.vmem [shape: f32[2,64,8,4], index: 5, kind: output, shape index: {}]  }
   0x1   :  { %s5033_s20 = smov 0  }
   0x2 LB: > { %s27_s21 = sadd.s32 1, %s4993_s19  ;;  %p4932_p0 = scmp.ge.s32.totalorder %s4997_s20, 1  ;;  %s4997_s20 = sphi %s5033_s20, %s15_s20   ;;  %s4993_s19 = sphi %s5031_s19, %s9232_s19   ;;  %s4989_s18 = sphi %s5029_s18, %s9231_s18  }
   0x3   : > { %p29_p1 = scmp.ge.s32.totalorder %s27_s21, 2  ;;  %p261_p2 = scmp.lt.s32.totalorder %s4997_s20, 3 }
   0x5   : > { %s9234_s21 = smov (%p29_p1, %s27_s21), 0  ;;  %p262_p3 = pnand %p4932_p0, %p261_p2 }
   0x7   : > { %265 = sbr.rel (%p262_p3) target bundleno = 686 (0x2ae), region = 40 }
   0xe   : > { %p325_p4 = scmp.lt.s32.totalorder %s4989_s18, 1  ;;  %v463_v0 = vlaneseq }
  0x10   : > { %s9236_s18 = smov (!%p325_p4, %s4989_s18), 1  ;;  %v464_v1 = vshrl.u32 %v463_v0, 7 }
  0x11   : > { %s4948_s22 = sshll.u32 %s9236_s18, 4  ;;  %s4939_s26 = sshll.u32 %s9236_s18, 1 }
  0x12   : > { %s5055_s25 = scalar_lea.vmem %s8661_s2, %s4948_s22  ;;  %v5058_v4 = vsub.s32 2, %v464_v1  ;;  %v5060_v5 = vsub.s32 0, %v464_v1  ;;  %v5062_v7 = vsub.s32 3, %v464_v1  ;;  %v5064_v8 = vsub.s32 1, %v464_v1  ;;  %s352_s29 = scalar_lea.vmem %s8662_s3, %s4939_s26 }
  0x13   : > { %v445_v2 = vld [vmem:[%s5055_s25] sm:$0xff]  ;;  %v5070_v13 = vsub.s32 5, %v464_v1  ;;  %v5072_v14 = vsub.s32 4, %v464_v1  ;;  %v5074_v15 = vsub.s32 7, %v464_v1  ;;  %v5078_v18 = vsub.s32 6, %v464_v1  ;;  %v446_v47 = vld [vmem:[%s5055_s25 + $0x8] sm:$0xff]  ;;  %s5134_s7 = scalar_lea.vmem %s8663_s4, %s4948_s22 }
  0x14   : > { %v447_v3 = vunpack.c.0.s8 %v445_v2  ;;  %v448_v19 = vunpack.c.1.s8 %v445_v2  ;;  %v449_v29 = vunpack.c.2.s8 %v445_v2  ;;  %v450_v39 = vunpack.c.3.s8 %v445_v2  ;;  %s4946_s8 = sshll.u32 %s9236_s18, 9  ;;  %s4947_s12 = sshll.u32 %s9236_s18, 6 }
  0x15   : > { %v451_v50 = vunpack.c.0.s8 %v446_v47  ;;  %v452_v60 = vunpack.c.1.s8 %v446_v47  ;;  %s5261_s11 = scalar_lea.vmem %s8659_s0, %s4946_s8  ;;  %s6420_s15 = scalar_lea.vmem %s8660_s1, %s4947_s12 }
  0x16   : > { %v455_v6 = vcvt.s32.f32 %v447_v3  ;;  %v456_v22 = vcvt.s32.f32 %v448_v19  ;;  %v457_v32 = vcvt.s32.f32 %v449_v29  ;;  %v458_v42 = vcvt.s32.f32 %v450_v39  ;;  %s6647_s22 = scalar_lea.vmem %s8664_s5, %s4946_s8 }
  0x17   : > { %v459_v53 = vcvt.s32.f32 %v451_v50  ;;  %v460_v63 = vcvt.s32.f32 %v452_v60  ;;  %v454_v19 = vunpack.c.3.s8 %v446_v47 }
  0x18   : > { %v480_v9 = vrot.slane %v455_v6, %v5058_v4  ;;  %v466_v10 = vrot.slane %v455_v6, %v5060_v5  ;;  %v487_v11 = vrot.slane %v455_v6, %v5062_v7  ;;  %v473_v12 = vrot.slane %v455_v6, %v5064_v8 }
  0x19   : > { %v501_v16 = vrot.slane %v455_v6, %v5070_v13  ;;  %v494_v17 = vrot.slane %v455_v6, %v5072_v14  ;;  %v515_v20 = vrot.slane %v455_v6, %v5074_v15  ;;  %v508_v21 = vrot.slane %v455_v6, %v5078_v18 }
  0x1a   : > { %482 = vbcast.lane.b32.xlu1 %v480_v9, 256  ;;  %468 = vbcast.lane.b32.xlu0 %v466_v10, 256  ;;  %v529_v23 = vrot.slane %v456_v22, %v5064_v8  ;;  %v522_v24 = vrot.slane %v456_v22, %v5060_v5  ;;  %v543_v25 = vrot.slane %v456_v22, %v5062_v7  ;;  %v453_v10 = vunpack.c.2.s8 %v446_v47 }
  0x1b   : > { %v536_v26 = vrot.slane %v456_v22, %v5058_v4  ;;  %v557_v27 = vrot.slane %v456_v22, %v5070_v13  ;;  %v550_v28 = vrot.slane %v456_v22, %v5072_v14  ;;  %v571_v30 = vrot.slane %v456_v22, %v5074_v15 }
  0x1c   : > { %v564_v31 = vrot.slane %v456_v22, %v5078_v18  ;;  %v585_v33 = vrot.slane %v457_v32, %v5064_v8  ;;  %v578_v34 = vrot.slane %v457_v32, %v5060_v5  ;;  %v599_v35 = vrot.slane %v457_v32, %v5062_v7 }
  0x1d   : > { %v592_v36 = vrot.slane %v457_v32, %v5058_v4  ;;  %v613_v37 = vrot.slane %v457_v32, %v5070_v13  ;;  %v606_v38 = vrot.slane %v457_v32, %v5072_v14  ;;  %v627_v40 = vrot.slane %v457_v32, %v5074_v15 }
  0x1e   : > { %489 = vbcast.lane.b32.xlu1 %v487_v11, 256  ;;  %475 = vbcast.lane.b32.xlu0 %v473_v12, 256  ;;  %v620_v41 = vrot.slane %v457_v32, %v5078_v18  ;;  %v641_v43 = vrot.slane %v458_v42, %v5064_v8  ;;  %v634_v44 = vrot.slane %v458_v42, %v5060_v5 }
  0x1f   : > { %v655_v45 = vrot.slane %v458_v42, %v5062_v7  ;;  %v648_v46 = vrot.slane %v458_v42, %v5058_v4  ;;  %v669_v48 = vrot.slane %v458_v42, %v5070_v13  ;;  %v662_v49 = vrot.slane %v458_v42, %v5072_v14 }
  0x20   : > { %v683_v51 = vrot.slane %v458_v42, %v5074_v15  ;;  %v676_v52 = vrot.slane %v458_v42, %v5078_v18  ;;  %v697_v54 = vrot.slane %v459_v53, %v5064_v8  ;;  %v690_v55 = vrot.slane %v459_v53, %v5060_v5 }
  0x21   : > { %v711_v56 = vrot.slane %v459_v53, %v5062_v7  ;;  %v704_v57 = vrot.slane %v459_v53, %v5058_v4  ;;  %v725_v58 = vrot.slane %v459_v53, %v5070_v13  ;;  %v718_v59 = vrot.slane %v459_v53, %v5072_v14 }
  0x22   : > { %503 = vbcast.lane.b32.xlu1 %v501_v16, 256  ;;  %496 = vbcast.lane.b32.xlu0 %v494_v17, 256  ;;  %v739_v61 = vrot.slane %v459_v53, %v5074_v15  ;;  %v732_v62 = vrot.slane %v459_v53, %v5078_v18  ;;  %v753_v0 = vrot.slane %v460_v63, %v5064_v8  ;;  %v5127_v16 = vcvt.s32.f32 %v453_v10  ;;  %v911_v17 = vld [vmem:[%s352_s29] sm:$0x3] }
  0x23   : > { %v746_v1 = vrot.slane %v460_v63, %v5060_v5  ;;  %v767_v2 = vrot.slane %v460_v63, %v5062_v7  ;;  %v760_v3 = vrot.slane %v460_v63, %v5058_v4  ;;  %v781_v6 = vrot.slane %v460_v63, %v5070_v13 }
  0x24   : > { %v774_v9 = vrot.slane %v460_v63, %v5072_v14  ;;  %v795_v11 = vrot.slane %v460_v63, %v5074_v15  ;;  %v788_v12 = vrot.slane %v460_v63, %v5078_v18  ;;  %v809_v22 = vrot.slane %v5127_v16, %v5064_v8 }
  0x25   : > { %v837_v29 = vrot.slane %v5127_v16, %v5070_v13 }
  0x26   : > { %517 = vbcast.lane.b32.xlu1 %v515_v20, 256  ;;  %510 = vbcast.lane.b32.xlu0 %v508_v21, 256  ;;  %v912_v20 = vunpack.c.0.s8 %v911_v17  ;;  %v4122_v21 = vld [vmem:[%s5134_s7] sm:$0xff] }
  0x27   : > { %v4125_v32 = vunpack.c.1.s8 %v4122_v21  ;;  %v4127_v53 = vunpack.c.3.s8 %v4122_v21 }
  0x2a   : > { %531 = vbcast.lane.b32.xlu1 %v529_v23, 256  ;;  %524 = vbcast.lane.b32.xlu0 %v522_v24, 256  ;;  %v802_v23 = vrot.slane %v5127_v16, %v5060_v5  ;;  %v5141_v24 = vcvt.s32.f32 %v454_v19 }
  0x2c   : > { %v886_v39 = vrot.slane %v5141_v24, %v5072_v14  ;;  %v900_v42 = vrot.slane %v5141_v24, %v5078_v18 }
  0x2e   : > { %545 = vbcast.lane.b32.xlu1 %v543_v25, 256  ;;  %538 = vbcast.lane.b32.xlu0 %v536_v26, 256  ;;  %v4124_v25 = vunpack.c.0.s8 %v4122_v21  ;;  %v823_v26 = vrot.slane %v5127_v16, %v5062_v7 }
  0x32   : > { %559 = vbcast.lane.b32.xlu1 %v557_v27, 256  ;;  %552 = vbcast.lane.b32.xlu0 %v550_v28, 256  ;;  %v816_v27 = vrot.slane %v5127_v16, %v5058_v4  ;;  %v5147_v28 = vcvt.s32.f32 %v912_v20 }
  0x34   : > { %v931_v47 = vrot.slane %v5147_v28, %v5058_v4  ;;  %v945_v50 = vrot.slane %v5147_v28, %v5072_v14 }
  0x36   : > { %573 = vbcast.lane.b32.xlu1 %v571_v30, 256  ;;  %566 = vbcast.lane.b32.xlu0 %v564_v31, 256  ;;  %v830_v30 = vrot.slane %v5127_v16, %v5072_v14  ;;  %v851_v31 = vrot.slane %v5127_v16, %v5074_v15 }
  0x3a   : > { %587 = vbcast.lane.b32.xlu1 %v585_v33, 256  ;;  %580 = vbcast.lane.b32.xlu0 %v578_v34, 256  ;;  %v844_v33 = vrot.slane %v5127_v16, %v5078_v18  ;;  %v865_v34 = vrot.slane %v5141_v24, %v5064_v8 }
  0x3e   : > { %601 = vbcast.lane.b32.xlu1 %v599_v35, 256  ;;  %594 = vbcast.lane.b32.xlu0 %v592_v36, 256  ;;  %v858_v35 = vrot.slane %v5141_v24, %v5060_v5  ;;  %v879_v36 = vrot.slane %v5141_v24, %v5062_v7 }
  0x42   : > { %615 = vbcast.lane.b32.xlu1 %v613_v37, 256  ;;  %608 = vbcast.lane.b32.xlu0 %v606_v38, 256  ;;  %v872_v37 = vrot.slane %v5141_v24, %v5058_v4  ;;  %v893_v38 = vrot.slane %v5141_v24, %v5070_v13 }
  0x46   : > { %629 = vbcast.lane.b32.xlu1 %v627_v40, 256  ;;  %622 = vbcast.lane.b32.xlu0 %v620_v41, 256  ;;  %v5169_v40 = vcvt.s32.f32 %v4124_v25  ;;  %v907_v41 = vrot.slane %v5141_v24, %v5074_v15 }
  0x48   : > { %v4171_v60 = vrot.slane %v5169_v40, %v5072_v14  ;;  %v4185_v63 = vrot.slane %v5169_v40, %v5078_v18 }
  0x4a   : > { %643 = vbcast.lane.b32.xlu1 %v641_v43, 256  ;;  %636 = vbcast.lane.b32.xlu0 %v634_v44, 256  ;;  %v924_v43 = vrot.slane %v5147_v28, %v5064_v8  ;;  %v4126_v44 = vunpack.c.2.s8 %v4122_v21 }
  0x4e   : > { %657 = vbcast.lane.b32.xlu1 %v655_v45, 256  ;;  %650 = vbcast.lane.b32.xlu0 %v648_v46, 256  ;;  %v917_v45 = vrot.slane %v5147_v28, %v5060_v5  ;;  %v938_v46 = vrot.slane %v5147_v28, %v5062_v7 }
  0x52   : > { %671 = vbcast.lane.b32.xlu1 %v669_v48, 256  ;;  %664 = vbcast.lane.b32.xlu0 %v662_v49, 256  ;;  %v5183_v48 = vcvt.s32.f32 %v4125_v32  ;;  %v952_v49 = vrot.slane %v5147_v28, %v5070_v13 }
  0x54   : > { %v4234_v10 = vrot.slane %v5183_v48, %v5070_v13  ;;  %v4241_v17 = vrot.slane %v5183_v48, %v5078_v18 }
  0x56   : > { %685 = vbcast.lane.b32.xlu1 %v683_v51, 256  ;;  %678 = vbcast.lane.b32.xlu0 %v676_v52, 256  ;;  %v966_v51 = vrot.slane %v5147_v28, %v5074_v15  ;;  %v5192_v52 = vld [vmem:[%s5134_s7 + $0x8] sm:$0xff] }
  0x57   : > { %v4129_v16 = vunpack.c.1.s8 %v5192_v52 }
  0x5a   : > { %699 = vbcast.lane.b32.xlu1 %v697_v54, 256  ;;  %692 = vbcast.lane.b32.xlu0 %v690_v55, 256  ;;  %v959_v54 = vrot.slane %v5147_v28, %v5078_v18  ;;  %v4150_v55 = vrot.slane %v5169_v40, %v5064_v8 }
  0x5e   : > { %713 = vbcast.lane.b32.xlu1 %v711_v56, 256  ;;  %706 = vbcast.lane.b32.xlu0 %v704_v57, 256  ;;  %v4143_v56 = vrot.slane %v5169_v40, %v5060_v5  ;;  %v4164_v57 = vrot.slane %v5169_v40, %v5062_v7 }
  0x62   : > { %727 = vbcast.lane.b32.xlu1 %v725_v58, 256  ;;  %720 = vbcast.lane.b32.xlu0 %v718_v59, 256  ;;  %v4157_v58 = vrot.slane %v5169_v40, %v5058_v4  ;;  %v4178_v59 = vrot.slane %v5169_v40, %v5070_v13 }
  0x66   : > { %741 = vbcast.lane.b32.xlu1 %v739_v61, 256  ;;  %734 = vbcast.lane.b32.xlu0 %v732_v62, 256  ;;  %v5208_v61 = vcvt.s32.f32 %v4126_v44  ;;  %v4192_v62 = vrot.slane %v5169_v40, %v5074_v15  ;;  %v373_v44 = vld [vmem:[%s5261_s11] sm:$0xff] }
  0x68   : > { %v4262_v19 = vrot.slane %v5208_v61, %v5064_v8  ;;  %v4255_v20 = vrot.slane %v5208_v61, %v5060_v5  ;;  %v4276_v21 = vrot.slane %v5208_v61, %v5062_v7 }
  0x6a   : > { %755 = vbcast.lane.b32.xlu1 %v753_v0, 256  ;;  %748 = vbcast.lane.b32.xlu0 %v746_v1, 256  ;;  %v4206_v0 = vrot.slane %v5183_v48, %v5064_v8  ;;  %v4128_v1 = vunpack.c.0.s8 %v5192_v52 }
  0x6e   : > { %769 = vbcast.lane.b32.xlu1 %v767_v2, 256  ;;  %762 = vbcast.lane.b32.xlu0 %v760_v3, 256  ;;  %v4199_v2 = vrot.slane %v5183_v48, %v5060_v5  ;;  %v4220_v3 = vrot.slane %v5183_v48, %v5062_v7 }
  0x72   : > { %783 = vbcast.lane.b32.xlu1 %v781_v6, 256  ;;  %776 = vbcast.lane.b32.xlu0 %v774_v9, 256  ;;  %v4213_v6 = vrot.slane %v5183_v48, %v5058_v4  ;;  %v5223_v9 = vcvt.s32.f32 %v4127_v53  ;;  %v5269_v53 = vcvt.s32.f32 %v4129_v16 }
  0x76   : > { %797 = vbcast.lane.b32.xlu1 %v795_v11, 256  ;;  %790 = vbcast.lane.b32.xlu0 %v788_v12, 256  ;;  %v4227_v11 = vrot.slane %v5183_v48, %v5072_v14  ;;  %v4248_v12 = vrot.slane %v5183_v48, %v5074_v15 }
  0x7a   : > { %811 = vbcast.lane.b32.xlu1 %v809_v22, 256  ;;  %804 = vbcast.lane.b32.xlu0 %v802_v23, 256  ;;  %v4269_v22 = vrot.slane %v5208_v61, %v5058_v4  ;;  %v4290_v23 = vrot.slane %v5208_v61, %v5070_v13 }
  0x7e   : > { %825 = vbcast.lane.b32.xlu1 %v823_v26, 256  ;;  %818 = vbcast.lane.b32.xlu0 %v816_v27, 256  ;;  %v5247_v26 = vcvt.s32.f32 %v4128_v1  ;;  %v375_v1 = vld [vmem:[%s5261_s11 + $0x10] sm:$0xff] }
  0x82   : > { %839 = vbcast.lane.b32.xlu1 %v837_v29, 256  ;;  %832 = vbcast.lane.b32.xlu0 %v830_v30, 256 }
  0x86   : > { %853 = vbcast.lane.b32.xlu1 %v851_v31, 256  ;;  %846 = vbcast.lane.b32.xlu0 %v844_v33, 256  ;;  %v4130_v31 = vunpack.c.2.s8 %v5192_v52 }
  0x88   : > { %v5299_v33 = vcvt.s32.f32 %v4130_v31  ;;  %v376_v31 = vld [vmem:[%s5261_s11 + $0x18] sm:$0xff] }
  0x8a   : > { %867 = vbcast.lane.b32.xlu1 %v865_v34, 256  ;;  %860 = vbcast.lane.b32.xlu0 %v858_v35, 256  ;;  %v374_v35 = vld [vmem:[%s5261_s11 + $0x8] sm:$0xff] }
  0x8c   : > { %v483_v16 = vpop.permute.xlu1 %482  ;;  %v469_v27 = vpop.permute.xlu0 %468 }
  0x8d   : > { %vm972_vm0 = vcmp.gt.f32.partialorder %v483_v16, 0.0  ;;  %vm970_vm1 = vcmp.gt.f32.partialorder %v469_v27, 0.0 }
  0x8e   : > { %v5313_v25 = vsel %vm972_vm0, %v375_v1, 0.0  ;;  %v5315_v29 = vsel %vm970_vm1, %v373_v44, 0.0  ;;  %881 = vbcast.lane.b32.xlu1 %v879_v36, 256  ;;  %874 = vbcast.lane.b32.xlu0 %v872_v37, 256  ;;  %v4131_v44 = vunpack.c.3.s8 %v5192_v52 }
  0x90   : > { %v490_v34 = vpop.permute.xlu1 %489  ;;  %v476_v32 = vpop.permute.xlu0 %475 }
  0x91   : > { %vm973_vm2 = vcmp.gt.f32.partialorder %v490_v34, 0.0  ;;  %vm971_vm3 = vcmp.gt.f32.partialorder %v476_v32, 0.0  ;;  %v378_v34 = vld [vmem:[%s5261_s11 + $0x28] sm:$0xff]  ;;  %v377_v32 = vld [vmem:[%s5261_s11 + $0x20] sm:$0xff] }
  0x92   : > { %v5349_v27 = vsel %vm973_vm2, %v376_v31, 0.0  ;;  %v5351_v16 = vsel %vm971_vm3, %v374_v35, 0.0  ;;  %895 = vbcast.lane.b32.xlu1 %v893_v38, 256  ;;  %888 = vbcast.lane.b32.xlu0 %v886_v39, 256  ;;  %v5396_v31 = vcvt.s32.f32 %v4131_v44  ;;  %v380_v35 = vld [vmem:[%s5261_s11 + $0x38] sm:$0xff]  ;;  %v8766_v39 = vrot.slane %v5223_v9, %v5058_v4 }
  0x94   : > { %v504_v1 = vpop.permute.xlu1 %503  ;;  %v497_v37 = vpop.permute.xlu0 %496 }
  0x95   : > { %vm975_vm4 = vcmp.gt.f32.partialorder %v504_v1, 0.0  ;;  %vm974_vm5 = vcmp.gt.f32.partialorder %v497_v37, 0.0  ;;  %v379_v1 = vld [vmem:[%s5261_s11 + $0x30] sm:$0xff] }
  0x96   : > { %v5386_v30 = vsel %vm975_vm4, %v378_v34, 0.0  ;;  %v5388_v52 = vsel %vm974_vm5, %v377_v32, 0.0  ;;  %909 = vbcast.lane.b32.xlu1 %v907_v41, 256  ;;  %902 = vbcast.lane.b32.xlu0 %v900_v42, 256  ;;  %v385_v32 = vld [vmem:[%s5261_s11 + $0x60] sm:$0xff] }
  0x98   : > { %v518_v44 = vpop.permute.xlu1 %517  ;;  %v511_v38 = vpop.permute.xlu0 %510 }
  0x99   : > { %vm977_vm6 = vcmp.gt.f32.partialorder %v518_v44, 0.0  ;;  %vm976_vm7 = vcmp.gt.f32.partialorder %v511_v38, 0.0  ;;  %v382_v44 = vld [vmem:[%s5261_s11 + $0x48] sm:$0xff]  ;;  %v381_v38 = vld [vmem:[%s5261_s11 + $0x40] sm:$0xff] }
  0x9a   : > { %v5420_v24 = vsel %vm977_vm6, %v380_v35, 0.0  ;;  %v5422_v42 = vsel %vm976_vm7, %v379_v1, 0.0  ;;  %926 = vbcast.lane.b32.xlu1 %v924_v43, 256  ;;  %919 = vbcast.lane.b32.xlu0 %v917_v45, 256  ;;  %v383_v35 = vld [vmem:[%s5261_s11 + $0x50] sm:$0xff] }
  0x9c   : > { %v532_v34 = vpop.permute.xlu1 %531  ;;  %v525_v37 = vpop.permute.xlu0 %524 }
  0x9d   : > { %vm979_vm8 = vcmp.gt.f32.partialorder %v532_v34, 0.0  ;;  %vm978_vm9 = vcmp.gt.f32.partialorder %v525_v37, 0.0  ;;  %v384_v34 = vld [vmem:[%s5261_s11 + $0x58] sm:$0xff] }
  0x9e   : > { %v5456_v45 = vsel %vm979_vm8, %v382_v44, 0.0  ;;  %v5458_v41 = vsel %vm978_vm9, %v381_v38, 0.0  ;;  %940 = vbcast.lane.b32.xlu1 %v938_v46, 256  ;;  %933 = vbcast.lane.b32.xlu0 %v931_v47, 256  ;;  %v387_v46 = vld [vmem:[%s5261_s11 + $0x70] sm:$0xff] }
  0xa0   : > { %v546_v1 = vpop.permute.xlu1 %545  ;;  %v539_v44 = vpop.permute.xlu0 %538 }
  0xa1   : > { %vm981_vm10 = vcmp.gt.f32.partialorder %v546_v1, 0.0  ;;  %vm980_vm11 = vcmp.gt.f32.partialorder %v539_v44, 0.0  ;;  %v386_v44 = vld [vmem:[%s5261_s11 + $0x68] sm:$0xff] }
  0xa2   : > { %v5492_v47 = vsel %vm981_vm10, %v384_v34, 0.0  ;;  %v5494_v37 = vsel %vm980_vm11, %v383_v35, 0.0  ;;  %954 = vbcast.lane.b32.xlu1 %v952_v49, 256  ;;  %947 = vbcast.lane.b32.xlu0 %v945_v50, 256 }
  0xa4   : > { %v560_v38 = vpop.permute.xlu1 %559  ;;  %v553_v35 = vpop.permute.xlu0 %552 }
  0xa5   : > { %vm983_vm12 = vcmp.gt.f32.partialorder %v560_v38, 0.0  ;;  %vm982_vm13 = vcmp.gt.f32.partialorder %v553_v35, 0.0  ;;  %v388_v35 = vld [vmem:[%s5261_s11 + $0x78] sm:$0xff] }
  0xa6   : > { %v5528_v50 = vsel %vm983_vm12, %v386_v44, 0.0  ;;  %v5530_v1 = vsel %vm982_vm13, %v385_v32, 0.0  ;;  %968 = vbcast.lane.b32.xlu1 %v966_v51, 256  ;;  %961 = vbcast.lane.b32.xlu0 %v959_v54, 256  ;;  %v389_v32 = vld [vmem:[%s5261_s11 + $0x80] sm:$0xff]  ;;  %v391_v54 = vld [vmem:[%s5261_s11 + $0x90] sm:$0xff] }
  0xa8   : > { %v574_v43 = vpop.permute.xlu1 %573  ;;  %v567_v34 = vpop.permute.xlu0 %566 }
  0xa9   : > { %vm985_vm14 = vcmp.gt.f32.partialorder %v574_v43, 0.0  ;;  %vm984_vm15 = vcmp.gt.f32.partialorder %v567_v34, 0.0  ;;  %v390_v34 = vld [vmem:[%s5261_s11 + $0x88] sm:$0xff] }
  0xaa   : > { %v5564_v28 = vsel %vm985_vm14, %v388_v35, 0.0  ;;  %v5566_v38 = vsel %vm984_vm15, %v387_v46, 0.0  ;;  %4152 = vbcast.lane.b32.xlu1 %v4150_v55, 256  ;;  %4145 = vbcast.lane.b32.xlu0 %v4143_v56, 256  ;;  %v8763_v46 = vrot.slane %v5223_v9, %v5060_v5 }
  0xac   : > { %v588_v44 = vpop.permute.xlu1 %587  ;;  %v581_v49 = vpop.permute.xlu0 %580 }
  0xad   : > { %vm987_vm0 = vcmp.gt.f32.partialorder %v588_v44, 0.0  ;;  %vm986_vm1 = vcmp.gt.f32.partialorder %v581_v49, 0.0  ;;  %v392_v44 = vld [vmem:[%s5261_s11 + $0x98] sm:$0xff] }
  0xae   : > { %v5600_v56 = vsel %vm987_vm0, %v390_v34, 0.0  ;;  %v5602_v43 = vsel %vm986_vm1, %v389_v32, 0.0  ;;  %4166 = vbcast.lane.b32.xlu1 %v4164_v57, 256  ;;  %4159 = vbcast.lane.b32.xlu0 %v4157_v58, 256  ;;  %v393_v32 = vld [vmem:[%s5261_s11 + $0xa0] sm:$0xff] }
  0xaf   : > { %v397_v57 = vld [vmem:[%s5261_s11 + $0xc0] sm:$0xff] }
  0xb0   : > { %v602_v51 = vpop.permute.xlu1 %601  ;;  %v595_v35 = vpop.permute.xlu0 %594 }
  0xb1   : > { %vm989_vm2 = vcmp.gt.f32.partialorder %v602_v51, 0.0  ;;  %vm988_vm3 = vcmp.gt.f32.partialorder %v595_v35, 0.0  ;;  %v394_v35 = vld [vmem:[%s5261_s11 + $0xa8] sm:$0xff] }
  0xb2   : > { %v5636_v58 = vsel %vm989_vm2, %v392_v44, 0.0  ;;  %v5638_v49 = vsel %vm988_vm3, %v391_v54, 0.0  ;;  %4180 = vbcast.lane.b32.xlu1 %v4178_v59, 256  ;;  %4173 = vbcast.lane.b32.xlu0 %v4171_v60, 256  ;;  %v395_v54 = vld [vmem:[%s5261_s11 + $0xb0] sm:$0xff] }
  0xb4   : > { %v616_v55 = vpop.permute.xlu1 %615  ;;  %v609_v34 = vpop.permute.xlu0 %608 }
  0xb5   : > { %vm991_vm4 = vcmp.gt.f32.partialorder %v616_v55, 0.0  ;;  %vm990_vm5 = vcmp.gt.f32.partialorder %v609_v34, 0.0  ;;  %v396_v34 = vld [vmem:[%s5261_s11 + $0xb8] sm:$0xff] }
  0xb6   : > { %v5672_v60 = vsel %vm991_vm4, %v394_v35, 0.0  ;;  %v5674_v51 = vsel %vm990_vm5, %v393_v32, 0.0  ;;  %4194 = vbcast.lane.b32.xlu1 %v4192_v62, 256  ;;  %4187 = vbcast.lane.b32.xlu0 %v4185_v63, 256  ;;  %v8760_v32 = vrot.slane %v5208_v61, %v5078_v18 }
  0xb8   : > { %v630_v44 = vpop.permute.xlu1 %629  ;;  %v623_v59 = vpop.permute.xlu0 %622 }
  0xb9   : > { %vm993_vm6 = vcmp.gt.f32.partialorder %v630_v44, 0.0  ;;  %vm992_vm7 = vcmp.gt.f32.partialorder %v623_v59, 0.0  ;;  %v398_v59 = vld [vmem:[%s5261_s11 + $0xc8] sm:$0xff] }
  0xba   : > { %v5708_v40 = vsel %vm993_vm6, %v396_v34, 0.0  ;;  %v5710_v55 = vsel %vm992_vm7, %v395_v54, 0.0  ;;  %4208 = vbcast.lane.b32.xlu1 %v4206_v0, 256  ;;  %4201 = vbcast.lane.b32.xlu0 %v4199_v2, 256  ;;  %v399_v54 = vld [vmem:[%s5261_s11 + $0xd0] sm:$0xff] }
  0xbb   : > { %8743 = vst [vmem:[#allocation2_spill] sm:$0xff] %v5708_v40  ;;  %8744 = vst [vmem:[#allocation3_spill] sm:$0xff] %v5710_v55  ;;  %v8770_v55 = vrot.slane %v5223_v9, %v5072_v14 }
  0xbc   : > { %v644_v62 = vpop.permute.xlu1 %643  ;;  %v637_v35 = vpop.permute.xlu0 %636 }
  0xbd   : > { %vm995_vm8 = vcmp.gt.f32.partialorder %v644_v62, 0.0  ;;  %vm994_vm9 = vcmp.gt.f32.partialorder %v637_v35, 0.0  ;;  %v400_v62 = vld [vmem:[%s5261_s11 + $0xd8] sm:$0xff] }
  0xbe   : > { %v5744_v2 = vsel %vm995_vm8, %v398_v59, 0.0  ;;  %v5746_v44 = vsel %vm994_vm9, %v397_v57, 0.0  ;;  %4222 = vbcast.lane.b32.xlu1 %v4220_v3, 256  ;;  %4215 = vbcast.lane.b32.xlu0 %v4213_v6, 256  ;;  %v401_v57 = vld [vmem:[%s5261_s11 + $0xe0] sm:$0xff] }
  0xbf   : > { %8745 = vst [vmem:[#allocation4_spill] sm:$0xff] %v5746_v44  ;;  %v444_v44 = vld [vmem:[%s6420_s15 + $0x38] sm:$0xff] }
  0xc0   : > { %v658_v63 = vpop.permute.xlu1 %657  ;;  %v651_v34 = vpop.permute.xlu0 %650 }
  0xc1   : > { %vm997_vm10 = vcmp.gt.f32.partialorder %v658_v63, 0.0  ;;  %vm996_vm11 = vcmp.gt.f32.partialorder %v651_v34, 0.0  ;;  %v402_v34 = vld [vmem:[%s5261_s11 + $0xe8] sm:$0xff] }
  0xc2   : > { %v5780_v6 = vsel %vm997_vm10, %v400_v62, 0.0  ;;  %v5782_v35 = vsel %vm996_vm11, %v399_v54, 0.0  ;;  %4236 = vbcast.lane.b32.xlu1 %v4234_v10, 256  ;;  %4229 = vbcast.lane.b32.xlu0 %v4227_v11, 256  ;;  %v403_v54 = vld [vmem:[%s5261_s11 + $0xf0] sm:$0xff] }
  0xc3   : > { %8746 = vst [vmem:[#allocation5_spill] sm:$0xff] %v5780_v6  ;;  %8747 = vst [vmem:[#allocation6_spill] sm:$0xff] %v5782_v35 }
  0xc4   : > { %v672_v0 = vpop.permute.xlu1 %671  ;;  %v665_v59 = vpop.permute.xlu0 %664 }
  0xc5   : > { %vm999_vm12 = vcmp.gt.f32.partialorder %v672_v0, 0.0  ;;  %vm998_vm13 = vcmp.gt.f32.partialorder %v665_v59, 0.0  ;;  %v404_v59 = vld [vmem:[%s5261_s11 + $0xf8] sm:$0xff] }
  0xc6   : > { %v5816_v11 = vsel %vm999_vm12, %v402_v34, 0.0  ;;  %v5818_v63 = vsel %vm998_vm13, %v401_v57, 0.0  ;;  %4250 = vbcast.lane.b32.xlu1 %v4248_v12, 256  ;;  %4243 = vbcast.lane.b32.xlu0 %v4241_v17, 256  ;;  %v405_v57 = vld [vmem:[%s5261_s11 + $0x100] sm:$0xff] }
  0xc7   : > { %8748 = vst [vmem:[#allocation7_spill] sm:$0xff] %v5816_v11  ;;  %8749 = vst [vmem:[#allocation8_spill] sm:$0xff] %v5818_v63 }
  0xc8   : > { %v686_v3 = vpop.permute.xlu1 %685  ;;  %v679_v62 = vpop.permute.xlu0 %678 }
  0xc9   : > { %vm1001_vm14 = vcmp.gt.f32.partialorder %v686_v3, 0.0  ;;  %vm1000_vm15 = vcmp.gt.f32.partialorder %v679_v62, 0.0  ;;  %v406_v62 = vld [vmem:[%s5261_s11 + $0x108] sm:$0xff] }
  0xca   : > { %v5852_v48 = vsel %vm1001_vm14, %v404_v59, 0.0  ;;  %v5854_v0 = vsel %vm1000_vm15, %v403_v54, 0.0  ;;  %4264 = vbcast.lane.b32.xlu1 %v4262_v19, 256  ;;  %4257 = vbcast.lane.b32.xlu0 %v4255_v20, 256  ;;  %v407_v54 = vld [vmem:[%s5261_s11 + $0x110] sm:$0xff]  ;;  %v409_v19 = vld [vmem:[%s5261_s11 + $0x120] sm:$0xff] }
  0xcb   : > { %8750 = vst [vmem:[#allocation9_spill] sm:$0xff] %v5852_v48  ;;  %8751 = vst [vmem:[#allocation10_spill] sm:$0xff] %v5854_v0  ;;  %v8828_v0 = vrot.slane %v5349_v27, %v5062_v7 }
  0xcc   : > { %v700_v17 = vpop.permute.xlu1 %699  ;;  %v693_v34 = vpop.permute.xlu0 %692 }
  0xcd   : > { %vm1003_vm0 = vcmp.gt.f32.partialorder %v700_v17, 0.0  ;;  %vm1002_vm1 = vcmp.gt.f32.partialorder %v693_v34, 0.0  ;;  %v408_v17 = vld [vmem:[%s5261_s11 + $0x118] sm:$0xff] }
  0xce   : > { %v5888_v20 = vsel %vm1003_vm0, %v406_v62, 0.0  ;;  %v5890_v3 = vsel %vm1002_vm1, %v405_v57, 0.0  ;;  %4278 = vbcast.lane.b32.xlu1 %v4276_v21, 256  ;;  %4271 = vbcast.lane.b32.xlu0 %v4269_v22, 256  ;;  %v8756_v57 = vrot.slane %v5208_v61, %v5072_v14  ;;  %v411_v62 = vld [vmem:[%s5261_s11 + $0x130] sm:$0xff] }
  0xcf   : > { %8752 = vst [vmem:[#allocation11_spill] sm:$0xff] %v5888_v20  ;;  %8753 = vst [vmem:[#allocation12_spill] sm:$0xff] %v5890_v3 }
  0xd0   : > { %v714_v12 = vpop.permute.xlu1 %713  ;;  %v707_v59 = vpop.permute.xlu0 %706 }
  0xd1   : > { %vm1005_vm2 = vcmp.gt.f32.partialorder %v714_v12, 0.0  ;;  %vm1004_vm3 = vcmp.gt.f32.partialorder %v707_v59, 0.0  ;;  %v410_v59 = vld [vmem:[%s5261_s11 + $0x128] sm:$0xff] }
  0xd2   : > { %v5924_v22 = vsel %vm1005_vm2, %v408_v17, 0.0  ;;  %v5926_v34 = vsel %vm1004_vm3, %v407_v54, 0.0  ;;  %4292 = vbcast.lane.b32.xlu1 %v4290_v23, 256  ;;  %4285 = vbcast.lane.b32.xlu0 %v8756_v57, 256  ;;  %v8759_v54 = vrot.slane %v5208_v61, %v5074_v15 }
  0xd3   : > { %8754 = vst [vmem:[#allocation13_spill] sm:$0xff] %v5924_v22  ;;  %8755 = vst [vmem:[#allocation14_spill] sm:$0xff] %v5926_v34 }
  0xd4   : > { %v728_v21 = vpop.permute.xlu1 %727  ;;  %v721_v10 = vpop.permute.xlu0 %720 }
  0xd5   : > { %vm1007_vm4 = vcmp.gt.f32.partialorder %v728_v21, 0.0  ;;  %vm1006_vm5 = vcmp.gt.f32.partialorder %v721_v10, 0.0  ;;  %v412_v21 = vld [vmem:[%s5261_s11 + $0x138] sm:$0xff] }
  0xd6   : > { %v5960_v57 = vsel %vm1007_vm4, %v410_v59, 0.0  ;;  %v5962_v12 = vsel %vm1006_vm5, %v409_v19, 0.0  ;;  %4306 = vbcast.lane.b32.xlu1 %v8759_v54, 256  ;;  %4299 = vbcast.lane.b32.xlu0 %v8760_v32, 256  ;;  %v8762_v19 = vrot.slane %v5223_v9, %v5064_v8  ;;  %v413_v32 = vld [vmem:[%s5261_s11 + $0x140] sm:$0xff]  ;;  %v415_v54 = vld [vmem:[%s5261_s11 + $0x150] sm:$0xff] }
  0xd7   : > { %8757 = vst [vmem:[#allocation15_spill] sm:$0xff] %v5960_v57  ;;  %8758 = vst [vmem:[#allocation16_spill] sm:$0xff] %v5962_v12 }
  0xd8   : > { %v742_v23 = vpop.permute.xlu1 %741  ;;  %v735_v17 = vpop.permute.xlu0 %734 }
  0xd9   : > { %vm1009_vm6 = vcmp.gt.f32.partialorder %v742_v23, 0.0  ;;  %vm1008_vm7 = vcmp.gt.f32.partialorder %v735_v17, 0.0  ;;  %v414_v23 = vld [vmem:[%s5261_s11 + $0x148] sm:$0xff] }
  0xda   : > { %v5996_v61 = vsel %vm1009_vm6, %v412_v21, 0.0  ;;  %v5998_v10 = vsel %vm1008_vm7, %v411_v62, 0.0  ;;  %4320 = vbcast.lane.b32.xlu1 %v8762_v19, 256  ;;  %4313 = vbcast.lane.b32.xlu0 %v8763_v46, 256  ;;  %v8765_v62 = vrot.slane %v5223_v9, %v5062_v7  ;;  %v417_v21 = vld [vmem:[%s5261_s11 + $0x160] sm:$0xff] }
  0xdb   : > { %8761 = vst [vmem:[#allocation17_spill] sm:$0xff] %v5996_v61 }
  0xdc   : > { %v756_v59 = vpop.permute.xlu1 %755  ;;  %v749_v36 = vpop.permute.xlu0 %748 }
  0xdd   : > { %vm1011_vm8 = vcmp.gt.f32.partialorder %v756_v59, 0.0  ;;  %vm1010_vm9 = vcmp.gt.f32.partialorder %v749_v36, 0.0  ;;  %v416_v59 = vld [vmem:[%s5261_s11 + $0x158] sm:$0xff] }
  0xde   : > { %v6032_v46 = vsel %vm1011_vm8, %v414_v23, 0.0  ;;  %v6034_v17 = vsel %vm1010_vm9, %v413_v32, 0.0  ;;  %4334 = vbcast.lane.b32.xlu1 %v8765_v62, 256  ;;  %4327 = vbcast.lane.b32.xlu0 %v8766_v39, 256  ;;  %v8769_v32 = vrot.slane %v5223_v9, %v5070_v13  ;;  %v419_v62 = vld [vmem:[%s5261_s11 + $0x170] sm:$0xff] }
  0xdf   : > { %8764 = vst [vmem:[#allocation18_spill] sm:$0xff] %v6034_v17 }
  0xe0   : > { %v770_v19 = vpop.permute.xlu1 %769  ;;  %v763_v40 = vpop.permute.xlu0 %762 }
  0xe1   : > { %vm1013_vm10 = vcmp.gt.f32.partialorder %v770_v19, 0.0  ;;  %vm1012_vm11 = vcmp.gt.f32.partialorder %v763_v40, 0.0  ;;  %v418_v19 = vld [vmem:[%s5261_s11 + $0x168] sm:$0xff] }
  0xe2   : > { %v6068_v39 = vsel %vm1013_vm10, %v416_v59, 0.0  ;;  %v6070_v36 = vsel %vm1012_vm11, %v415_v54, 0.0  ;;  %4348 = vbcast.lane.b32.xlu1 %v8769_v32, 256  ;;  %4341 = vbcast.lane.b32.xlu0 %v8770_v55, 256  ;;  %v8773_v54 = vrot.slane %v5223_v9, %v5074_v15 }
  0xe3   : > { %8767 = vst [vmem:[#allocation19_spill] sm:$0xff] %v6068_v39  ;;  %8768 = vst [vmem:[#allocation20_spill] sm:$0xff] %v6070_v36  ;;  %v8774_v39 = vrot.slane %v5223_v9, %v5078_v18 }
  0xe4   : > { %v784_v23 = vpop.permute.xlu1 %783  ;;  %v777_v17 = vpop.permute.xlu0 %776 }
  0xe5   : > { %vm1015_vm12 = vcmp.gt.f32.partialorder %v784_v23, 0.0  ;;  %vm1014_vm13 = vcmp.gt.f32.partialorder %v777_v17, 0.0  ;;  %v420_v23 = vld [vmem:[%s5261_s11 + $0x178] sm:$0xff] }
  0xe6   : > { %v6104_v55 = vsel %vm1015_vm12, %v418_v19, 0.0  ;;  %v6106_v40 = vsel %vm1014_vm13, %v417_v21, 0.0  ;;  %4362 = vbcast.lane.b32.xlu1 %v8773_v54, 256  ;;  %4355 = vbcast.lane.b32.xlu0 %v8774_v39, 256  ;;  %v8777_v21 = vrot.slane %v5247_v26, %v5064_v8  ;;  %v421_v39 = vld [vmem:[%s5261_s11 + $0x180] sm:$0xff]  ;;  %v423_v19 = vld [vmem:[%s5261_s11 + $0x190] sm:$0xff] }
  0xe7   : > { %8771 = vst [vmem:[#allocation21_spill] sm:$0xff] %v6104_v55  ;;  %8772 = vst [vmem:[#allocation22_spill] sm:$0xff] %v6106_v40  ;;  %v8778_v55 = vrot.slane %v5247_v26, %v5060_v5 }
  0xe8   : > { %v798_v32 = vpop.permute.xlu1 %797  ;;  %v791_v59 = vpop.permute.xlu0 %790 }
  0xe9   : > { %vm1017_vm14 = vcmp.gt.f32.partialorder %v798_v32, 0.0  ;;  %vm1016_vm15 = vcmp.gt.f32.partialorder %v791_v59, 0.0  ;;  %v422_v32 = vld [vmem:[%s5261_s11 + $0x188] sm:$0xff] }
  0xea   : > { %v6140_v9 = vsel %vm1017_vm14, %v420_v23, 0.0  ;;  %v6142_v17 = vsel %vm1016_vm15, %v419_v62, 0.0  ;;  %4376 = vbcast.lane.b32.xlu1 %v8777_v21, 256  ;;  %4369 = vbcast.lane.b32.xlu0 %v8778_v55, 256  ;;  %v8781_v62 = vrot.slane %v5247_v26, %v5062_v7  ;;  %v425_v21 = vld [vmem:[%s5261_s11 + $0x1a0] sm:$0xff] }
  0xeb   : > { %8775 = vst [vmem:[#allocation23_spill] sm:$0xff] %v6140_v9  ;;  %8776 = vst [vmem:[#allocation24_spill] sm:$0xff] %v6142_v17  ;;  %v8782_v9 = vrot.slane %v5247_v26, %v5058_v4 }
  0xec   : > { %v812_v54 = vpop.permute.xlu1 %811  ;;  %v805_v40 = vpop.permute.xlu0 %804 }
  0xed   : > { %vm1019_vm0 = vcmp.gt.f32.partialorder %v812_v54, 0.0  ;;  %vm1018_vm1 = vcmp.gt.f32.partialorder %v805_v40, 0.0  ;;  %v424_v54 = vld [vmem:[%s5261_s11 + $0x198] sm:$0xff] }
  0xee   : > { %v6176_v55 = vsel %vm1019_vm0, %v422_v32, 0.0  ;;  %v6178_v59 = vsel %vm1018_vm1, %v421_v39, 0.0  ;;  %4390 = vbcast.lane.b32.xlu1 %v8781_v62, 256  ;;  %4383 = vbcast.lane.b32.xlu0 %v8782_v9, 256  ;;  %v8785_v39 = vrot.slane %v5247_v26, %v5070_v13  ;;  %v427_v62 = vld [vmem:[%s5261_s11 + $0x1b0] sm:$0xff] }
  0xef   : > { %8779 = vst [vmem:[#allocation25_spill] sm:$0xff] %v6176_v55  ;;  %8780 = vst [vmem:[#allocation26_spill] sm:$0xff] %v6178_v59  ;;  %v8786_v55 = vrot.slane %v5247_v26, %v5072_v14 }
  0xf0   : > { %v826_v23 = vpop.permute.xlu1 %825  ;;  %v819_v17 = vpop.permute.xlu0 %818 }
  0xf1   : > { %vm1021_vm2 = vcmp.gt.f32.partialorder %v826_v23, 0.0  ;;  %vm1020_vm3 = vcmp.gt.f32.partialorder %v819_v17, 0.0  ;;  %v426_v23 = vld [vmem:[%s5261_s11 + $0x1a8] sm:$0xff] }
  0xf2   : > { %v6212_v9 = vsel %vm1021_vm2, %v424_v54, 0.0  ;;  %v6214_v40 = vsel %vm1020_vm3, %v423_v19, 0.0  ;;  %4404 = vbcast.lane.b32.xlu1 %v8785_v39, 256  ;;  %4397 = vbcast.lane.b32.xlu0 %v8786_v55, 256  ;;  %v8789_v19 = vrot.slane %v5247_v26, %v5074_v15 }
  0xf3   : > { %8783 = vst [vmem:[#allocation27_spill] sm:$0xff] %v6212_v9  ;;  %8784 = vst [vmem:[#allocation28_spill] sm:$0xff] %v6214_v40  ;;  %v8790_v9 = vrot.slane %v5247_v26, %v5078_v18 }
  0xf4   : > { %v840_v32 = vpop.permute.xlu1 %839  ;;  %v833_v59 = vpop.permute.xlu0 %832 }
  0xf5   : > { %vm1023_vm4 = vcmp.gt.f32.partialorder %v840_v32, 0.0  ;;  %vm1022_vm5 = vcmp.gt.f32.partialorder %v833_v59, 0.0  ;;  %v428_v32 = vld [vmem:[%s5261_s11 + $0x1b8] sm:$0xff] }
  0xf6   : > { %v6248_v55 = vsel %vm1023_vm4, %v426_v23, 0.0  ;;  %v6250_v17 = vsel %vm1022_vm5, %v425_v21, 0.0  ;;  %4418 = vbcast.lane.b32.xlu1 %v8789_v19, 256  ;;  %4411 = vbcast.lane.b32.xlu0 %v8790_v9, 256  ;;  %v8793_v21 = vrot.slane %v5269_v53, %v5064_v8  ;;  %v429_v9 = vld [vmem:[%s5261_s11 + $0x1c0] sm:$0xff]  ;;  %v431_v19 = vld [vmem:[%s5261_s11 + $0x1d0] sm:$0xff] }
  0xf7   : > { %8787 = vst [vmem:[#allocation29_spill] sm:$0xff] %v6248_v55  ;;  %8788 = vst [vmem:[#allocation30_spill] sm:$0xff] %v6250_v17  ;;  %v8794_v55 = vrot.slane %v5269_v53, %v5060_v5 }
  0xf8   : > { %v854_v54 = vpop.permute.xlu1 %853  ;;  %v847_v39 = vpop.permute.xlu0 %846 }
  0xf9   : > { %vm1025_vm6 = vcmp.gt.f32.partialorder %v854_v54, 0.0  ;;  %vm1024_vm7 = vcmp.gt.f32.partialorder %v847_v39, 0.0  ;;  %v430_v39 = vld [vmem:[%s5261_s11 + $0x1c8] sm:$0xff] }
  0xfa   : > { %v6284_v26 = vsel %vm1025_vm6, %v428_v32, 0.0  ;;  %v6286_v59 = vsel %vm1024_vm7, %v427_v62, 0.0  ;;  %4432 = vbcast.lane.b32.xlu1 %v8793_v21, 256  ;;  %4425 = vbcast.lane.b32.xlu0 %v8794_v55, 256  ;;  %v8797_v62 = vrot.slane %v5269_v53, %v5062_v7  ;;  %v8806_v21 = vrot.slane %v5269_v53, %v5078_v18 }
  0xfb   : > { %8791 = vst [vmem:[#allocation31_spill] sm:$0xff] %v6284_v26  ;;  %8792 = vst [vmem:[#allocation32_spill] sm:$0xff] %v6286_v59  ;;  %v8798_v26 = vrot.slane %v5269_v53, %v5058_v4 }
  0xfc   : > { %v868_v23 = vpop.permute.xlu1 %867  ;;  %v861_v17 = vpop.permute.xlu0 %860 }
  0xfd   : > { %vm1027_vm8 = vcmp.gt.f32.partialorder %v868_v23, 0.0  ;;  %vm1026_vm9 = vcmp.gt.f32.partialorder %v861_v17, 0.0  ;;  %v432_v23 = vld [vmem:[%s5261_s11 + $0x1d8] sm:$0xff] }
  0xfe   : > { %v6320_v55 = vsel %vm1027_vm8, %v430_v39, 0.0  ;;  %v6322_v54 = vsel %vm1026_vm9, %v429_v9, 0.0  ;;  %4446 = vbcast.lane.b32.xlu1 %v8797_v62, 256  ;;  %4439 = vbcast.lane.b32.xlu0 %v8798_v26, 256  ;;  %v8801_v9 = vrot.slane %v5269_v53, %v5070_v13  ;;  %v434_v62 = vld [vmem:[%s5261_s11 + $0x1e8] sm:$0xff]  ;;  %v435_v39 = vld [vmem:[%s5261_s11 + $0x1f0] sm:$0xff] }
  0xff   : > { %8795 = vst [vmem:[#allocation33_spill] sm:$0xff] %v6320_v55  ;;  %8796 = vst [vmem:[#allocation34_spill] sm:$0xff] %v6322_v54  ;;  %v8802_v55 = vrot.slane %v5269_v53, %v5072_v14  ;;  %vm4716_vm8 = vcmask 31744  }
 0x100   : > { %v882_v32 = vpop.permute.xlu1 %881  ;;  %v875_v59 = vpop.permute.xlu0 %874 }
 0x101   : > { %vm1029_vm10 = vcmp.gt.f32.partialorder %v882_v32, 0.0  ;;  %vm1028_vm11 = vcmp.gt.f32.partialorder %v875_v59, 0.0  ;;  %v8805_v32 = vrot.slane %v5269_v53, %v5074_v15 }
 0x102   : > { %v6356_v26 = vsel %vm1029_vm10, %v432_v23, 0.0  ;;  %v6358_v17 = vsel %vm1028_vm11, %v431_v19, 0.0  ;;  %4460 = vbcast.lane.b32.xlu1 %v8801_v9, 256  ;;  %4453 = vbcast.lane.b32.xlu0 %v8802_v55, 256  ;;  %v433_v23 = vld [vmem:[%s5261_s11 + $0x1e0] sm:$0xff] }
 0x103   : > { %8799 = vst [vmem:[#allocation35_spill] sm:$0xff] %v6356_v26  ;;  %8800 = vst [vmem:[#allocation36_spill] sm:$0xff] %v6358_v17 }
 0x104   : > { %v896_v19 = vpop.permute.xlu1 %895  ;;  %v889_v54 = vpop.permute.xlu0 %888 }
 0x105   : > { %vm1031_vm12 = vcmp.gt.f32.partialorder %v896_v19, 0.0  ;;  %vm1030_vm13 = vcmp.gt.f32.partialorder %v889_v54, 0.0  ;;  %v436_v19 = vld [vmem:[%s5261_s11 + $0x1f8] sm:$0xff] }
 0x106   : > { %v6393_v59 = vsel %vm1031_vm12, %v434_v62, 0.0  ;;  %v6395_v9 = vsel %vm1030_vm13, %v433_v23, 0.0  ;;  %4474 = vbcast.lane.b32.xlu1 %v8805_v32, 256  ;;  %4467 = vbcast.lane.b32.xlu0 %v8806_v21, 256  ;;  %v8809_v23 = vrot.slane %v5299_v33, %v5064_v8  ;;  %v437_v21 = vld [vmem:[%s6420_s15] sm:$0xff] }
 0x107   : > { %8803 = vst [vmem:[#allocation37_spill] sm:$0xff] %v6393_v59  ;;  %8804 = vst [vmem:[#allocation38_spill] sm:$0xff] %v6395_v9  ;;  %v8810_v59 = vrot.slane %v5299_v33, %v5060_v5 }
 0x108   : > { %v910_v32 = vpop.permute.xlu1 %909  ;;  %v903_v54 = vpop.permute.xlu0 %902 }
 0x109   : > { %vm1033_vm14 = vcmp.gt.f32.partialorder %v910_v32, 0.0  ;;  %vm1032_vm15 = vcmp.gt.f32.partialorder %v903_v54, 0.0  ;;  %v438_v32 = vld [vmem:[%s6420_s15 + $0x8] sm:$0xff] }
 0x10a   : > { %v6434_v17 = vsel %vm1033_vm14, %v436_v19, 0.0  ;;  %v6436_v62 = vsel %vm1032_vm15, %v435_v39, 0.0  ;;  %4488 = vbcast.lane.b32.xlu1 %v8809_v23, 256  ;;  %4481 = vbcast.lane.b32.xlu0 %v8810_v59, 256  ;;  %v8811_v39 = vrot.slane %v5299_v33, %v5062_v7  ;;  %v440_v59 = vld [vmem:[%s6420_s15 + $0x18] sm:$0xff]  ;;  %v439_v19 = vld [vmem:[%s6420_s15 + $0x10] sm:$0xff] }
 0x10b   : > { %8807 = vst [vmem:[#allocation39_spill] sm:$0xff] %v6434_v17  ;;  %8808 = vst [vmem:[#allocation40_spill] sm:$0xff] %v6436_v62  ;;  %v8812_v17 = vrot.slane %v5299_v33, %v5058_v4 }
 0x10c   : > { %v927_v53 = vpop.permute.xlu1 %926  ;;  %v920_v9 = vpop.permute.xlu0 %919 }
 0x10d   : > { %vm1099_vm0 = vcmp.gt.f32.partialorder %v927_v53, 0.0  ;;  %vm1098_vm1 = vcmp.gt.f32.partialorder %v920_v9, 0.0  ;;  %v8816_v53 = vrot.slane %v5315_v29, %v5064_v8 }
 0x10e   : > { %v6470_v23 = vsel %vm1099_vm0, %v438_v32, 0.0  ;;  %v6472_v54 = vsel %vm1098_vm1, %v437_v21, 0.0  ;;  %4502 = vbcast.lane.b32.xlu1 %v8811_v39, 256  ;;  %4495 = vbcast.lane.b32.xlu0 %v8812_v17, 256  ;;  %v8813_v21 = vrot.slane %v5351_v16, %v5060_v5  ;;  %v8814_v39 = vrot.slane %v5351_v16, %v5064_v8 }
 0x10f   : > { %v8815_v17 = vrot.slane %v5315_v29, %v5060_v5  ;;  %v1690_v26 = vmul.f32 %v8816_v53, %v6470_v23  ;;  %v8820_v53 = vrot.slane %v5313_v25, %v5064_v8 }
 0x110   : > { %v1371_v32 = vmul.f32 %v8813_v21, %v6472_v54  ;;  %v1691_v55 = vmul.f32 %v8814_v39, %v6470_v23  ;;  %v941_v40 = vpop.permute.xlu1 %940  ;;  %v934_v36 = vpop.permute.xlu0 %933  ;;  %v8817_v21 = vrot.slane %v5349_v27, %v5060_v5  ;;  %v8818_v39 = vrot.slane %v5349_v27, %v5064_v8 }
 0x111   : > { %v1370_v9 = vmul.f32 %v8815_v17, %v6472_v54  ;;  %v8819_v17 = vrot.slane %v5313_v25, %v5060_v5  ;;  %v1692_v57 = vmul.f32 %v8820_v53, %v6470_v23  ;;  %vm1101_vm2 = vcmp.gt.f32.partialorder %v941_v40, 0.0  ;;  %v442_v40 = vld [vmem:[%s6420_s15 + $0x28] sm:$0xff] }
 0x112   : > { %v1373_v62 = vmul.f32 %v8817_v21, %v6472_v54  ;;  %v1693_v61 = vmul.f32 %v8818_v39, %v6470_v23  ;;  %vm1100_vm3 = vcmp.gt.f32.partialorder %v934_v36, 0.0  ;;  %v1755_v34 = vadd.f32 %v1691_v55, %v1371_v32  ;;  %v441_v36 = vld [vmem:[%s6420_s15 + $0x20] sm:$0xff] }
 0x113   : > { %v1372_v12 = vmul.f32 %v8819_v17, %v6472_v54  ;;  %v6520_v22 = vsel %vm1101_vm2, %v440_v59, 0.0  ;;  %v6522_v3 = vsel %vm1100_vm3, %v439_v19, 0.0  ;;  %v8821_v39 = vrot.slane %v5299_v33, %v5070_v13 }
 0x114   : > { %v8822_v17 = vrot.slane %v5299_v33, %v5072_v14  ;;  %v1754_v20 = vadd.f32 %v1690_v26, %v1370_v9  ;;  %v1757_v53 = vadd.f32 %v1693_v61, %v1373_v62  ;;  %v8823_v55 = vrot.slane %v5351_v16, %v5058_v4  ;;  %v955_v26 = vpop.permute.xlu1 %954  ;;  %v948_v61 = vpop.permute.xlu0 %947 }
 0x115   : > { %4516 = vbcast.lane.b32.xlu1 %v8821_v39, 256  ;;  %v8824_v19 = vrot.slane %v5351_v16, %v5062_v7  ;;  %v8825_v39 = vrot.slane %v5315_v29, %v5058_v4  ;;  %v8826_v62 = vrot.slane %v5315_v29, %v5062_v7  ;;  %vm1103_vm4 = vcmp.gt.f32.partialorder %v955_v26, 0.0 }
 0x116   : > { %4509 = vbcast.lane.b32.xlu0 %v8822_v17, 256  ;;  %v2075_v59 = vmul.f32 %v8823_v55, %v6522_v3  ;;  %v1756_v17 = vadd.f32 %v1692_v57, %v1372_v12  ;;  %v8827_v55 = vrot.slane %v5349_v27, %v5058_v4  ;;  %v8829_v12 = vrot.slane %v5313_v25, %v5058_v4 }
 0x117   : > { %v2459_v32 = vmul.f32 %v8824_v19, %v6520_v22  ;;  %v2074_v21 = vmul.f32 %v8825_v39, %v6522_v3  ;;  %v2458_v9 = vmul.f32 %v8826_v62, %v6520_v22  ;;  %v2461_v39 = vmul.f32 %v8828_v0, %v6520_v22 }
 0x118   : > { %v2077_v19 = vmul.f32 %v8827_v55, %v6522_v3  ;;  %v2076_v57 = vmul.f32 %v8829_v12, %v6522_v3  ;;  %vm1102_vm5 = vcmp.gt.f32.partialorder %v948_v61, 0.0  ;;  %v2139_v48 = vadd.f32 %v2075_v59, %v1755_v34  ;;  %v443_v12 = vld [vmem:[%s6420_s15 + $0x30] sm:$0xff]  ;;  %v969_v59 = vpop.permute.xlu1 %968  ;;  %v962_v61 = vpop.permute.xlu0 %961 }
 0x119   : > { %v2138_v63 = vadd.f32 %v2074_v21, %v1754_v20  ;;  %v6560_v62 = vsel %vm1103_vm4, %v442_v40, 0.0  ;;  %v6562_v11 = vsel %vm1102_vm5, %v441_v36, 0.0  ;;  %v8830_v55 = vrot.slane %v5299_v33, %v5074_v15 }
 0x11a   : > { %v8831_v0 = vrot.slane %v5299_v33, %v5078_v18  ;;  %v2141_v35 = vadd.f32 %v2077_v19, %v1757_v53  ;;  %v2140_v6 = vadd.f32 %v2076_v57, %v1756_v17  ;;  %v2523_v26 = vadd.f32 %v2459_v32, %v2139_v48 }
 0x11b   : > { %4530 = vbcast.lane.b32.xlu1 %v8830_v55, 256  ;;  %v8832_v20 = vrot.slane %v5351_v16, %v5072_v14  ;;  %v8833_v21 = vrot.slane %v5351_v16, %v5070_v13  ;;  %v2522_v36 = vadd.f32 %v2458_v9, %v2138_v63  ;;  %v8834_v33 = vrot.slane %v5315_v29, %v5072_v14 }
 0x11c   : > { %4523 = vbcast.lane.b32.xlu0 %v8831_v0, 256  ;;  %v8835_v48 = vrot.slane %v5315_v29, %v5070_v13  ;;  %v2525_v17 = vadd.f32 %v2461_v39, %v2141_v35  ;;  %v8836_v19 = vrot.slane %v5349_v27, %v5072_v14  ;;  %vm1105_vm6 = vcmp.gt.f32.partialorder %v969_v59, 0.0 }
 0x11d   : > { %v2843_v34 = vmul.f32 %v8832_v20, %v6562_v11  ;;  %v3227_v40 = vmul.f32 %v8833_v21, %v6560_v62  ;;  %v2842_v53 = vmul.f32 %v8834_v33, %v6562_v11  ;;  %vm1104_vm7 = vcmp.gt.f32.partialorder %v962_v61, 0.0 }
 0x11e   : > { %v3226_v32 = vmul.f32 %v8835_v48, %v6560_v62  ;;  %v2845_v57 = vmul.f32 %v8836_v19, %v6562_v11  ;;  %v8837_v9 = vrot.slane %v5349_v27, %v5070_v13  ;;  %v6596_v0 = vsel %vm1105_vm6, %v444_v44, 0.0  ;;  %v4153_v48 = vpop.permute.xlu1 %4152  ;;  %v4146_v19 = vpop.permute.xlu0 %4145 }
 0x11f   : > { %v2907_v63 = vadd.f32 %v2843_v34, %v2523_v26  ;;  %v6598_v20 = vsel %vm1104_vm7, %v443_v12, 0.0  ;;  %v8838_v35 = vrot.slane %v5396_v31, %v5064_v8  ;;  %v8839_v39 = vrot.slane %v5396_v31, %v5060_v5 }
 0x120   : > { %v3229_v55 = vmul.f32 %v8837_v9, %v6560_v62  ;;  %v2906_v21 = vadd.f32 %v2842_v53, %v2522_v36  ;;  %v2909_v59 = vadd.f32 %v2845_v57, %v2525_v17  ;;  %v8840_v34 = vrot.slane %v5351_v16, %v5078_v18 }
 0x121   : > { %4544 = vbcast.lane.b32.xlu1 %v8838_v35, 256  ;;  %4537 = vbcast.lane.b32.xlu0 %v8839_v39, 256  ;;  %v3291_v26 = vadd.f32 %v3227_v40, %v2907_v63  ;;  %v8841_v44 = vrot.slane %v5315_v29, %v5078_v18  ;;  %v8842_v40 = vrot.slane %v5349_v27, %v5078_v18  ;;  %vm4589_vm9 = vcmp.gt.f32.partialorder %v4153_v48, 0.0 }
 0x122   : > { %v3611_v61 = vmul.f32 %v8840_v34, %v6598_v20  ;;  %v3290_v9 = vadd.f32 %v3226_v32, %v2906_v21  ;;  %v3293_v36 = vadd.f32 %v3229_v55, %v2909_v59  ;;  %v8843_v17 = vrot.slane %v5313_v25, %v5062_v7 }
 0x123   : > { %v3610_v12 = vmul.f32 %v8841_v44, %v6598_v20  ;;  %v3613_v53 = vmul.f32 %v8842_v40, %v6598_v20  ;;  %v8844_v35 = vrot.slane %v5351_v16, %v5074_v15  ;;  %v8845_v32 = vrot.slane %v5315_v29, %v5074_v15  ;;  %v4167_v40 = vpop.permute.xlu1 %4166 }
 0x124   : > { %v2460_v57 = vmul.f32 %v8843_v17, %v6520_v22  ;;  %v3675_v63 = vadd.f32 %v3611_v61, %v3291_v26  ;;  %v8846_v21 = vrot.slane %v5349_v27, %v5074_v15  ;;  %v8847_v26 = vrot.slane %v5396_v31, %v5062_v7 }
 0x125   : > { %v3995_v39 = vmul.f32 %v8844_v35, %v6596_v0  ;;  %v3994_v55 = vmul.f32 %v8845_v32, %v6596_v0  ;;  %v3674_v34 = vadd.f32 %v3610_v12, %v3290_v9  ;;  %v8848_v16 = vrot.slane %v5396_v31, %v5058_v4 }
 0x126   : > { %v3997_v59 = vmul.f32 %v8846_v21, %v6596_v0  ;;  %4558 = vbcast.lane.b32.xlu1 %v8847_v26, 256  ;;  %v3677_v61 = vadd.f32 %v3613_v53, %v3293_v36  ;;  %v2524_v44 = vadd.f32 %v2460_v57, %v2140_v6  ;;  %vm4588_vm10 = vcmp.gt.f32.partialorder %v4146_v19, 0.0  ;;  %v4160_v57 = vpop.permute.xlu0 %4159 }
 0x127   : > { %4551 = vbcast.lane.b32.xlu0 %v8848_v16, 256  ;;  %v4059_v29 = vadd.f32 %v3995_v39, %v3675_v63  ;;  %v8849_v27 = vrot.slane %v5313_v25, %v5072_v14  ;;  %v4058_v9 = vadd.f32 %v3994_v55, %v3674_v34  ;;  %v8850_v6 = vrot.slane %v5313_v25, %v5070_v13 }
 0x128   : > { %v4061_v36 = vadd.f32 %v3997_v59, %v3677_v61  ;;  %v8851_v48 = vrot.slane %v5386_v30, %v5060_v5  ;;  %vm4591_vm11 = vcmp.gt.f32.partialorder %v4167_v40, 0.0  ;;  %v8852_v35 = vrot.slane %v5313_v25, %v5078_v18  ;;  %v6693_v40 = vpop.permute.xlu1 %4180 }
 0x129   : > { %v2844_v12 = vmul.f32 %v8849_v27, %v6562_v11  ;;  %v3228_v53 = vmul.f32 %v8850_v6, %v6560_v62  ;;  %v4653_v17 = vsel %vm4589_vm9, %v4059_v29, 0.0  ;;  %v4652_v32 = vsel %vm4588_vm10, %v4058_v9, 0.0 }
 0x12a   : > { %v1375_v19 = vmul.f32 %v8851_v48, %v6472_v54  ;;  %v3612_v39 = vmul.f32 %v8852_v35, %v6598_v20  ;;  %4718 = vst.msk [vmem:[%s6647_s22 + $0x8] sm:$0xff] %vm4716_vm8, %v4653_v17  ;;  %v4655_v55 = vsel %vm4591_vm11, %v4061_v36, 0.0  ;;  %v8853_v21 = vrot.slane %v5396_v31, %v5070_v13  ;;  %4717 = vst.msk [vmem:[%s6647_s22] sm:$0xff] %vm4716_vm8, %v4652_v32 }
 0x12b   : > { %v2908_v63 = vadd.f32 %v2844_v12, %v2524_v44  ;;  %v8854_v59 = vrot.slane %v5396_v31, %v5072_v14  ;;  %v8855_v34 = vrot.slane %v5386_v30, %v5064_v8  ;;  %v8856_v16 = vrot.slane %v5386_v30, %v5058_v4  ;;  %4720 = vst.msk [vmem:[%s6647_s22 + $0x18] sm:$0xff] %vm4716_vm8, %v4655_v55 }
 0x12c   : > { %4572 = vbcast.lane.b32.xlu1 %v8853_v21, 256  ;;  %v8857_v29 = vrot.slane %v5313_v25, %v5074_v15  ;;  %v1985_v9 = vrot.slane %v6032_v46, %v5058_v4  ;;  %vm4590_vm12 = vcmp.gt.f32.partialorder %v4160_v57, 0.0  ;;  %v8858_v6 = vrot.slane %v5386_v30, %v5062_v7 }
 0x12d   : > { %4565 = vbcast.lane.b32.xlu0 %v8854_v59, 256  ;;  %v1695_v26 = vmul.f32 %v8855_v34, %v6470_v23  ;;  %v2079_v61 = vmul.f32 %v8856_v16, %v6522_v3  ;;  %v3292_v44 = vadd.f32 %v3228_v53, %v2908_v63  ;;  %v8859_v25 = vrot.slane %v5388_v52, %v5060_v5 }
 0x12e   : > { %v3996_v27 = vmul.f32 %v8857_v29, %v6596_v0  ;;  %v2463_v53 = vmul.f32 %v8858_v6, %v6520_v22  ;;  %v8860_v63 = vrot.slane %v5386_v30, %v5072_v14  ;;  %v8862_v55 = vrot.slane %v5388_v52, %v5058_v4 }
 0x12f   : > { %v1759_v36 = vadd.f32 %v1695_v26, %v1375_v19  ;;  %v1374_v48 = vmul.f32 %v8859_v25, %v6472_v54  ;;  %v3676_v17 = vadd.f32 %v3612_v39, %v3292_v44  ;;  %v8861_v19 = vrot.slane %v5388_v52, %v5064_v8 }
 0x130   : > { %v2847_v35 = vmul.f32 %v8860_v63, %v6562_v11  ;;  %v2078_v21 = vmul.f32 %v8862_v55, %v6522_v3  ;;  %v8863_v39 = vrot.slane %v5386_v30, %v5070_v13  ;;  %v8864_v26 = vrot.slane %v5386_v30, %v5078_v18  ;;  %v4174_v55 = vpop.permute.xlu0 %4173 }
 0x131   : > { %v1694_v32 = vmul.f32 %v8861_v19, %v6470_v23  ;;  %v2143_v59 = vadd.f32 %v2079_v61, %v1759_v36  ;;  %v8865_v44 = vrot.slane %v5386_v30, %v5074_v15  ;;  %v8866_v6 = vrot.slane %v5396_v31, %v5074_v15 }
 0x132   : > { %v3231_v34 = vmul.f32 %v8863_v39, %v6560_v62  ;;  %v3615_v16 = vmul.f32 %v8864_v26, %v6598_v20  ;;  %v4060_v61 = vadd.f32 %v3996_v27, %v3676_v17  ;;  %vm4593_vm13 = vcmp.gt.f32.partialorder %v6693_v40, 0.0 }
 0x133   : > { %v3999_v29 = vmul.f32 %v8865_v44, %v6596_v0  ;;  %4586 = vbcast.lane.b32.xlu1 %v8866_v6, 256  ;;  %v1758_v36 = vadd.f32 %v1694_v32, %v1374_v48  ;;  %v8867_v25 = vrot.slane %v5388_v52, %v5062_v7  ;;  %v8868_v19 = vrot.slane %v5396_v31, %v5078_v18 }
 0x134   : > { %v2527_v30 = vadd.f32 %v2463_v53, %v2143_v59  ;;  %v8869_v39 = vrot.slane %v5388_v52, %v5072_v14  ;;  %v8870_v27 = vrot.slane %v5420_v24, %v5060_v5  ;;  %v8871_v17 = vrot.slane %v5420_v24, %v5064_v8 }
 0x135   : > { %v2462_v63 = vmul.f32 %v8867_v25, %v6520_v22  ;;  %4579 = vbcast.lane.b32.xlu0 %v8868_v19, 256  ;;  %v4654_v31 = vsel %vm4590_vm12, %v4060_v61, 0.0  ;;  %v2142_v44 = vadd.f32 %v2078_v21, %v1758_v36  ;;  %v8872_v53 = vrot.slane %v5388_v52, %v5070_v13 }
 0x136   : > { %v2846_v26 = vmul.f32 %v8869_v39, %v6562_v11  ;;  %v1377_v48 = vmul.f32 %v8870_v27, %v6472_v54  ;;  %v1697_v32 = vmul.f32 %v8871_v17, %v6470_v23  ;;  %v8873_v6 = vrot.slane %v5420_v24, %v5058_v4  ;;  %4719 = vst.msk [vmem:[%s6647_s22 + $0x10] sm:$0xff] %vm4716_vm8, %v4654_v31 }
 0x137   : > { %v3230_v59 = vmul.f32 %v8872_v53, %v6560_v62  ;;  %v2911_v19 = vadd.f32 %v2847_v35, %v2527_v30  ;;  %v8874_v39 = vrot.slane %v5388_v52, %v5078_v18  ;;  %v8875_v21 = vrot.slane %v5388_v52, %v5074_v15 }
 0x138   : > { %v2081_v25 = vmul.f32 %v8873_v6, %v6522_v3  ;;  %v1761_v36 = vadd.f32 %v1697_v32, %v1377_v48  ;;  %v2526_v27 = vadd.f32 %v2462_v63, %v2142_v44  ;;  %vm4592_vm14 = vcmp.gt.f32.partialorder %v4174_v55, 0.0  ;;  %v4195_v6 = vpop.permute.xlu1 %4194 }
 0x139   : > { %v3614_v57 = vmul.f32 %v8874_v39, %v6598_v20  ;;  %v3998_v61 = vmul.f32 %v8875_v21, %v6596_v0  ;;  %v8876_v17 = vrot.slane %v5420_v24, %v5062_v7  ;;  %v8877_v35 = vrot.slane %v5420_v24, %v5072_v14 }
 0x13a   : > { %v3295_v31 = vadd.f32 %v3231_v34, %v2911_v19  ;;  %v2145_v39 = vadd.f32 %v2081_v25, %v1761_v36  ;;  %v8878_v52 = vrot.slane %v5422_v42, %v5060_v5  ;;  %v8879_v63 = vrot.slane %v5422_v42, %v5064_v8 }
 0x13b   : > { %v2465_v53 = vmul.f32 %v8876_v17, %v6520_v22  ;;  %v2849_v30 = vmul.f32 %v8877_v35, %v6562_v11  ;;  %v2910_v44 = vadd.f32 %v2846_v26, %v2526_v27  ;;  %v8880_v21 = vrot.slane %v5420_v24, %v5070_v13 }
 0x13c   : > { %v1376_v48 = vmul.f32 %v8878_v52, %v6472_v54  ;;  %v1696_v32 = vmul.f32 %v8879_v63, %v6470_v23  ;;  %v8881_v34 = vrot.slane %v5420_v24, %v5078_v18  ;;  %v8882_v19 = vrot.slane %v5422_v42, %v5058_v4 }
 0x13d   : > { %v3233_v17 = vmul.f32 %v8880_v21, %v6560_v62  ;;  %v3679_v35 = vadd.f32 %v3615_v16, %v3295_v31  ;;  %v2529_v52 = vadd.f32 %v2465_v53, %v2145_v39  ;;  %v8883_v26 = vrot.slane %v5420_v24, %v5074_v15  ;;  %v4188_v39 = vpop.permute.xlu0 %4187 }
 0x13e   : > { %v3617_v25 = vmul.f32 %v8881_v34, %v6598_v20  ;;  %v2080_v36 = vmul.f32 %v8882_v19, %v6522_v3  ;;  %v1760_v63 = vadd.f32 %v1696_v32, %v1376_v48  ;;  %v3294_v12 = vadd.f32 %v3230_v59, %v2910_v44 }
 0x13f   : > { %v4001_v27 = vmul.f32 %v8883_v26, %v6596_v0  ;;  %vm4595_vm15 = vcmp.gt.f32.partialorder %v4195_v6, 0.0  ;;  %v8884_v21 = vrot.slane %v5422_v42, %v5062_v7  ;;  %v8885_v19 = vrot.slane %v5422_v42, %v5072_v14 }
 0x140   : > { %v4063_v53 = vadd.f32 %v3999_v29, %v3679_v35  ;;  %v2913_v31 = vadd.f32 %v2849_v30, %v2529_v52  ;;  %v2144_v33 = vadd.f32 %v2080_v36, %v1760_v63  ;;  %v8886_v24 = vrot.slane %v5456_v45, %v5060_v5 }
 0x141   : > { %v2464_v34 = vmul.f32 %v8884_v21, %v6520_v22  ;;  %v2848_v16 = vmul.f32 %v8885_v19, %v6562_v11  ;;  %v3678_v48 = vadd.f32 %v3614_v57, %v3294_v12  ;;  %v8887_v32 = vrot.slane %v5422_v42, %v5070_v13 }
 0x142   : > { %v1379_v59 = vmul.f32 %v8886_v24, %v6472_v54  ;;  %v8888_v26 = vrot.slane %v5456_v45, %v5064_v8  ;;  %v8889_v29 = vrot.slane %v5456_v45, %v5058_v4  ;;  %v4657_v36 = vsel %vm4593_vm13, %v4063_v53, 0.0 }
 0x143   : > { %v3232_v44 = vmul.f32 %v8887_v32, %v6560_v62  ;;  %v3297_v35 = vadd.f32 %v3233_v17, %v2913_v31  ;;  %v2528_v12 = vadd.f32 %v2464_v34, %v2144_v33  ;;  %v8890_v57 = vrot.slane %v5422_v42, %v5078_v18  ;;  %4722 = vst.msk [vmem:[%s6647_s22 + $0x28] sm:$0xff] %vm4716_vm8, %v4657_v36 }
 0x144   : > { %v1699_v21 = vmul.f32 %v8888_v26, %v6470_v23  ;;  %v2083_v30 = vmul.f32 %v8889_v29, %v6522_v3  ;;  %v4062_v63 = vadd.f32 %v3998_v61, %v3678_v48  ;;  %v8891_v19 = vrot.slane %v5422_v42, %v5074_v15  ;;  %v4209_v48 = vpop.permute.xlu1 %4208 }
 0x145   : > { %v3616_v52 = vmul.f32 %v8890_v57, %v6598_v20  ;;  %vm4594_vm0 = vcmp.gt.f32.partialorder %v4188_v39, 0.0  ;;  %v3681_v40 = vadd.f32 %v3617_v25, %v3297_v35  ;;  %v2912_v53 = vadd.f32 %v2848_v16, %v2528_v12 }
 0x146   : > { %v4000_v24 = vmul.f32 %v8891_v19, %v6596_v0  ;;  %v1763_v32 = vadd.f32 %v1699_v21, %v1379_v59  ;;  %v8892_v33 = vrot.slane %v5456_v45, %v5062_v7  ;;  %v8893_v34 = vrot.slane %v5456_v45, %v5072_v14 }
 0x147   : > { %v4656_v61 = vsel %vm4592_vm14, %v4062_v63, 0.0  ;;  %v8894_v42 = vrot.slane %v5458_v41, %v5060_v5  ;;  %v8895_v16 = vrot.slane %v5458_v41, %v5064_v8  ;;  %v4065_v21 = vadd.f32 %v4001_v27, %v3681_v40 }
 0x148   : > { %v2467_v17 = vmul.f32 %v8892_v33, %v6520_v22  ;;  %v2851_v31 = vmul.f32 %v8893_v34, %v6562_v11  ;;  %v2147_v26 = vadd.f32 %v2083_v30, %v1763_v32  ;;  %4721 = vst.msk [vmem:[%s6647_s22 + $0x20] sm:$0xff] %vm4716_vm8, %v4656_v61  ;;  %v3296_v29 = vadd.f32 %v3232_v44, %v2912_v53  ;;  %v4202_v34 = vpop.permute.xlu0 %4201 }
 0x149   : > { %v1378_v25 = vmul.f32 %v8894_v42, %v6472_v54  ;;  %v1698_v59 = vmul.f32 %v8895_v16, %v6470_v23  ;;  %v8896_v55 = vrot.slane %v5456_v45, %v5070_v13  ;;  %v8897_v36 = vrot.slane %v5458_v41, %v5058_v4 }
 0x14a   : > { %v2531_v12 = vadd.f32 %v2467_v17, %v2147_v26  ;;  %v8898_v57 = vrot.slane %v5456_v45, %v5078_v18  ;;  %v8899_v27 = vrot.slane %v5456_v45, %v5074_v15  ;;  %v4659_v32 = vsel %vm4595_vm15, %v4065_v21, 0.0 }
 0x14b   : > { %v3235_v30 = vmul.f32 %v8896_v55, %v6560_v62  ;;  %v2082_v35 = vmul.f32 %v8897_v36, %v6522_v3  ;;  %v1762_v19 = vadd.f32 %v1698_v59, %v1378_v25  ;;  %v3680_v40 = vadd.f32 %v3616_v52, %v3296_v29  ;;  %4724 = vst.msk [vmem:[%s6647_s22 + $0x38] sm:$0xff] %vm4716_vm8, %v4659_v32 }
 0x14c   : > { %v3619_v63 = vmul.f32 %v8898_v57, %v6598_v20  ;;  %v4003_v44 = vmul.f32 %v8899_v27, %v6596_v0  ;;  %vm4597_vm1 = vcmp.gt.f32.partialorder %v4209_v48, 0.0  ;;  %v8900_v53 = vrot.slane %v5458_v41, %v5062_v7 }
 0x14d   : > { %v2915_v17 = vadd.f32 %v2851_v31, %v2531_v12  ;;  %v2146_v61 = vadd.f32 %v2082_v35, %v1762_v19  ;;  %v8901_v45 = vrot.slane %v5458_v41, %v5072_v14  ;;  %v8902_v6 = vrot.slane %v5492_v47, %v5060_v5 }
 0x14e   : > { %v2466_v33 = vmul.f32 %v8900_v53, %v6520_v22  ;;  %v4064_v42 = vadd.f32 %v4000_v24, %v3680_v40  ;;  %v8903_v25 = vrot.slane %v5458_v41, %v5070_v13  ;;  %v8904_v31 = vrot.slane %v5492_v47, %v5064_v8 }
 0x14f   : > { %v2850_v26 = vmul.f32 %v8901_v45, %v6562_v11  ;;  %v1381_v52 = vmul.f32 %v8902_v6, %v6472_v54  ;;  %v8905_v21 = vrot.slane %v5492_v47, %v5058_v4  ;;  %v3299_v55 = vadd.f32 %v3235_v30, %v2915_v17 }
 0x150   : > { %v3234_v16 = vmul.f32 %v8903_v25, %v6560_v62  ;;  %v1701_v59 = vmul.f32 %v8904_v31, %v6470_v23  ;;  %v2530_v36 = vadd.f32 %v2466_v33, %v2146_v61  ;;  %v8906_v24 = vrot.slane %v5458_v41, %v5078_v18  ;;  %v4223_v33 = vpop.permute.xlu1 %4222 }
 0x151   : > { %v2085_v29 = vmul.f32 %v8905_v21, %v6522_v3  ;;  %v8907_v12 = vrot.slane %v5458_v41, %v5074_v15  ;;  %v4658_v27 = vsel %vm4594_vm0, %v4064_v42, 0.0  ;;  %vm4596_vm2 = vcmp.gt.f32.partialorder %v4202_v34, 0.0 }
 0x152   : > { %v3618_v35 = vmul.f32 %v8906_v24, %v6598_v20  ;;  %v1765_v19 = vadd.f32 %v1701_v59, %v1381_v52  ;;  %v8908_v32 = vrot.slane %v5492_v47, %v5062_v7  ;;  %4723 = vst.msk [vmem:[%s6647_s22 + $0x30] sm:$0xff] %vm4716_vm8, %v4658_v27  ;;  %v3683_v40 = vadd.f32 %v3619_v63, %v3299_v55 }
 0x153   : > { %v4002_v57 = vmul.f32 %v8907_v12, %v6596_v0  ;;  %v2914_v53 = vadd.f32 %v2850_v26, %v2530_v36  ;;  %v8909_v17 = vrot.slane %v5492_v47, %v5072_v14  ;;  %v8910_v39 = vrot.slane %v5494_v37, %v5060_v5 }
 0x154   : > { %v2469_v30 = vmul.f32 %v8908_v32, %v6520_v22  ;;  %v2149_v45 = vadd.f32 %v2085_v29, %v1765_v19  ;;  %v8911_v6 = vrot.slane %v5492_v47, %v5070_v13  ;;  %v8912_v63 = vrot.slane %v5494_v37, %v5064_v8  ;;  %v4216_v32 = vpop.permute.xlu0 %4215 }
 0x155   : > { %v2853_v41 = vmul.f32 %v8909_v17, %v6562_v11  ;;  %v1380_v61 = vmul.f32 %v8910_v39, %v6472_v54  ;;  %v8913_v42 = vrot.slane %v5494_v37, %v5058_v4  ;;  %v4067_v31 = vadd.f32 %v4003_v44, %v3683_v40 }
 0x156   : > { %v3237_v52 = vmul.f32 %v8911_v6, %v6560_v62  ;;  %v1700_v26 = vmul.f32 %v8912_v63, %v6470_v23  ;;  %v3298_v59 = vadd.f32 %v3234_v16, %v2914_v53  ;;  %v8914_v21 = vrot.slane %v5492_v47, %v5078_v18 }
 0x157   : > { %v2084_v25 = vmul.f32 %v8913_v42, %v6522_v3  ;;  %v8915_v55 = vrot.slane %v5492_v47, %v5074_v15  ;;  %v2533_v24 = vadd.f32 %v2469_v30, %v2149_v45  ;;  %vm4599_vm3 = vcmp.gt.f32.partialorder %v4223_v33, 0.0 }
 0x158   : > { %v3621_v29 = vmul.f32 %v8914_v21, %v6598_v20  ;;  %v1764_v12 = vadd.f32 %v1700_v26, %v1380_v61  ;;  %v8916_v27 = vrot.slane %v5494_v37, %v5062_v7  ;;  %v4661_v44 = vsel %vm4597_vm1, %v4067_v31, 0.0 }
 0x159   : > { %v4005_v36 = vmul.f32 %v8915_v55, %v6596_v0  ;;  %v3682_v16 = vadd.f32 %v3618_v35, %v3298_v59  ;;  %v8917_v40 = vrot.slane %v5494_v37, %v5072_v14  ;;  %v8918_v47 = vrot.slane %v5528_v50, %v5060_v5  ;;  %4726 = vst.msk [vmem:[%s6647_s22 + $0x48] sm:$0xff] %vm4716_vm8, %v4661_v44 }
 0x15a   : > { %v2468_v19 = vmul.f32 %v8916_v27, %v6520_v22  ;;  %v2917_v17 = vadd.f32 %v2853_v41, %v2533_v24  ;;  %v2148_v39 = vadd.f32 %v2084_v25, %v1764_v12  ;;  %v8919_v48 = vrot.slane %v5528_v50, %v5064_v8 }
 0x15b   : > { %v2852_v53 = vmul.f32 %v8917_v40, %v6562_v11  ;;  %v1383_v30 = vmul.f32 %v8918_v47, %v6472_v54  ;;  %v8920_v61 = vrot.slane %v5528_v50, %v5058_v4  ;;  %v4066_v6 = vadd.f32 %v4002_v57, %v3682_v16  ;;  %v4237_v16 = vpop.permute.xlu1 %4236 }
 0x15c   : > { %v1703_v35 = vmul.f32 %v8919_v48, %v6470_v23  ;;  %v8921_v63 = vrot.slane %v5494_v37, %v5070_v13  ;;  %v8922_v41 = vrot.slane %v5494_v37, %v5078_v18  ;;  %v8923_v25 = vrot.slane %v5494_v37, %v5074_v15 }
 0x15d   : > { %v2087_v45 = vmul.f32 %v8920_v61, %v6522_v3  ;;  %v3301_v59 = vadd.f32 %v3237_v52, %v2917_v17  ;;  %v2532_v21 = vadd.f32 %v2468_v19, %v2148_v39  ;;  %vm4598_vm4 = vcmp.gt.f32.partialorder %v4216_v32, 0.0 }
 0x15e   : > { %v3236_v26 = vmul.f32 %v8921_v63, %v6560_v62  ;;  %v3620_v42 = vmul.f32 %v8922_v41, %v6598_v20  ;;  %v4004_v31 = vmul.f32 %v8923_v25, %v6596_v0  ;;  %v1767_v55 = vadd.f32 %v1703_v35, %v1383_v30 }
 0x15f   : > { %v4660_v57 = vsel %vm4596_vm2, %v4066_v6, 0.0  ;;  %v8924_v24 = vrot.slane %v5528_v50, %v5062_v7  ;;  %v8925_v27 = vrot.slane %v5528_v50, %v5072_v14  ;;  %v8926_v37 = vrot.slane %v5530_v1, %v5060_v5 }
 0x160   : > { %4725 = vst.msk [vmem:[%s6647_s22 + $0x40] sm:$0xff] %vm4716_vm8, %v4660_v57  ;;  %v3685_v19 = vadd.f32 %v3621_v29, %v3301_v59  ;;  %v2916_v34 = vadd.f32 %v2852_v53, %v2532_v21  ;;  %v2151_v40 = vadd.f32 %v2087_v45, %v1767_v55  ;;  %v8927_v47 = vrot.slane %v5530_v1, %v5064_v8 }
 0x161   : > { %v2471_v12 = vmul.f32 %v8924_v24, %v6520_v22  ;;  %v2855_v44 = vmul.f32 %v8925_v27, %v6562_v11  ;;  %v1382_v52 = vmul.f32 %v8926_v37, %v6472_v54  ;;  %v8928_v17 = vrot.slane %v5528_v50, %v5070_v13  ;;  %v4230_v27 = vpop.permute.xlu0 %4229 }
 0x162   : > { %v1702_v30 = vmul.f32 %v8927_v47, %v6470_v23  ;;  %v8929_v48 = vrot.slane %v5528_v50, %v5078_v18  ;;  %v8930_v29 = vrot.slane %v5528_v50, %v5074_v15  ;;  %v8931_v61 = vrot.slane %v5530_v1, %v5058_v4 }
 0x163   : > { %v3239_v39 = vmul.f32 %v8928_v17, %v6560_v62  ;;  %v4069_v6 = vadd.f32 %v4005_v36, %v3685_v19  ;;  %v3300_v63 = vadd.f32 %v3236_v26, %v2916_v34  ;;  %v2535_v41 = vadd.f32 %v2471_v12, %v2151_v40 }
 0x164   : > { %v3623_v35 = vmul.f32 %v8929_v48, %v6598_v20  ;;  %v4007_v53 = vmul.f32 %v8930_v29, %v6596_v0  ;;  %v2086_v45 = vmul.f32 %v8931_v61, %v6522_v3  ;;  %v1766_v25 = vadd.f32 %v1702_v30, %v1382_v52 }
 0x165   : > { %vm4601_vm5 = vcmp.gt.f32.partialorder %v4237_v16, 0.0  ;;  %v8932_v59 = vrot.slane %v5530_v1, %v5062_v7  ;;  %v8933_v50 = vrot.slane %v5530_v1, %v5072_v14  ;;  %v8934_v57 = vrot.slane %v5564_v28, %v5060_v5 }
 0x166   : > { %v4663_v36 = vsel %vm4599_vm3, %v4069_v6, 0.0  ;;  %v3684_v26 = vadd.f32 %v3620_v42, %v3300_v63  ;;  %v2919_v12 = vadd.f32 %v2855_v44, %v2535_v41  ;;  %v2150_v37 = vadd.f32 %v2086_v45, %v1766_v25 }
 0x167   : > { %v2470_v21 = vmul.f32 %v8932_v59, %v6520_v22  ;;  %v2854_v55 = vmul.f32 %v8933_v50, %v6562_v11  ;;  %v1385_v24 = vmul.f32 %v8934_v57, %v6472_v54  ;;  %4728 = vst.msk [vmem:[%s6647_s22 + $0x58] sm:$0xff] %vm4716_vm8, %v4663_v36  ;;  %v8935_v52 = vrot.slane %v5530_v1, %v5070_v13 }
 0x168   : > { %v8936_v34 = vrot.slane %v5530_v1, %v5078_v18  ;;  %v8937_v33 = vrot.slane %v5564_v28, %v5064_v8  ;;  %v8938_v44 = vrot.slane %v5564_v28, %v5058_v4  ;;  %v4068_v30 = vadd.f32 %v4004_v31, %v3684_v26 }
 0x169   : > { %v3238_v19 = vmul.f32 %v8935_v52, %v6560_v62  ;;  %v3303_v17 = vadd.f32 %v3239_v39, %v2919_v12  ;;  %v2534_v48 = vadd.f32 %v2470_v21, %v2150_v37  ;;  %v8939_v29 = vrot.slane %v5530_v1, %v5074_v15  ;;  %v4251_v21 = vpop.permute.xlu1 %4250 }
 0x16a   : > { %v3622_v40 = vmul.f32 %v8936_v34, %v6598_v20  ;;  %v1705_v42 = vmul.f32 %v8937_v33, %v6470_v23  ;;  %v2089_v47 = vmul.f32 %v8938_v44, %v6522_v3  ;;  %vm4600_vm6 = vcmp.gt.f32.partialorder %v4230_v27, 0.0 }
 0x16b   : > { %v4006_v61 = vmul.f32 %v8939_v29, %v6596_v0  ;;  %v8940_v6 = vrot.slane %v5564_v28, %v5062_v7  ;;  %v8941_v41 = vrot.slane %v5564_v28, %v5072_v14  ;;  %v4662_v31 = vsel %vm4598_vm4, %v4068_v30, 0.0 }
 0x16c   : > { %v1769_v45 = vadd.f32 %v1705_v42, %v1385_v24  ;;  %v3687_v39 = vadd.f32 %v3623_v35, %v3303_v17  ;;  %v2918_v59 = vadd.f32 %v2854_v55, %v2534_v48  ;;  %v8942_v1 = vrot.slane %v5566_v38, %v5060_v5  ;;  %4727 = vst.msk [vmem:[%s6647_s22 + $0x50] sm:$0xff] %vm4716_vm8, %v4662_v31  ;;  %v4244_v48 = vpop.permute.xlu0 %4243 }
 0x16d   : > { %v2473_v63 = vmul.f32 %v8940_v6, %v6520_v22  ;;  %v2857_v25 = vmul.f32 %v8941_v41, %v6562_v11  ;;  %v8943_v24 = vrot.slane %v5564_v28, %v5070_v13  ;;  %v8944_v32 = vrot.slane %v5566_v38, %v5064_v8 }
 0x16e   : > { %v1384_v50 = vmul.f32 %v8942_v1, %v6472_v54  ;;  %v2153_v57 = vadd.f32 %v2089_v47, %v1769_v45  ;;  %v8945_v55 = vrot.slane %v5566_v38, %v5058_v4  ;;  %v4071_v12 = vadd.f32 %v4007_v53, %v3687_v39 }
 0x16f   : > { %v3241_v36 = vmul.f32 %v8943_v24, %v6560_v62  ;;  %v1704_v35 = vmul.f32 %v8944_v32, %v6470_v23  ;;  %v3302_v37 = vadd.f32 %v3238_v19, %v2918_v59  ;;  %v8946_v52 = vrot.slane %v5564_v28, %v5078_v18 }
 0x170   : > { %v2088_v26 = vmul.f32 %v8945_v55, %v6522_v3  ;;  %v8947_v33 = vrot.slane %v5564_v28, %v5074_v15  ;;  %v2537_v44 = vadd.f32 %v2473_v63, %v2153_v57  ;;  %vm4603_vm7 = vcmp.gt.f32.partialorder %v4251_v21, 0.0 }
 0x171   : > { %v3625_v34 = vmul.f32 %v8946_v52, %v6598_v20  ;;  %v1768_v47 = vadd.f32 %v1704_v35, %v1384_v50  ;;  %v8948_v30 = vrot.slane %v5566_v38, %v5062_v7  ;;  %v4665_v53 = vsel %vm4601_vm5, %v4071_v12, 0.0 }
 0x172   : > { %v4009_v42 = vmul.f32 %v8947_v33, %v6596_v0  ;;  %v3686_v19 = vadd.f32 %v3622_v40, %v3302_v37  ;;  %v8949_v29 = vrot.slane %v5566_v38, %v5072_v14  ;;  %v8950_v28 = vrot.slane %v5600_v56, %v5060_v5  ;;  %4730 = vst.msk [vmem:[%s6647_s22 + $0x68] sm:$0xff] %vm4716_vm8, %v4665_v53 }
 0x173   : > { %v2472_v17 = vmul.f32 %v8948_v30, %v6520_v22  ;;  %v2921_v63 = vadd.f32 %v2857_v25, %v2537_v44  ;;  %v2152_v41 = vadd.f32 %v2088_v26, %v1768_v47  ;;  %v8951_v16 = vrot.slane %v5600_v56, %v5064_v8  ;;  %v4265_v47 = vpop.permute.xlu1 %4264 }
 0x174   : > { %v2856_v45 = vmul.f32 %v8949_v29, %v6562_v11  ;;  %v1387_v6 = vmul.f32 %v8950_v28, %v6472_v54  ;;  %v8952_v31 = vrot.slane %v5600_v56, %v5058_v4  ;;  %v4070_v59 = vadd.f32 %v4006_v61, %v3686_v19 }
 0x175   : > { %v1707_v40 = vmul.f32 %v8951_v16, %v6470_v23  ;;  %v8953_v1 = vrot.slane %v5566_v38, %v5070_v13  ;;  %v8954_v25 = vrot.slane %v5566_v38, %v5078_v18  ;;  %v8955_v24 = vrot.slane %v5566_v38, %v5074_v15 }
 0x176   : > { %v2091_v39 = vmul.f32 %v8952_v31, %v6522_v3  ;;  %v3305_v35 = vadd.f32 %v3241_v36, %v2921_v63  ;;  %v2536_v55 = vadd.f32 %v2472_v17, %v2152_v41  ;;  %vm4602_vm9 = vcmp.gt.f32.partialorder %v4244_v48, 0.0 }
 0x177   : > { %v3240_v50 = vmul.f32 %v8953_v1, %v6560_v62  ;;  %v3624_v57 = vmul.f32 %v8954_v25, %v6598_v20  ;;  %v4008_v32 = vmul.f32 %v8955_v24, %v6596_v0  ;;  %v1771_v26 = vadd.f32 %v1707_v40, %v1387_v6 }
 0x178   : > { %v4664_v61 = vsel %vm4600_vm6, %v4070_v59, 0.0  ;;  %v8956_v12 = vrot.slane %v5600_v56, %v5062_v7  ;;  %v8957_v52 = vrot.slane %v5600_v56, %v5072_v14  ;;  %v8958_v38 = vrot.slane %v5602_v43, %v5060_v5 }
 0x179   : > { %4729 = vst.msk [vmem:[%s6647_s22 + $0x60] sm:$0xff] %vm4716_vm8, %v4664_v61  ;;  %v3689_v44 = vadd.f32 %v3625_v34, %v3305_v35  ;;  %v2920_v27 = vadd.f32 %v2856_v45, %v2536_v55  ;;  %v2155_v30 = vadd.f32 %v2091_v39, %v1771_v26  ;;  %v8959_v17 = vrot.slane %v5602_v43, %v5064_v8  ;;  %v4258_v26 = vpop.permute.xlu0 %4257 }
 0x17a   : > { %v2475_v37 = vmul.f32 %v8956_v12, %v6520_v22  ;;  %v2859_v33 = vmul.f32 %v8957_v52, %v6562_v11  ;;  %v1386_v36 = vmul.f32 %v8958_v38, %v6472_v54  ;;  %v8960_v19 = vrot.slane %v5600_v56, %v5070_v13 }
 0x17b   : > { %v1706_v53 = vmul.f32 %v8959_v17, %v6470_v23  ;;  %v8961_v28 = vrot.slane %v5600_v56, %v5078_v18  ;;  %v8962_v34 = vrot.slane %v5600_v56, %v5074_v15  ;;  %v8963_v63 = vrot.slane %v5602_v43, %v5058_v4 }
 0x17c   : > { %v3243_v29 = vmul.f32 %v8960_v19, %v6560_v62  ;;  %v4073_v16 = vadd.f32 %v4009_v42, %v3689_v44  ;;  %v3304_v40 = vadd.f32 %v3240_v50, %v2920_v27  ;;  %v2539_v31 = vadd.f32 %v2475_v37, %v2155_v30 }
 0x17d   : > { %v3627_v6 = vmul.f32 %v8961_v28, %v6598_v20  ;;  %v4011_v45 = vmul.f32 %v8962_v34, %v6596_v0  ;;  %v2090_v41 = vmul.f32 %v8963_v63, %v6522_v3  ;;  %v1770_v39 = vadd.f32 %v1706_v53, %v1386_v36 }
 0x17e   : > { %vm4605_vm10 = vcmp.gt.f32.partialorder %v4265_v47, 0.0  ;;  %v8964_v59 = vrot.slane %v5602_v43, %v5062_v7  ;;  %v8965_v56 = vrot.slane %v5602_v43, %v5072_v14  ;;  %v8966_v24 = vrot.slane %v5636_v58, %v5060_v5 }
 0x17f   : > { %v4667_v42 = vsel %vm4603_vm7, %v4073_v16, 0.0  ;;  %v3688_v50 = vadd.f32 %v3624_v57, %v3304_v40  ;;  %v2923_v55 = vadd.f32 %v2859_v33, %v2539_v31  ;;  %v2154_v61 = vadd.f32 %v2090_v41, %v1770_v39  ;;  %v4279_v40 = vpop.permute.xlu1 %4278 }
 0x180   : > { %v2474_v1 = vmul.f32 %v8964_v59, %v6520_v22  ;;  %v2858_v25 = vmul.f32 %v8965_v56, %v6562_v11  ;;  %v1389_v35 = vmul.f32 %v8966_v24, %v6472_v54  ;;  %4732 = vst.msk [vmem:[%s6647_s22 + $0x78] sm:$0xff] %vm4716_vm8, %v4667_v42  ;;  %v8967_v12 = vrot.slane %v5602_v43, %v5070_v13 }
 0x181   : > { %v8968_v52 = vrot.slane %v5602_v43, %v5078_v18  ;;  %v8969_v21 = vrot.slane %v5636_v58, %v5064_v8  ;;  %v8970_v33 = vrot.slane %v5636_v58, %v5058_v4  ;;  %v4072_v44 = vadd.f32 %v4008_v32, %v3688_v50 }
 0x182   : > { %v3242_v37 = vmul.f32 %v8967_v12, %v6560_v62  ;;  %v3307_v27 = vadd.f32 %v3243_v29, %v2923_v55  ;;  %v2538_v30 = vadd.f32 %v2474_v1, %v2154_v61  ;;  %v8971_v17 = vrot.slane %v5602_v43, %v5074_v15 }
 0x183   : > { %v3626_v38 = vmul.f32 %v8968_v52, %v6598_v20  ;;  %v1709_v57 = vmul.f32 %v8969_v21, %v6470_v23  ;;  %v2093_v36 = vmul.f32 %v8970_v33, %v6522_v3  ;;  %vm4604_vm11 = vcmp.gt.f32.partialorder %v4258_v26, 0.0  ;;  %v4272_v33 = vpop.permute.xlu0 %4271 }
 0x184   : > { %v4010_v53 = vmul.f32 %v8971_v17, %v6596_v0  ;;  %v8972_v28 = vrot.slane %v5636_v58, %v5062_v7  ;;  %v8973_v63 = vrot.slane %v5636_v58, %v5072_v14  ;;  %v4666_v32 = vsel %vm4602_vm9, %v4072_v44, 0.0 }
 0x185   : > { %v1773_v19 = vadd.f32 %v1709_v57, %v1389_v35  ;;  %v3691_v29 = vadd.f32 %v3627_v6, %v3307_v27  ;;  %v2922_v16 = vadd.f32 %v2858_v25, %v2538_v30  ;;  %v8974_v43 = vrot.slane %v5638_v49, %v5060_v5  ;;  %4731 = vst.msk [vmem:[%s6647_s22 + $0x70] sm:$0xff] %vm4716_vm8, %v4666_v32 }
 0x186   : > { %v2477_v34 = vmul.f32 %v8972_v28, %v6520_v22  ;;  %v2861_v41 = vmul.f32 %v8973_v63, %v6562_v11  ;;  %v8975_v59 = vrot.slane %v5636_v58, %v5070_v13  ;;  %v8976_v48 = vrot.slane %v5638_v49, %v5064_v8 }
 0x187   : > { %v1388_v31 = vmul.f32 %v8974_v43, %v6472_v54  ;;  %v2157_v39 = vadd.f32 %v2093_v36, %v1773_v19  ;;  %v8977_v56 = vrot.slane %v5638_v49, %v5058_v4  ;;  %v4075_v24 = vadd.f32 %v4011_v45, %v3691_v29 }
 0x188   : > { %v3245_v1 = vmul.f32 %v8975_v59, %v6560_v62  ;;  %v1708_v6 = vmul.f32 %v8976_v48, %v6470_v23  ;;  %v3306_v35 = vadd.f32 %v3242_v37, %v2922_v16  ;;  %v8978_v42 = vrot.slane %v5636_v58, %v5078_v18 }
 0x189   : > { %v2092_v25 = vmul.f32 %v8977_v56, %v6522_v3  ;;  %v8979_v55 = vrot.slane %v5636_v58, %v5074_v15  ;;  %v2541_v12 = vadd.f32 %v2477_v34, %v2157_v39  ;;  %vm4607_vm12 = vcmp.gt.f32.partialorder %v4279_v40, 0.0 }
 0x18a   : > { %v3629_v50 = vmul.f32 %v8978_v42, %v6598_v20  ;;  %v1772_v52 = vadd.f32 %v1708_v6, %v1388_v31  ;;  %v8980_v21 = vrot.slane %v5638_v49, %v5062_v7  ;;  %v4669_v45 = vsel %vm4605_vm10, %v4075_v24, 0.0 }
 0x18b   : > { %v4013_v61 = vmul.f32 %v8979_v55, %v6596_v0  ;;  %v3690_v37 = vadd.f32 %v3626_v38, %v3306_v35  ;;  %v8981_v36 = vrot.slane %v5638_v49, %v5072_v14  ;;  %v8982_v58 = vrot.slane %v5672_v60, %v5060_v5  ;;  %4734 = vst.msk [vmem:[%s6647_s22 + $0x88] sm:$0xff] %vm4716_vm8, %v4669_v45  ;;  %v4293_v35 = vpop.permute.xlu1 %4292 }
 0x18c   : > { %v2476_v57 = vmul.f32 %v8980_v21, %v6520_v22  ;;  %v2925_v30 = vadd.f32 %v2861_v41, %v2541_v12  ;;  %v2156_v17 = vadd.f32 %v2092_v25, %v1772_v52  ;;  %v8983_v47 = vrot.slane %v5672_v60, %v5064_v8 }
 0x18d   : > { %v2860_v44 = vmul.f32 %v8981_v36, %v6562_v11  ;;  %v1391_v27 = vmul.f32 %v8982_v58, %v6472_v54  ;;  %v8984_v19 = vrot.slane %v5672_v60, %v5058_v4  ;;  %v4074_v34 = vadd.f32 %v4010_v53, %v3690_v37 }
 0x18e   : > { %v1711_v38 = vmul.f32 %v8983_v47, %v6470_v23  ;;  %v8985_v63 = vrot.slane %v5638_v49, %v5070_v13  ;;  %v8986_v41 = vrot.slane %v5638_v49, %v5078_v18  ;;  %v8987_v16 = vrot.slane %v5638_v49, %v5074_v15 }
 0x18f   : > { %v2095_v28 = vmul.f32 %v8984_v19, %v6522_v3  ;;  %v3309_v31 = vadd.f32 %v3245_v1, %v2925_v30  ;;  %v2540_v39 = vadd.f32 %v2476_v57, %v2156_v17  ;;  %vm4606_vm13 = vcmp.gt.f32.partialorder %v4272_v33, 0.0 }
 0x190   : > { %v3244_v32 = vmul.f32 %v8985_v63, %v6560_v62  ;;  %v3628_v29 = vmul.f32 %v8986_v41, %v6598_v20  ;;  %v4012_v43 = vmul.f32 %v8987_v16, %v6596_v0  ;;  %v1775_v59 = vadd.f32 %v1711_v38, %v1391_v27  ;;  %v4286_v16 = vpop.permute.xlu0 %4285 }
 0x191   : > { %v4668_v53 = vsel %vm4604_vm11, %v4074_v34, 0.0  ;;  %v8988_v48 = vrot.slane %v5672_v60, %v5062_v7  ;;  %v8989_v56 = vrot.slane %v5672_v60, %v5072_v14  ;;  %v8990_v49 = vrot.slane %v5674_v51, %v5060_v5 }
 0x192   : > { %4733 = vst.msk [vmem:[%s6647_s22 + $0x80] sm:$0xff] %vm4716_vm8, %v4668_v53  ;;  %v3693_v24 = vadd.f32 %v3629_v50, %v3309_v31  ;;  %v2924_v26 = vadd.f32 %v2860_v44, %v2540_v39  ;;  %v2159_v42 = vadd.f32 %v2095_v28, %v1775_v59  ;;  %v8991_v55 = vrot.slane %v5674_v51, %v5064_v8  ;;  %v8998_v28 = vld [vmem:[#allocation2_spill] sm:$0xff] }
 0x193   : > { %v2479_v6 = vmul.f32 %v8988_v48, %v6520_v22  ;;  %v2863_v25 = vmul.f32 %v8989_v56, %v6562_v11  ;;  %v1390_v1 = vmul.f32 %v8990_v49, %v6472_v54  ;;  %v8992_v52 = vrot.slane %v5672_v60, %v5070_v13 }
 0x194   : > { %v1710_v12 = vmul.f32 %v8991_v55, %v6470_v23  ;;  %v8993_v57 = vrot.slane %v5672_v60, %v5078_v18  ;;  %v8994_v50 = vrot.slane %v5672_v60, %v5074_v15  ;;  %v8995_v36 = vrot.slane %v5674_v51, %v5058_v4 }
 0x195   : > { %v3247_v21 = vmul.f32 %v8992_v52, %v6560_v62  ;;  %v4077_v58 = vadd.f32 %v4013_v61, %v3693_v24  ;;  %v3308_v27 = vadd.f32 %v3244_v32, %v2924_v26  ;;  %v2543_v30 = vadd.f32 %v2479_v6, %v2159_v42 }
 0x196   : > { %v3631_v45 = vmul.f32 %v8993_v57, %v6598_v20  ;;  %v4015_v37 = vmul.f32 %v8994_v50, %v6596_v0  ;;  %v2094_v44 = vmul.f32 %v8995_v36, %v6522_v3  ;;  %v1774_v17 = vadd.f32 %v1710_v12, %v1390_v1  ;;  %v4307_v36 = vpop.permute.xlu1 %4306 }
 0x197   : > { %vm4609_vm14 = vcmp.gt.f32.partialorder %v4293_v35, 0.0  ;;  %v8996_v47 = vrot.slane %v5674_v51, %v5062_v7  ;;  %v8997_v60 = vrot.slane %v5674_v51, %v5072_v14  ;;  %v8999_v34 = vrot.slane %v8998_v28, %v5060_v5 }
 0x198   : > { %v4671_v61 = vsel %vm4607_vm12, %v4077_v58, 0.0  ;;  %v3692_v32 = vadd.f32 %v3628_v29, %v3308_v27  ;;  %v2927_v41 = vadd.f32 %v2863_v25, %v2543_v30  ;;  %v2158_v31 = vadd.f32 %v2094_v44, %v1774_v17 }
 0x199   : > { %v2478_v38 = vmul.f32 %v8996_v47, %v6520_v22  ;;  %v2862_v19 = vmul.f32 %v8997_v60, %v6562_v11  ;;  %v1393_v63 = vmul.f32 %v8999_v34, %v6472_v54  ;;  %4736 = vst.msk [vmem:[%s6647_s22 + $0x98] sm:$0xff] %vm4716_vm8, %v4671_v61  ;;  %v9000_v39 = vrot.slane %v5674_v51, %v5070_v13 }
 0x19a   : > { %v9001_v53 = vrot.slane %v5674_v51, %v5078_v18  ;;  %v9002_v40 = vrot.slane %v8998_v28, %v5064_v8  ;;  %v9003_v6 = vrot.slane %v8998_v28, %v5058_v4  ;;  %v4076_v25 = vadd.f32 %v4012_v43, %v3692_v32 }
 0x19b   : > { %v3246_v59 = vmul.f32 %v9000_v39, %v6560_v62  ;;  %v3311_v49 = vadd.f32 %v3247_v21, %v2927_v41  ;;  %v2542_v1 = vadd.f32 %v2478_v38, %v2158_v31  ;;  %v9004_v24 = vrot.slane %v5674_v51, %v5074_v15  ;;  %v9007_v51 = vld [vmem:[#allocation3_spill] sm:$0xff] }
 0x19c   : > { %v3630_v48 = vmul.f32 %v9001_v53, %v6598_v20  ;;  %v1713_v29 = vmul.f32 %v9002_v40, %v6470_v23  ;;  %v2097_v56 = vmul.f32 %v9003_v6, %v6522_v3  ;;  %vm4608_vm15 = vcmp.gt.f32.partialorder %v4286_v16, 0.0  ;;  %v4300_v40 = vpop.permute.xlu0 %4299 }
 0x19d   : > { %v4014_v26 = vmul.f32 %v9004_v24, %v6596_v0  ;;  %v9005_v55 = vrot.slane %v8998_v28, %v5062_v7  ;;  %v9006_v52 = vrot.slane %v8998_v28, %v5072_v14  ;;  %v4670_v43 = vsel %vm4606_vm13, %v4076_v25, 0.0 }
 0x19e   : > { %v1777_v42 = vadd.f32 %v1713_v29, %v1393_v63  ;;  %v3695_v21 = vadd.f32 %v3631_v45, %v3311_v49  ;;  %v2926_v50 = vadd.f32 %v2862_v19, %v2542_v1  ;;  %v9008_v44 = vrot.slane %v9007_v51, %v5060_v5  ;;  %4735 = vst.msk [vmem:[%s6647_s22 + $0x90] sm:$0xff] %vm4716_vm8, %v4670_v43 }
 0x19f   : > { %v2481_v12 = vmul.f32 %v9005_v55, %v6520_v22  ;;  %v2865_v57 = vmul.f32 %v9006_v52, %v6562_v11  ;;  %v9009_v30 = vrot.slane %v8998_v28, %v5070_v13  ;;  %v9010_v33 = vrot.slane %v9007_v51, %v5064_v8 }
 0x1a0   : > { %v1392_v58 = vmul.f32 %v9008_v44, %v6472_v54  ;;  %v2161_v27 = vadd.f32 %v2097_v56, %v1777_v42  ;;  %v9011_v47 = vrot.slane %v9007_v51, %v5058_v4  ;;  %v4079_v60 = vadd.f32 %v4015_v37, %v3695_v21 }
 0x1a1   : > { %v3249_v17 = vmul.f32 %v9009_v30, %v6560_v62  ;;  %v1712_v45 = vmul.f32 %v9010_v33, %v6470_v23  ;;  %v3310_v19 = vadd.f32 %v3246_v59, %v2926_v50  ;;  %v9012_v34 = vrot.slane %v8998_v28, %v5078_v18 }
 0x1a2   : > { %v2096_v38 = vmul.f32 %v9011_v47, %v6522_v3  ;;  %v9013_v61 = vrot.slane %v8998_v28, %v5074_v15  ;;  %v2545_v41 = vadd.f32 %v2481_v12, %v2161_v27  ;;  %vm4611_vm0 = vcmp.gt.f32.partialorder %v4307_v36, 0.0  ;;  %v9024_v47 = vld [vmem:[#allocation4_spill] sm:$0xff] }
 0x1a3   : > { %v3633_v63 = vmul.f32 %v9012_v34, %v6598_v20  ;;  %v1776_v31 = vadd.f32 %v1712_v45, %v1392_v58  ;;  %v9014_v39 = vrot.slane %v9007_v51, %v5062_v7  ;;  %v4673_v37 = vsel %vm4609_vm14, %v4079_v60, 0.0  ;;  %v4321_v60 = vpop.permute.xlu1 %4320 }
 0x1a4   : > { %v4017_v32 = vmul.f32 %v9013_v61, %v6596_v0  ;;  %v3694_v59 = vadd.f32 %v3630_v48, %v3310_v19  ;;  %v9015_v29 = vrot.slane %v9007_v51, %v5072_v14  ;;  %v9016_v28 = vrot.slane %v5744_v2, %v5060_v5  ;;  %4738 = vst.msk [vmem:[%s6647_s22 + $0xa8] sm:$0xff] %vm4716_vm8, %v4673_v37 }
 0x1a5   : > { %v2480_v53 = vmul.f32 %v9014_v39, %v6520_v22  ;;  %v2929_v25 = vadd.f32 %v2865_v57, %v2545_v41  ;;  %v2160_v49 = vadd.f32 %v2096_v38, %v1776_v31  ;;  %v9017_v35 = vrot.slane %v5744_v2, %v5064_v8 }
 0x1a6   : > { %v2864_v6 = vmul.f32 %v9015_v29, %v6562_v11  ;;  %v1395_v56 = vmul.f32 %v9016_v28, %v6472_v54  ;;  %v9018_v1 = vrot.slane %v5744_v2, %v5058_v4  ;;  %v4078_v42 = vadd.f32 %v4014_v26, %v3694_v59 }
 0x1a7   : > { %v1715_v48 = vmul.f32 %v9017_v35, %v6470_v23  ;;  %v9019_v55 = vrot.slane %v9007_v51, %v5070_v13  ;;  %v9020_v52 = vrot.slane %v9007_v51, %v5078_v18  ;;  %v9021_v43 = vrot.slane %v9007_v51, %v5074_v15 }
 0x1a8   : > { %v2099_v24 = vmul.f32 %v9018_v1, %v6522_v3  ;;  %v3313_v50 = vadd.f32 %v3249_v17, %v2929_v25  ;;  %v2544_v44 = vadd.f32 %v2480_v53, %v2160_v49  ;;  %vm4610_vm1 = vcmp.gt.f32.partialorder %v4300_v40, 0.0  ;;  %v9033_v1 = vld [vmem:[#allocation5_spill] sm:$0xff] }
 0x1a9   : > { %v3248_v12 = vmul.f32 %v9019_v55, %v6560_v62  ;;  %v3632_v57 = vmul.f32 %v9020_v52, %v6598_v20  ;;  %v4016_v21 = vmul.f32 %v9021_v43, %v6596_v0  ;;  %v1779_v58 = vadd.f32 %v1715_v48, %v1395_v56  ;;  %v4314_v52 = vpop.permute.xlu0 %4313 }
 0x1aa   : > { %v4672_v26 = vsel %vm4608_vm15, %v4078_v42, 0.0  ;;  %v9022_v27 = vrot.slane %v5744_v2, %v5062_v7  ;;  %v9023_v33 = vrot.slane %v5744_v2, %v5072_v14  ;;  %v9025_v51 = vrot.slane %v9024_v47, %v5060_v5 }
 0x1ab   : > { %4737 = vst.msk [vmem:[%s6647_s22 + $0xa0] sm:$0xff] %vm4716_vm8, %v4672_v26  ;;  %v3697_v38 = vadd.f32 %v3633_v63, %v3313_v50  ;;  %v2928_v16 = vadd.f32 %v2864_v6, %v2544_v44  ;;  %v2163_v19 = vadd.f32 %v2099_v24, %v1779_v58  ;;  %v9026_v34 = vrot.slane %v9024_v47, %v5064_v8 }
 0x1ac   : > { %v2483_v30 = vmul.f32 %v9022_v27, %v6520_v22  ;;  %v2867_v45 = vmul.f32 %v9023_v33, %v6562_v11  ;;  %v1394_v17 = vmul.f32 %v9025_v51, %v6472_v54  ;;  %v9027_v41 = vrot.slane %v5744_v2, %v5070_v13 }
 0x1ad   : > { %v1714_v61 = vmul.f32 %v9026_v34, %v6470_v23  ;;  %v9028_v39 = vrot.slane %v5744_v2, %v5078_v18  ;;  %v9029_v63 = vrot.slane %v5744_v2, %v5074_v15  ;;  %v9030_v59 = vrot.slane %v9024_v47, %v5058_v4 }
 0x1ae   : > { %v3251_v31 = vmul.f32 %v9027_v41, %v6560_v62  ;;  %v4081_v6 = vadd.f32 %v4017_v32, %v3697_v38  ;;  %v3312_v28 = vadd.f32 %v3248_v12, %v2928_v16  ;;  %v2547_v56 = vadd.f32 %v2483_v30, %v2163_v19 }
 0x1af   : > { %v3635_v53 = vmul.f32 %v9028_v39, %v6598_v20  ;;  %v4019_v37 = vmul.f32 %v9029_v63, %v6596_v0  ;;  %v2098_v29 = vmul.f32 %v9030_v59, %v6522_v3  ;;  %v1778_v25 = vadd.f32 %v1714_v61, %v1394_v17  ;;  %v4335_v63 = vpop.permute.xlu1 %4334 }
 0x1b0   : > { %vm4613_vm2 = vcmp.gt.f32.partialorder %v4321_v60, 0.0  ;;  %v9031_v49 = vrot.slane %v9024_v47, %v5062_v7  ;;  %v9032_v2 = vrot.slane %v9024_v47, %v5072_v14  ;;  %v9034_v24 = vrot.slane %v9033_v1, %v5060_v5 }
 0x1b1   : > { %v4675_v32 = vsel %vm4611_vm0, %v4081_v6, 0.0  ;;  %v3696_v55 = vadd.f32 %v3632_v57, %v3312_v28  ;;  %v2931_v12 = vadd.f32 %v2867_v45, %v2547_v56  ;;  %v2162_v43 = vadd.f32 %v2098_v29, %v1778_v25 }
 0x1b2   : > { %v2482_v35 = vmul.f32 %v9031_v49, %v6520_v22  ;;  %v2866_v48 = vmul.f32 %v9032_v2, %v6562_v11  ;;  %v1397_v42 = vmul.f32 %v9034_v24, %v6472_v54  ;;  %4740 = vst.msk [vmem:[%s6647_s22 + $0xb8] sm:$0xff] %vm4716_vm8, %v4675_v32  ;;  %v9035_v50 = vrot.slane %v9024_v47, %v5070_v13 }
 0x1b3   : > { %v9036_v58 = vrot.slane %v9024_v47, %v5078_v18  ;;  %v9037_v36 = vrot.slane %v9033_v1, %v5064_v8  ;;  %v9038_v27 = vrot.slane %v9033_v1, %v5058_v4  ;;  %v4080_v33 = vadd.f32 %v4016_v21, %v3696_v55 }
 0x1b4   : > { %v3250_v44 = vmul.f32 %v9035_v50, %v6560_v62  ;;  %v3315_v45 = vadd.f32 %v3251_v31, %v2931_v12  ;;  %v2546_v51 = vadd.f32 %v2482_v35, %v2162_v43  ;;  %v9039_v17 = vrot.slane %v9024_v47, %v5074_v15  ;;  %v9042_v47 = vld [vmem:[#allocation6_spill] sm:$0xff] }
 0x1b5   : > { %v3634_v26 = vmul.f32 %v9036_v58, %v6598_v20  ;;  %v1717_v57 = vmul.f32 %v9037_v36, %v6470_v23  ;;  %v2101_v30 = vmul.f32 %v9038_v27, %v6522_v3  ;;  %vm4612_vm3 = vcmp.gt.f32.partialorder %v4314_v52, 0.0  ;;  %v4328_v58 = vpop.permute.xlu0 %4327 }
 0x1b6   : > { %v4018_v38 = vmul.f32 %v9039_v17, %v6596_v0  ;;  %v9040_v19 = vrot.slane %v9033_v1, %v5062_v7  ;;  %v9041_v61 = vrot.slane %v9033_v1, %v5072_v14  ;;  %v4674_v21 = vsel %vm4610_vm1, %v4080_v33, 0.0 }
 0x1b7   : > { %v1781_v16 = vadd.f32 %v1717_v57, %v1397_v42  ;;  %v3699_v31 = vadd.f32 %v3635_v53, %v3315_v45  ;;  %v2930_v39 = vadd.f32 %v2866_v48, %v2546_v51  ;;  %v9043_v59 = vrot.slane %v9042_v47, %v5060_v5  ;;  %4739 = vst.msk [vmem:[%s6647_s22 + $0xb0] sm:$0xff] %vm4716_vm8, %v4674_v21 }
 0x1b8   : > { %v2485_v34 = vmul.f32 %v9040_v19, %v6520_v22  ;;  %v2869_v41 = vmul.f32 %v9041_v61, %v6562_v11  ;;  %v9044_v28 = vrot.slane %v9033_v1, %v5070_v13  ;;  %v9045_v40 = vrot.slane %v9042_v47, %v5064_v8 }
 0x1b9   : > { %v1396_v29 = vmul.f32 %v9043_v59, %v6472_v54  ;;  %v2165_v6 = vadd.f32 %v2101_v30, %v1781_v16  ;;  %v9046_v25 = vrot.slane %v9042_v47, %v5058_v4  ;;  %v4083_v35 = vadd.f32 %v4019_v37, %v3699_v31 }
 0x1ba   : > { %v3253_v56 = vmul.f32 %v9044_v28, %v6560_v62  ;;  %v1716_v53 = vmul.f32 %v9045_v40, %v6470_v23  ;;  %v3314_v2 = vadd.f32 %v3250_v44, %v2930_v39  ;;  %v9047_v48 = vrot.slane %v9033_v1, %v5078_v18 }
 0x1bb   : > { %v2100_v49 = vmul.f32 %v9046_v25, %v6522_v3  ;;  %v9048_v42 = vrot.slane %v9033_v1, %v5074_v15  ;;  %v2549_v55 = vadd.f32 %v2485_v34, %v2165_v6  ;;  %vm4615_vm4 = vcmp.gt.f32.partialorder %v4335_v63, 0.0  ;;  %v9051_v1 = vld [vmem:[#allocation7_spill] sm:$0xff]  ;;  %v9060_v25 = vld [vmem:[#allocation8_spill] sm:$0xff] }
 0x1bc   : > { %v3637_v24 = vmul.f32 %v9047_v48, %v6598_v20  ;;  %v1780_v12 = vadd.f32 %v1716_v53, %v1396_v29  ;;  %v9049_v43 = vrot.slane %v9042_v47, %v5062_v7  ;;  %v4677_v37 = vsel %vm4613_vm2, %v4083_v35, 0.0  ;;  %v4349_v35 = vpop.permute.xlu1 %4348 }
 0x1bd   : > { %v4021_v32 = vmul.f32 %v9048_v42, %v6596_v0  ;;  %v3698_v44 = vadd.f32 %v3634_v26, %v3314_v2  ;;  %v9050_v36 = vrot.slane %v9042_v47, %v5072_v14  ;;  %v9052_v27 = vrot.slane %v9051_v1, %v5060_v5  ;;  %4742 = vst.msk [vmem:[%s6647_s22 + $0xc8] sm:$0xff] %vm4716_vm8, %v4677_v37 }
 0x1be   : > { %v2484_v50 = vmul.f32 %v9049_v43, %v6520_v22  ;;  %v2933_v33 = vadd.f32 %v2869_v41, %v2549_v55  ;;  %v2164_v45 = vadd.f32 %v2100_v49, %v1780_v12  ;;  %v9053_v60 = vrot.slane %v9051_v1, %v5064_v8 }
 0x1bf   : > { %v2868_v57 = vmul.f32 %v9050_v36, %v6562_v11  ;;  %v1399_v30 = vmul.f32 %v9052_v27, %v6472_v54  ;;  %v9054_v51 = vrot.slane %v9051_v1, %v5058_v4  ;;  %v4082_v16 = vadd.f32 %v4018_v38, %v3698_v44 }
 0x1c0   : > { %v1719_v26 = vmul.f32 %v9053_v60, %v6470_v23  ;;  %v9055_v19 = vrot.slane %v9042_v47, %v5070_v13  ;;  %v9056_v61 = vrot.slane %v9042_v47, %v5078_v18  ;;  %v9057_v21 = vrot.slane %v9042_v47, %v5074_v15 }
 0x1c1   : > { %v2103_v17 = vmul.f32 %v9054_v51, %v6522_v3  ;;  %v3317_v39 = vadd.f32 %v3253_v56, %v2933_v33  ;;  %v2548_v59 = vadd.f32 %v2484_v50, %v2164_v45  ;;  %vm4614_vm5 = vcmp.gt.f32.partialorder %v4328_v58, 0.0  ;;  %v9069_v51 = vld [vmem:[#allocation9_spill] sm:$0xff] }
 0x1c2   : > { %v3252_v34 = vmul.f32 %v9055_v19, %v6560_v62  ;;  %v3636_v41 = vmul.f32 %v9056_v61, %v6598_v20  ;;  %v4020_v31 = vmul.f32 %v9057_v21, %v6596_v0  ;;  %v1783_v29 = vadd.f32 %v1719_v26, %v1399_v30  ;;  %v4342_v61 = vpop.permute.xlu0 %4341 }
 0x1c3   : > { %v4676_v38 = vsel %vm4612_vm3, %v4082_v16, 0.0  ;;  %v9058_v6 = vrot.slane %v9051_v1, %v5062_v7  ;;  %v9059_v40 = vrot.slane %v9051_v1, %v5072_v14  ;;  %v9061_v47 = vrot.slane %v9060_v25, %v5060_v5 }
 0x1c4   : > { %4741 = vst.msk [vmem:[%s6647_s22 + $0xc0] sm:$0xff] %vm4716_vm8, %v4676_v38  ;;  %v3701_v49 = vadd.f32 %v3637_v24, %v3317_v39  ;;  %v2932_v52 = vadd.f32 %v2868_v57, %v2548_v59  ;;  %v2167_v2 = vadd.f32 %v2103_v17, %v1783_v29  ;;  %v9062_v48 = vrot.slane %v9060_v25, %v5064_v8 }
 0x1c5   : > { %v2487_v28 = vmul.f32 %v9058_v6, %v6520_v22  ;;  %v2871_v53 = vmul.f32 %v9059_v40, %v6562_v11  ;;  %v1398_v56 = vmul.f32 %v9061_v47, %v6472_v54  ;;  %v9063_v55 = vrot.slane %v9051_v1, %v5070_v13 }
 0x1c6   : > { %v1718_v42 = vmul.f32 %v9062_v48, %v6470_v23  ;;  %v9064_v43 = vrot.slane %v9051_v1, %v5078_v18  ;;  %v9065_v24 = vrot.slane %v9051_v1, %v5074_v15  ;;  %v9066_v44 = vrot.slane %v9060_v25, %v5058_v4 }
 0x1c7   : > { %v3255_v12 = vmul.f32 %v9063_v55, %v6560_v62  ;;  %v4085_v57 = vadd.f32 %v4021_v32, %v3701_v49  ;;  %v3316_v27 = vadd.f32 %v3252_v34, %v2932_v52  ;;  %v2551_v30 = vadd.f32 %v2487_v28, %v2167_v2 }
 0x1c8   : > { %v3639_v50 = vmul.f32 %v9064_v43, %v6598_v20  ;;  %v4023_v37 = vmul.f32 %v9065_v24, %v6596_v0  ;;  %v2102_v36 = vmul.f32 %v9066_v44, %v6522_v3  ;;  %v1782_v33 = vadd.f32 %v1718_v42, %v1398_v56  ;;  %v4363_v24 = vpop.permute.xlu1 %4362 }
 0x1c9   : > { %vm4617_vm6 = vcmp.gt.f32.partialorder %v4349_v35, 0.0  ;;  %v9067_v45 = vrot.slane %v9060_v25, %v5062_v7  ;;  %v9068_v1 = vrot.slane %v9060_v25, %v5072_v14  ;;  %v9070_v17 = vrot.slane %v9069_v51, %v5060_v5 }
 0x1ca   : > { %v4679_v32 = vsel %vm4615_vm4, %v4085_v57, 0.0  ;;  %v3700_v19 = vadd.f32 %v3636_v41, %v3316_v27  ;;  %v2935_v34 = vadd.f32 %v2871_v53, %v2551_v30  ;;  %v2166_v21 = vadd.f32 %v2102_v36, %v1782_v33 }
 0x1cb   : > { %v2486_v60 = vmul.f32 %v9067_v45, %v6520_v22  ;;  %v2870_v26 = vmul.f32 %v9068_v1, %v6562_v11  ;;  %v1401_v16 = vmul.f32 %v9070_v17, %v6472_v54  ;;  %4744 = vst.msk [vmem:[%s6647_s22 + $0xd8] sm:$0xff] %vm4716_vm8, %v4679_v32  ;;  %v9071_v39 = vrot.slane %v9060_v25, %v5070_v13 }
 0x1cc   : > { %v9072_v29 = vrot.slane %v9060_v25, %v5078_v18  ;;  %v9073_v63 = vrot.slane %v9069_v51, %v5064_v8  ;;  %v9074_v6 = vrot.slane %v9069_v51, %v5058_v4  ;;  %v4084_v40 = vadd.f32 %v4020_v31, %v3700_v19 }
 0x1cd   : > { %v3254_v59 = vmul.f32 %v9071_v39, %v6560_v62  ;;  %v3319_v53 = vadd.f32 %v3255_v12, %v2935_v34  ;;  %v2550_v47 = vadd.f32 %v2486_v60, %v2166_v21  ;;  %v9075_v56 = vrot.slane %v9060_v25, %v5074_v15  ;;  %v9078_v25 = vld [vmem:[#allocation10_spill] sm:$0xff] }
 0x1ce   : > { %v3638_v38 = vmul.f32 %v9072_v29, %v6598_v20  ;;  %v1721_v41 = vmul.f32 %v9073_v63, %v6470_v23  ;;  %v2105_v28 = vmul.f32 %v9074_v6, %v6522_v3  ;;  %vm4616_vm7 = vcmp.gt.f32.partialorder %v4342_v61, 0.0  ;;  %v4356_v29 = vpop.permute.xlu0 %4355 }
 0x1cf   : > { %v4022_v49 = vmul.f32 %v9075_v56, %v6596_v0  ;;  %v9076_v2 = vrot.slane %v9069_v51, %v5062_v7  ;;  %v9077_v42 = vrot.slane %v9069_v51, %v5072_v14  ;;  %v4678_v31 = vsel %vm4614_vm5, %v4084_v40, 0.0 }
 0x1d0   : > { %v1785_v52 = vadd.f32 %v1721_v41, %v1401_v16  ;;  %v3703_v12 = vadd.f32 %v3639_v50, %v3319_v53  ;;  %v2934_v43 = vadd.f32 %v2870_v26, %v2550_v47  ;;  %v9079_v44 = vrot.slane %v9078_v25, %v5060_v5  ;;  %4743 = vst.msk [vmem:[%s6647_s22 + $0xd0] sm:$0xff] %vm4716_vm8, %v4678_v31 }
 0x1d1   : > { %v2489_v48 = vmul.f32 %v9076_v2, %v6520_v22  ;;  %v2873_v55 = vmul.f32 %v9077_v42, %v6562_v11  ;;  %v9080_v27 = vrot.slane %v9069_v51, %v5070_v13  ;;  %v9081_v58 = vrot.slane %v9078_v25, %v5064_v8 }
 0x1d2   : > { %v1400_v36 = vmul.f32 %v9079_v44, %v6472_v54  ;;  %v2169_v57 = vadd.f32 %v2105_v28, %v1785_v52  ;;  %v9082_v33 = vrot.slane %v9078_v25, %v5058_v4  ;;  %v4087_v60 = vadd.f32 %v4023_v37, %v3703_v12 }
 0x1d3   : > { %v3257_v30 = vmul.f32 %v9080_v27, %v6560_v62  ;;  %v1720_v50 = vmul.f32 %v9081_v58, %v6470_v23  ;;  %v3318_v1 = vadd.f32 %v3254_v59, %v2934_v43  ;;  %v9083_v26 = vrot.slane %v9069_v51, %v5078_v18 }
 0x1d4   : > { %v2104_v45 = vmul.f32 %v9082_v33, %v6522_v3  ;;  %v9084_v16 = vrot.slane %v9069_v51, %v5074_v15  ;;  %v2553_v19 = vadd.f32 %v2489_v48, %v2169_v57  ;;  %vm4619_vm9 = vcmp.gt.f32.partialorder %v4363_v24, 0.0  ;;  %v9087_v51 = vld [vmem:[#allocation11_spill] sm:$0xff]  ;;  %v9096_v33 = vld [vmem:[#allocation12_spill] sm:$0xff] }
 0x1d5   : > { %v3641_v17 = vmul.f32 %v9083_v26, %v6598_v20  ;;  %v1784_v34 = vadd.f32 %v1720_v50, %v1400_v36  ;;  %v9085_v21 = vrot.slane %v9078_v25, %v5062_v7  ;;  %v4681_v37 = vsel %vm4617_vm6, %v4087_v60, 0.0  ;;  %v4377_v60 = vpop.permute.xlu1 %4376 }
 0x1d6   : > { %v4025_v32 = vmul.f32 %v9084_v16, %v6596_v0  ;;  %v3702_v59 = vadd.f32 %v3638_v38, %v3318_v1  ;;  %v9086_v63 = vrot.slane %v9078_v25, %v5072_v14  ;;  %v9088_v6 = vrot.slane %v9087_v51, %v5060_v5  ;;  %4746 = vst.msk [vmem:[%s6647_s22 + $0xe8] sm:$0xff] %vm4716_vm8, %v4681_v37 }
 0x1d7   : > { %v2488_v39 = vmul.f32 %v9085_v21, %v6520_v22  ;;  %v2937_v40 = vadd.f32 %v2873_v55, %v2553_v19  ;;  %v2168_v53 = vadd.f32 %v2104_v45, %v1784_v34  ;;  %v9089_v35 = vrot.slane %v9087_v51, %v5064_v8 }
 0x1d8   : > { %v2872_v41 = vmul.f32 %v9086_v63, %v6562_v11  ;;  %v1403_v28 = vmul.f32 %v9088_v6, %v6472_v54  ;;  %v9090_v47 = vrot.slane %v9087_v51, %v5058_v4  ;;  %v4086_v52 = vadd.f32 %v4022_v49, %v3702_v59 }
 0x1d9   : > { %v1723_v38 = vmul.f32 %v9089_v35, %v6470_v23  ;;  %v9091_v2 = vrot.slane %v9078_v25, %v5070_v13  ;;  %v9092_v42 = vrot.slane %v9078_v25, %v5078_v18  ;;  %v9093_v31 = vrot.slane %v9078_v25, %v5074_v15 }
 0x1da   : > { %v2107_v56 = vmul.f32 %v9090_v47, %v6522_v3  ;;  %v3321_v43 = vadd.f32 %v3257_v30, %v2937_v40  ;;  %v2552_v44 = vadd.f32 %v2488_v39, %v2168_v53  ;;  %vm4618_vm10 = vcmp.gt.f32.partialorder %v4356_v29, 0.0  ;;  %v9105_v47 = vld [vmem:[#allocation13_spill] sm:$0xff] }
 0x1db   : > { %v3256_v48 = vmul.f32 %v9091_v2, %v6560_v62  ;;  %v3640_v55 = vmul.f32 %v9092_v42, %v6598_v20  ;;  %v4024_v12 = vmul.f32 %v9093_v31, %v6596_v0  ;;  %v1787_v36 = vadd.f32 %v1723_v38, %v1403_v28  ;;  %v4370_v42 = vpop.permute.xlu0 %4369 }
 0x1dc   : > { %v4680_v49 = vsel %vm4616_vm7, %v4086_v52, 0.0  ;;  %v9094_v57 = vrot.slane %v9087_v51, %v5062_v7  ;;  %v9095_v58 = vrot.slane %v9087_v51, %v5072_v14  ;;  %v9097_v25 = vrot.slane %v9096_v33, %v5060_v5 }
 0x1dd   : > { %4745 = vst.msk [vmem:[%s6647_s22 + $0xe0] sm:$0xff] %vm4716_vm8, %v4680_v49  ;;  %v3705_v45 = vadd.f32 %v3641_v17, %v3321_v43  ;;  %v2936_v61 = vadd.f32 %v2872_v41, %v2552_v44  ;;  %v2171_v1 = vadd.f32 %v2107_v56, %v1787_v36  ;;  %v9098_v26 = vrot.slane %v9096_v33, %v5064_v8 }
 0x1de   : > { %v2491_v27 = vmul.f32 %v9094_v57, %v6520_v22  ;;  %v2875_v50 = vmul.f32 %v9095_v58, %v6562_v11  ;;  %v1402_v30 = vmul.f32 %v9097_v25, %v6472_v54  ;;  %v9099_v19 = vrot.slane %v9087_v51, %v5070_v13 }
 0x1df   : > { %v1722_v16 = vmul.f32 %v9098_v26, %v6470_v23  ;;  %v9100_v21 = vrot.slane %v9087_v51, %v5078_v18  ;;  %v9101_v17 = vrot.slane %v9087_v51, %v5074_v15  ;;  %v9102_v59 = vrot.slane %v9096_v33, %v5058_v4 }
 0x1e0   : > { %v3259_v34 = vmul.f32 %v9099_v19, %v6560_v62  ;;  %v4089_v41 = vadd.f32 %v4025_v32, %v3705_v45  ;;  %v3320_v6 = vadd.f32 %v3256_v48, %v2936_v61  ;;  %v2555_v28 = vadd.f32 %v2491_v27, %v2171_v1 }
 0x1e1   : > { %v3643_v39 = vmul.f32 %v9100_v21, %v6598_v20  ;;  %v4027_v37 = vmul.f32 %v9101_v17, %v6596_v0  ;;  %v2106_v63 = vmul.f32 %v9102_v59, %v6522_v3  ;;  %v1786_v40 = vadd.f32 %v1722_v16, %v1402_v30  ;;  %v4391_v17 = vpop.permute.xlu1 %4390 }
 0x1e2   : > { %vm4621_vm11 = vcmp.gt.f32.partialorder %v4377_v60, 0.0  ;;  %v9103_v53 = vrot.slane %v9096_v33, %v5062_v7  ;;  %v9104_v51 = vrot.slane %v9096_v33, %v5072_v14  ;;  %v9106_v56 = vrot.slane %v9105_v47, %v5060_v5 }
 0x1e3   : > { %v4683_v32 = vsel %vm4619_vm9, %v4089_v41, 0.0  ;;  %v3704_v2 = vadd.f32 %v3640_v55, %v3320_v6  ;;  %v2939_v48 = vadd.f32 %v2875_v50, %v2555_v28  ;;  %v2170_v31 = vadd.f32 %v2106_v63, %v1786_v40 }
 0x1e4   : > { %v2490_v35 = vmul.f32 %v9103_v53, %v6520_v22  ;;  %v2874_v38 = vmul.f32 %v9104_v51, %v6562_v11  ;;  %v1405_v52 = vmul.f32 %v9106_v56, %v6472_v54  ;;  %4748 = vst.msk [vmem:[%s6647_s22 + $0xf8] sm:$0xff] %vm4716_vm8, %v4683_v32  ;;  %v9107_v43 = vrot.slane %v9096_v33, %v5070_v13 }
 0x1e5   : > { %v9108_v36 = vrot.slane %v9096_v33, %v5078_v18  ;;  %v9109_v24 = vrot.slane %v9105_v47, %v5064_v8  ;;  %v9110_v57 = vrot.slane %v9105_v47, %v5058_v4  ;;  %v4088_v58 = vadd.f32 %v4024_v12, %v3704_v2 }
 0x1e6   : > { %v3258_v44 = vmul.f32 %v9107_v43, %v6560_v62  ;;  %v3323_v50 = vadd.f32 %v3259_v34, %v2939_v48  ;;  %v2554_v25 = vadd.f32 %v2490_v35, %v2170_v31  ;;  %v9111_v30 = vrot.slane %v9096_v33, %v5074_v15  ;;  %v9114_v33 = vld [vmem:[#allocation14_spill] sm:$0xff] }
 0x1e7   : > { %v3642_v49 = vmul.f32 %v9108_v36, %v6598_v20  ;;  %v1725_v55 = vmul.f32 %v9109_v24, %v6470_v23  ;;  %v2109_v27 = vmul.f32 %v9110_v57, %v6522_v3  ;;  %vm4620_vm12 = vcmp.gt.f32.partialorder %v4370_v42, 0.0  ;;  %v4384_v36 = vpop.permute.xlu0 %4383 }
 0x1e8   : > { %v4026_v45 = vmul.f32 %v9111_v30, %v6596_v0  ;;  %v9112_v1 = vrot.slane %v9105_v47, %v5062_v7  ;;  %v9113_v16 = vrot.slane %v9105_v47, %v5072_v14  ;;  %v4682_v12 = vsel %vm4618_vm10, %v4088_v58, 0.0 }
 0x1e9   : > { %v1789_v61 = vadd.f32 %v1725_v55, %v1405_v52  ;;  %v3707_v34 = vadd.f32 %v3643_v39, %v3323_v50  ;;  %v2938_v21 = vadd.f32 %v2874_v38, %v2554_v25  ;;  %v9115_v59 = vrot.slane %v9114_v33, %v5060_v5  ;;  %4747 = vst.msk [vmem:[%s6647_s22 + $0xf0] sm:$0xff] %vm4716_vm8, %v4682_v12 }
 0x1ea   : > { %v2493_v26 = vmul.f32 %v9112_v1, %v6520_v22  ;;  %v2877_v19 = vmul.f32 %v9113_v16, %v6562_v11  ;;  %v9116_v6 = vrot.slane %v9105_v47, %v5070_v13  ;;  %v9117_v29 = vrot.slane %v9114_v33, %v5064_v8 }
 0x1eb   : > { %v1404_v63 = vmul.f32 %v9115_v59, %v6472_v54  ;;  %v2173_v41 = vadd.f32 %v2109_v27, %v1789_v61  ;;  %v9118_v40 = vrot.slane %v9114_v33, %v5058_v4  ;;  %v4091_v35 = vadd.f32 %v4027_v37, %v3707_v34 }
 0x1ec   : > { %v3261_v28 = vmul.f32 %v9116_v6, %v6560_v62  ;;  %v1724_v39 = vmul.f32 %v9117_v29, %v6470_v23  ;;  %v3322_v51 = vadd.f32 %v3258_v44, %v2938_v21  ;;  %v9119_v38 = vrot.slane %v9105_v47, %v5078_v18 }
 0x1ed   : > { %v2108_v53 = vmul.f32 %v9118_v40, %v6522_v3  ;;  %v9120_v52 = vrot.slane %v9105_v47, %v5074_v15  ;;  %v2557_v2 = vadd.f32 %v2493_v26, %v2173_v41  ;;  %vm4623_vm13 = vcmp.gt.f32.partialorder %v4391_v17, 0.0  ;;  %v9123_v47 = vld [vmem:[#allocation15_spill] sm:$0xff]  ;;  %v9132_v40 = vld [vmem:[#allocation16_spill] sm:$0xff] }
 0x1ee   : > { %v3645_v56 = vmul.f32 %v9119_v38, %v6598_v20  ;;  %v1788_v48 = vadd.f32 %v1724_v39, %v1404_v63  ;;  %v9121_v31 = vrot.slane %v9114_v33, %v5062_v7  ;;  %v4685_v37 = vsel %vm4621_vm11, %v4091_v35, 0.0  ;;  %v4405_v35 = vpop.permute.xlu1 %4404 }
 0x1ef   : > { %v4029_v32 = vmul.f32 %v9120_v52, %v6596_v0  ;;  %v3706_v44 = vadd.f32 %v3642_v49, %v3322_v51  ;;  %v9122_v24 = vrot.slane %v9114_v33, %v5072_v14  ;;  %v9124_v57 = vrot.slane %v9123_v47, %v5060_v5  ;;  %4750 = vst.msk [vmem:[%s6647_s22 + $0x108] sm:$0xff] %vm4716_vm8, %v4685_v37 }
 0x1f0   : > { %v2492_v43 = vmul.f32 %v9121_v31, %v6520_v22  ;;  %v2941_v58 = vadd.f32 %v2877_v19, %v2557_v2  ;;  %v2172_v50 = vadd.f32 %v2108_v53, %v1788_v48  ;;  %v9125_v60 = vrot.slane %v9123_v47, %v5064_v8 }
 0x1f1   : > { %v2876_v55 = vmul.f32 %v9122_v24, %v6562_v11  ;;  %v1407_v27 = vmul.f32 %v9124_v57, %v6472_v54  ;;  %v9126_v25 = vrot.slane %v9123_v47, %v5058_v4  ;;  %v4090_v61 = vadd.f32 %v4026_v45, %v3706_v44 }
 0x1f2   : > { %v1727_v49 = vmul.f32 %v9125_v60, %v6470_v23  ;;  %v9127_v1 = vrot.slane %v9114_v33, %v5070_v13  ;;  %v9128_v16 = vrot.slane %v9114_v33, %v5078_v18  ;;  %v9129_v12 = vrot.slane %v9114_v33, %v5074_v15 }
 0x1f3   : > { %v2111_v30 = vmul.f32 %v9126_v25, %v6522_v3  ;;  %v3325_v21 = vadd.f32 %v3261_v28, %v2941_v58  ;;  %v2556_v59 = vadd.f32 %v2492_v43, %v2172_v50  ;;  %vm4622_vm14 = vcmp.gt.f32.partialorder %v4384_v36, 0.0  ;;  %v9141_v25 = vld [vmem:[#allocation17_spill] sm:$0xff] }
 0x1f4   : > { %v3260_v26 = vmul.f32 %v9127_v1, %v6560_v62  ;;  %v3644_v19 = vmul.f32 %v9128_v16, %v6598_v20  ;;  %v4028_v34 = vmul.f32 %v9129_v12, %v6596_v0  ;;  %v1791_v63 = vadd.f32 %v1727_v49, %v1407_v27  ;;  %v4398_v16 = vpop.permute.xlu0 %4397 }
 0x1f5   : > { %v4684_v45 = vsel %vm4620_vm12, %v4090_v61, 0.0  ;;  %v9130_v41 = vrot.slane %v9123_v47, %v5062_v7  ;;  %v9131_v29 = vrot.slane %v9123_v47, %v5072_v14  ;;  %v9133_v33 = vrot.slane %v9132_v40, %v5060_v5 }
 0x1f6   : > { %4749 = vst.msk [vmem:[%s6647_s22 + $0x100] sm:$0xff] %vm4716_vm8, %v4684_v45  ;;  %v3709_v53 = vadd.f32 %v3645_v56, %v3325_v21  ;;  %v2940_v42 = vadd.f32 %v2876_v55, %v2556_v59  ;;  %v2175_v51 = vadd.f32 %v2111_v30, %v1791_v63  ;;  %v9134_v38 = vrot.slane %v9132_v40, %v5064_v8 }
 0x1f7   : > { %v2495_v6 = vmul.f32 %v9130_v41, %v6520_v22  ;;  %v2879_v39 = vmul.f32 %v9131_v29, %v6562_v11  ;;  %v1406_v28 = vmul.f32 %v9133_v33, %v6472_v54  ;;  %v9135_v2 = vrot.slane %v9123_v47, %v5070_v13 }
 0x1f8   : > { %v1726_v52 = vmul.f32 %v9134_v38, %v6470_v23  ;;  %v9136_v31 = vrot.slane %v9123_v47, %v5078_v18  ;;  %v9137_v56 = vrot.slane %v9123_v47, %v5074_v15  ;;  %v9138_v44 = vrot.slane %v9132_v40, %v5058_v4 }
 0x1f9   : > { %v3263_v48 = vmul.f32 %v9135_v2, %v6560_v62  ;;  %v4093_v55 = vadd.f32 %v4029_v32, %v3709_v53  ;;  %v3324_v57 = vadd.f32 %v3260_v26, %v2940_v42  ;;  %v2559_v27 = vadd.f32 %v2495_v6, %v2175_v51 }
 0x1fa   : > { %v3647_v43 = vmul.f32 %v9136_v31, %v6598_v20  ;;  %v4031_v37 = vmul.f32 %v9137_v56, %v6596_v0  ;;  %v2110_v24 = vmul.f32 %v9138_v44, %v6522_v3  ;;  %v1790_v58 = vadd.f32 %v1726_v52, %v1406_v28  ;;  %v4419_v56 = vpop.permute.xlu1 %4418 }
 0x1fb   : > { %vm4625_vm15 = vcmp.gt.f32.partialorder %v4405_v35, 0.0  ;;  %v9139_v50 = vrot.slane %v9132_v40, %v5062_v7  ;;  %v9140_v47 = vrot.slane %v9132_v40, %v5072_v14  ;;  %v9142_v30 = vrot.slane %v9141_v25, %v5060_v5 }
 0x1fc   : > { %v4687_v32 = vsel %vm4623_vm13, %v4093_v55, 0.0  ;;  %v3708_v1 = vadd.f32 %v3644_v19, %v3324_v57  ;;  %v2943_v26 = vadd.f32 %v2879_v39, %v2559_v27  ;;  %v2174_v12 = vadd.f32 %v2110_v24, %v1790_v58 }
 0x1fd   : > { %v2494_v60 = vmul.f32 %v9139_v50, %v6520_v22  ;;  %v2878_v49 = vmul.f32 %v9140_v47, %v6562_v11  ;;  %v1409_v61 = vmul.f32 %v9142_v30, %v6472_v54  ;;  %4752 = vst.msk [vmem:[%s6647_s22 + $0x118] sm:$0xff] %vm4716_vm8, %v4687_v32  ;;  %v9143_v21 = vrot.slane %v9132_v40, %v5070_v13 }
 0x1fe   : > { %v9144_v63 = vrot.slane %v9132_v40, %v5078_v18  ;;  %v9145_v17 = vrot.slane %v9141_v25, %v5064_v8  ;;  %v9146_v41 = vrot.slane %v9141_v25, %v5058_v4  ;;  %v4092_v29 = vadd.f32 %v4028_v34, %v3708_v1 }
 0x1ff   : > { %v3262_v59 = vmul.f32 %v9143_v21, %v6560_v62  ;;  %v3327_v39 = vadd.f32 %v3263_v48, %v2943_v26  ;;  %v2558_v33 = vadd.f32 %v2494_v60, %v2174_v12  ;;  %v9147_v28 = vrot.slane %v9132_v40, %v5074_v15 }
 0x200   : > { %v3646_v45 = vmul.f32 %v9144_v63, %v6598_v20  ;;  %v1729_v19 = vmul.f32 %v9145_v17, %v6470_v23  ;;  %v2113_v6 = vmul.f32 %v9146_v41, %v6522_v3  ;;  %vm4624_vm0 = vcmp.gt.f32.partialorder %v4398_v16, 0.0 }
 0x201   : > { %v4030_v53 = vmul.f32 %v9147_v28, %v6596_v0  ;;  %v9148_v51 = vrot.slane %v9141_v25, %v5062_v7  ;;  %v9149_v52 = vrot.slane %v9141_v25, %v5072_v14  ;;  %v4686_v34 = vsel %vm4622_vm14, %v4092_v29, 0.0 }
 0x202   : > { %v1793_v42 = vadd.f32 %v1729_v19, %v1409_v61  ;;  %v3711_v48 = vadd.f32 %v3647_v43, %v3327_v39  ;;  %v2942_v31 = vadd.f32 %v2878_v49, %v2558_v33  ;;  %v9150_v40 = vrot.slane %v5998_v10, %v5060_v5  ;;  %4751 = vst.msk [vmem:[%s6647_s22 + $0x110] sm:$0xff] %vm4716_vm8, %v4686_v34 }
 0x203   : > { %v2497_v38 = vmul.f32 %v9148_v51, %v6520_v22  ;;  %v2881_v2 = vmul.f32 %v9149_v52, %v6562_v11  ;;  %v9151_v55 = vrot.slane %v9141_v25, %v5070_v13  ;;  %v9152_v36 = vrot.slane %v5998_v10, %v5064_v8 }
 0x204   : > { %v1408_v44 = vmul.f32 %v9150_v40, %v6472_v54  ;;  %v2177_v24 = vadd.f32 %v2113_v6, %v1793_v42  ;;  %v9153_v27 = vrot.slane %v5998_v10, %v5058_v4  ;;  %v4095_v50 = vadd.f32 %v4031_v37, %v3711_v48 }
 0x205   : > { %v3265_v57 = vmul.f32 %v9151_v55, %v6560_v62  ;;  %v1728_v43 = vmul.f32 %v9152_v36, %v6470_v23  ;;  %v3326_v60 = vadd.f32 %v3262_v59, %v2942_v31  ;;  %v9154_v47 = vrot.slane %v9141_v25, %v5078_v18  ;;  %v4412_v36 = vpop.permute.xlu0 %4411 }
 0x206   : > { %v2112_v58 = vmul.f32 %v9153_v27, %v6522_v3  ;;  %v9155_v30 = vrot.slane %v9141_v25, %v5074_v15  ;;  %v2561_v32 = vadd.f32 %v2497_v38, %v2177_v24  ;;  %vm4627_vm1 = vcmp.gt.f32.partialorder %v4419_v56, 0.0 }
 0x207   : > { %v3649_v49 = vmul.f32 %v9154_v47, %v6598_v20  ;;  %v1792_v1 = vadd.f32 %v1728_v43, %v1408_v44  ;;  %v9156_v26 = vrot.slane %v5998_v10, %v5062_v7  ;;  %v4689_v37 = vsel %vm4625_vm15, %v4095_v50, 0.0 }
 0x208   : > { %v4033_v61 = vmul.f32 %v9155_v30, %v6596_v0  ;;  %v3710_v21 = vadd.f32 %v3646_v45, %v3326_v60  ;;  %v9157_v59 = vrot.slane %v5998_v10, %v5072_v14  ;;  %v9158_v25 = vrot.slane %v6032_v46, %v5060_v5  ;;  %4754 = vst.msk [vmem:[%s6647_s22 + $0x128] sm:$0xff] %vm4716_vm8, %v4689_v37 }
 0x209   : > { %v2496_v12 = vmul.f32 %v9156_v26, %v6520_v22  ;;  %v2945_v19 = vadd.f32 %v2881_v2, %v2561_v32  ;;  %v2176_v41 = vadd.f32 %v2112_v58, %v1792_v1  ;;  %v9159_v35 = vrot.slane %v6032_v46, %v5064_v8 }
 0x20a   : > { %v2880_v63 = vmul.f32 %v9157_v59, %v6562_v11  ;;  %v1411_v17 = vmul.f32 %v9158_v25, %v6472_v54  ;;  %v2115_v6 = vmul.f32 %v1985_v9, %v6522_v3  ;;  %v4094_v29 = vadd.f32 %v4030_v53, %v3710_v21 }
 0x20b   : > { %v1731_v45 = vmul.f32 %v9159_v35, %v6470_v23  ;;  %v9160_v39 = vrot.slane %v5998_v10, %v5070_v13  ;;  %v9161_v28 = vrot.slane %v5998_v10, %v5078_v18  ;;  %v2369_v51 = vrot.slane %v6032_v46, %v5062_v7 }
 0x20c   : > { %v3329_v38 = vadd.f32 %v3265_v57, %v2945_v19  ;;  %v2560_v52 = vadd.f32 %v2496_v12, %v2176_v41  ;;  %v2753_v9 = vrot.slane %v6032_v46, %v5072_v14  ;;  %v4688_v53 = vsel %vm4624_vm0, %v4094_v29, 0.0 }
 0x20d   : > { %v3264_v33 = vmul.f32 %v9160_v39, %v6560_v62  ;;  %v3648_v42 = vmul.f32 %v9161_v28, %v6598_v20  ;;  %v1795_v2 = vadd.f32 %v1731_v45, %v1411_v17  ;;  %v9162_v34 = vrot.slane %v5998_v10, %v5074_v15  ;;  %4753 = vst.msk [vmem:[%s6647_s22 + $0x120] sm:$0xff] %vm4716_vm8, %v4688_v53  ;;  %v9163_v10 = vld [vmem:[#allocation18_spill] sm:$0xff]  ;;  %v9166_v17 = vld [vmem:[#allocation40_spill] sm:$0xff] }
 0x20e   : > { %v2499_v31 = vmul.f32 %v2369_v51, %v6520_v22  ;;  %v3137_v40 = vrot.slane %v6032_v46, %v5070_v13  ;;  %v3713_v44 = vadd.f32 %v3649_v49, %v3329_v38  ;;  %v2944_v24 = vadd.f32 %v2880_v63, %v2560_v52  ;;  %v4433_v63 = vpop.permute.xlu1 %4432 }
 0x20f   : > { %v4032_v48 = vmul.f32 %v9162_v34, %v6596_v0  ;;  %v2179_v55 = vadd.f32 %v2115_v6, %v1795_v2  ;;  %v2883_v57 = vmul.f32 %v2753_v9, %v6562_v11  ;;  %v3521_v43 = vrot.slane %v6032_v46, %v5078_v18 }
 0x210   : > { %v3267_v16 = vmul.f32 %v3137_v40, %v6560_v62  ;;  %v9164_v27 = vrot.slane %v9163_v10, %v5060_v5  ;;  %v9165_v50 = vrot.slane %v9163_v10, %v5064_v8  ;;  %v4097_v47 = vadd.f32 %v4033_v61, %v3713_v44 }
 0x211   : > { %v3328_v49 = vadd.f32 %v3264_v33, %v2944_v24  ;;  %v2563_v30 = vadd.f32 %v2499_v31, %v2179_v55  ;;  %v1981_v32 = vrot.slane %v9163_v10, %v5058_v4  ;;  %v3651_v1 = vmul.f32 %v3521_v43, %v6598_v20  ;;  %v4426_v33 = vpop.permute.xlu0 %4425 }
 0x212   : > { %v1410_v58 = vmul.f32 %v9164_v27, %v6472_v54  ;;  %v1730_v60 = vmul.f32 %v9165_v50, %v6470_v23  ;;  %v2365_v12 = vrot.slane %v9163_v10, %v5062_v7  ;;  %v2749_v37 = vrot.slane %v9163_v10, %v5072_v14 }
 0x213   : > { %v4691_v21 = vsel %vm4627_vm1, %v4097_v47, 0.0  ;;  %v3712_v59 = vadd.f32 %v3648_v42, %v3328_v49  ;;  %v2947_v25 = vadd.f32 %v2883_v57, %v2563_v30  ;;  %v2114_v61 = vmul.f32 %v1981_v32, %v6522_v3  ;;  %v9167_v42 = vld [vmem:[#allocation19_spill] sm:$0xff]  ;;  %v9170_v30 = vld [vmem:[#allocation20_spill] sm:$0xff] }
 0x214   : > { %v1794_v26 = vadd.f32 %v1730_v60, %v1410_v58  ;;  %v1685_v19 = vrot.slane %v9166_v17, %v5064_v8  ;;  %4756 = vst.msk [vmem:[%s6647_s22 + $0x138] sm:$0xff] %vm4716_vm8, %v4691_v21  ;;  %vm4626_vm2 = vcmp.gt.f32.partialorder %v4412_v36, 0.0  ;;  %v3905_v41 = vrot.slane %v6032_v46, %v5074_v15 }
 0x215   : > { %v2498_v35 = vmul.f32 %v2365_v12, %v6520_v22  ;;  %v4096_v45 = vadd.f32 %v4032_v48, %v3712_v59  ;;  %v3331_v56 = vadd.f32 %v3267_v16, %v2947_v25  ;;  %v2882_v29 = vmul.f32 %v2749_v37, %v6562_v11  ;;  %v4447_v37 = vpop.permute.xlu1 %4446 }
 0x216   : > { %v2178_v6 = vadd.f32 %v2114_v61, %v1794_v26  ;;  %v4035_v39 = vmul.f32 %v3905_v41, %v6596_v0  ;;  %vm4629_vm3 = vcmp.gt.f32.partialorder %v4433_v63, 0.0  ;;  %v3133_v28 = vrot.slane %v9163_v10, %v5070_v13 }
 0x217   : > { %v9168_v51 = vrot.slane %v9167_v42, %v5060_v5  ;;  %v4690_v46 = vsel %vm4626_vm2, %v4096_v45, 0.0  ;;  %v3715_v52 = vadd.f32 %v3651_v1, %v3331_v56  ;;  %v3517_v9 = vrot.slane %v9163_v10, %v5078_v18 }
 0x218   : > { %v2562_v2 = vadd.f32 %v2498_v35, %v2178_v6  ;;  %4755 = vst.msk [vmem:[%s6647_s22 + $0x130] sm:$0xff] %vm4716_vm8, %v4690_v46  ;;  %v3266_v53 = vmul.f32 %v3133_v28, %v6560_v62  ;;  %v3901_v34 = vrot.slane %v9163_v10, %v5074_v15  ;;  %v9169_v48 = vrot.slane %v9167_v42, %v5064_v8 }
 0x219   : > { %v1413_v38 = vmul.f32 %v9168_v51, %v6472_v54  ;;  %v1993_v40 = vrot.slane %v9167_v42, %v5058_v4  ;;  %v4099_v44 = vadd.f32 %v4035_v39, %v3715_v52  ;;  %v3650_v55 = vmul.f32 %v3517_v9, %v6598_v20 }
 0x21a   : > { %v1733_v31 = vmul.f32 %v9169_v48, %v6470_v23  ;;  %v2946_v24 = vadd.f32 %v2882_v29, %v2562_v2  ;;  %vm4628_vm4 = vcmp.gt.f32.partialorder %v4426_v33, 0.0  ;;  %v2377_v16 = vrot.slane %v9167_v42, %v5062_v7 }
 0x21b   : > { %v2117_v36 = vmul.f32 %v1993_v40, %v6522_v3  ;;  %v2761_v43 = vrot.slane %v9167_v42, %v5072_v14  ;;  %v4693_v10 = vsel %vm4629_vm3, %v4099_v44, 0.0  ;;  %v3145_v58 = vrot.slane %v9167_v42, %v5070_v13  ;;  %v4440_v44 = vpop.permute.xlu0 %4439 }
 0x21c   : > { %v1797_v57 = vadd.f32 %v1733_v31, %v1413_v38  ;;  %v3330_v27 = vadd.f32 %v3266_v53, %v2946_v24  ;;  %v3529_v50 = vrot.slane %v9167_v42, %v5078_v18  ;;  %4758 = vst.msk [vmem:[%s6647_s22 + $0x148] sm:$0xff] %vm4716_vm8, %v4693_v10  ;;  %v2501_v47 = vmul.f32 %v2377_v16, %v6520_v22 }
 0x21d   : > { %v2885_v49 = vmul.f32 %v2761_v43, %v6562_v11  ;;  %v9171_v32 = vrot.slane %v9170_v30, %v5060_v5  ;;  %v4034_v12 = vmul.f32 %v3901_v34, %v6596_v0  ;;  %v9172_v21 = vrot.slane %v9170_v30, %v5064_v8  ;;  %v9173_v34 = vld [vmem:[#allocation21_spill] sm:$0xff] }
 0x21e   : > { %v2181_v60 = vadd.f32 %v2117_v36, %v1797_v57  ;;  %v3714_v26 = vadd.f32 %v3650_v55, %v3330_v27  ;;  %v1989_v63 = vrot.slane %v9170_v30, %v5058_v4  ;;  %v3269_v61 = vmul.f32 %v3145_v58, %v6560_v62 }
 0x21f   : > { %v1412_v1 = vmul.f32 %v9171_v32, %v6472_v54  ;;  %v1732_v59 = vmul.f32 %v9172_v21, %v6470_v23  ;;  %v3653_v41 = vmul.f32 %v3529_v50, %v6598_v20  ;;  %v2373_v35 = vrot.slane %v9170_v30, %v5062_v7 }
 0x220   : > { %v2565_v25 = vadd.f32 %v2501_v47, %v2181_v60  ;;  %v4098_v45 = vadd.f32 %v4034_v12, %v3714_v26  ;;  %v2116_v6 = vmul.f32 %v1989_v63, %v6522_v3  ;;  %v2757_v29 = vrot.slane %v9170_v30, %v5072_v14  ;;  %v9176_v63 = vld [vmem:[#allocation22_spill] sm:$0xff] }
 0x221   : > { %v1796_v56 = vadd.f32 %v1732_v59, %v1412_v1  ;;  %v3913_v28 = vrot.slane %v9167_v42, %v5074_v15  ;;  %vm4631_vm5 = vcmp.gt.f32.partialorder %v4447_v37, 0.0  ;;  %v3141_v51 = vrot.slane %v9170_v30, %v5070_v13 }
 0x222   : > { %v2949_v39 = vadd.f32 %v2885_v49, %v2565_v25  ;;  %v4692_v38 = vsel %vm4628_vm4, %v4098_v45, 0.0  ;;  %v2500_v52 = vmul.f32 %v2373_v35, %v6520_v22  ;;  %v2884_v2 = vmul.f32 %v2757_v29, %v6562_v11 }
 0x223   : > { %v2180_v46 = vadd.f32 %v2116_v6, %v1796_v56  ;;  %4757 = vst.msk [vmem:[%s6647_s22 + $0x140] sm:$0xff] %vm4716_vm8, %v4692_v38  ;;  %v3525_v53 = vrot.slane %v9170_v30, %v5078_v18  ;;  %v9174_v42 = vrot.slane %v9173_v34, %v5060_v5  ;;  %v9175_v33 = vrot.slane %v9173_v34, %v5064_v8  ;;  %v4461_v56 = vpop.permute.xlu1 %4460 }
 0x224   : > { %v3333_v9 = vadd.f32 %v3269_v61, %v2949_v39  ;;  %v4037_v40 = vmul.f32 %v3913_v28, %v6596_v0  ;;  %v3268_v55 = vmul.f32 %v3141_v51, %v6560_v62  ;;  %v2001_v57 = vrot.slane %v9173_v34, %v5058_v4 }
 0x225   : > { %v1415_v48 = vmul.f32 %v9174_v42, %v6472_v54  ;;  %v1735_v31 = vmul.f32 %v9175_v33, %v6470_v23  ;;  %v2564_v24 = vadd.f32 %v2500_v52, %v2180_v46  ;;  %v3652_v16 = vmul.f32 %v3525_v53, %v6598_v20 }
 0x226   : > { %v3717_v36 = vadd.f32 %v3653_v41, %v3333_v9  ;;  %v3909_v43 = vrot.slane %v9170_v30, %v5074_v15  ;;  %v2385_v10 = vrot.slane %v9173_v34, %v5062_v7  ;;  %v2119_v50 = vmul.f32 %v2001_v57, %v6522_v3  ;;  %v9179_v57 = vld [vmem:[#allocation23_spill] sm:$0xff] }
 0x227   : > { %v2948_v27 = vadd.f32 %v2884_v2, %v2564_v24  ;;  %v1799_v58 = vadd.f32 %v1735_v31, %v1415_v48  ;;  %v2769_v60 = vrot.slane %v9173_v34, %v5072_v14  ;;  %vm4630_vm6 = vcmp.gt.f32.partialorder %v4440_v44, 0.0 }
 0x228   : > { %v4101_v47 = vadd.f32 %v4037_v40, %v3717_v36  ;;  %v4036_v49 = vmul.f32 %v3909_v43, %v6596_v0  ;;  %v3153_v32 = vrot.slane %v9173_v34, %v5070_v13  ;;  %v2503_v26 = vmul.f32 %v2385_v10, %v6520_v22 }
 0x229   : > { %v3332_v1 = vadd.f32 %v3268_v55, %v2948_v27  ;;  %v2183_v30 = vadd.f32 %v2119_v50, %v1799_v58  ;;  %v2887_v12 = vmul.f32 %v2769_v60, %v6562_v11  ;;  %v3537_v59 = vrot.slane %v9173_v34, %v5078_v18  ;;  %v4454_v55 = vpop.permute.xlu0 %4453 }
 0x22a   : > { %v4695_v21 = vsel %vm4631_vm5, %v4101_v47, 0.0  ;;  %v9177_v25 = vrot.slane %v9176_v63, %v5060_v5  ;;  %v9178_v41 = vrot.slane %v9176_v63, %v5064_v8  ;;  %v3271_v37 = vmul.f32 %v3153_v32, %v6560_v62 }
 0x22b   : > { %4760 = vst.msk [vmem:[%s6647_s22 + $0x158] sm:$0xff] %vm4716_vm8, %v4695_v21  ;;  %v3716_v45 = vadd.f32 %v3652_v16, %v3332_v1  ;;  %v2567_v6 = vadd.f32 %v2503_v26, %v2183_v30  ;;  %v1997_v29 = vrot.slane %v9176_v63, %v5058_v4  ;;  %v3655_v39 = vmul.f32 %v3537_v59, %v6598_v20 }
 0x22c   : > { %v1414_v61 = vmul.f32 %v9177_v25, %v6472_v54  ;;  %v1734_v35 = vmul.f32 %v9178_v41, %v6470_v23  ;;  %v3921_v28 = vrot.slane %v9173_v34, %v5074_v15  ;;  %v2381_v38 = vrot.slane %v9176_v63, %v5062_v7 }
 0x22d   : > { %v4100_v46 = vadd.f32 %v4036_v49, %v3716_v45  ;;  %v2951_v52 = vadd.f32 %v2887_v12, %v2567_v6  ;;  %v2118_v2 = vmul.f32 %v1997_v29, %v6522_v3  ;;  %v2765_v9 = vrot.slane %v9176_v63, %v5072_v14  ;;  %v9182_v6 = vld [vmem:[#allocation24_spill] sm:$0xff] }
 0x22e   : > { %v1798_v51 = vadd.f32 %v1734_v35, %v1414_v61  ;;  %vm4633_vm7 = vcmp.gt.f32.partialorder %v4461_v56, 0.0  ;;  %v2502_v53 = vmul.f32 %v2381_v38, %v6520_v22  ;;  %v3149_v42 = vrot.slane %v9176_v63, %v5070_v13 }
 0x22f   : > { %v3533_v34 = vrot.slane %v9176_v63, %v5078_v18  ;;  %v4694_v48 = vsel %vm4630_vm6, %v4100_v46, 0.0  ;;  %v3335_v33 = vadd.f32 %v3271_v37, %v2951_v52  ;;  %v2886_v40 = vmul.f32 %v2765_v9, %v6562_v11 }
 0x230   : > { %v2182_v31 = vadd.f32 %v2118_v2, %v1798_v51  ;;  %4759 = vst.msk [vmem:[%s6647_s22 + $0x150] sm:$0xff] %vm4716_vm8, %v4694_v48  ;;  %v4039_v24 = vmul.f32 %v3921_v28, %v6596_v0  ;;  %v9180_v36 = vrot.slane %v9179_v57, %v5060_v5  ;;  %v9181_v43 = vrot.slane %v9179_v57, %v5064_v8 }
 0x231   : > { %v2009_v10 = vrot.slane %v9179_v57, %v5058_v4  ;;  %v3719_v27 = vadd.f32 %v3655_v39, %v3335_v33  ;;  %v3270_v50 = vmul.f32 %v3149_v42, %v6560_v62  ;;  %v3654_v60 = vmul.f32 %v3533_v34, %v6598_v20  ;;  %v4475_v39 = vpop.permute.xlu1 %4474 }
 0x232   : > { %v1417_v16 = vmul.f32 %v9180_v36, %v6472_v54  ;;  %v1737_v44 = vmul.f32 %v9181_v43, %v6470_v23  ;;  %v2566_v58 = vadd.f32 %v2502_v53, %v2182_v31  ;;  %v2393_v32 = vrot.slane %v9179_v57, %v5062_v7 }
 0x233   : > { %v2121_v49 = vmul.f32 %v2009_v10, %v6522_v3  ;;  %v2777_v1 = vrot.slane %v9179_v57, %v5072_v14  ;;  %v4103_v30 = vadd.f32 %v4039_v24, %v3719_v27  ;;  %v3917_v12 = vrot.slane %v9176_v63, %v5074_v15  ;;  %v9185_v27 = vld [vmem:[#allocation25_spill] sm:$0xff] }
 0x234   : > { %v1801_v47 = vadd.f32 %v1737_v44, %v1417_v16  ;;  %v2950_v26 = vadd.f32 %v2886_v40, %v2566_v58  ;;  %vm4632_vm9 = vcmp.gt.f32.partialorder %v4454_v55, 0.0  ;;  %v2505_v59 = vmul.f32 %v2393_v32, %v6520_v22  ;;  %v4468_v55 = vpop.permute.xlu0 %4467 }
 0x235   : > { %v2889_v25 = vmul.f32 %v2777_v1, %v6562_v11  ;;  %v3161_v61 = vrot.slane %v9179_v57, %v5070_v13  ;;  %v4697_v41 = vsel %vm4633_vm7, %v4103_v30, 0.0  ;;  %v3545_v45 = vrot.slane %v9179_v57, %v5078_v18 }
 0x236   : > { %v2185_v21 = vadd.f32 %v2121_v49, %v1801_v47  ;;  %v3334_v35 = vadd.f32 %v3270_v50, %v2950_v26  ;;  %v9183_v37 = vrot.slane %v9182_v6, %v5060_v5  ;;  %4762 = vst.msk [vmem:[%s6647_s22 + $0x168] sm:$0xff] %vm4716_vm8, %v4697_v41  ;;  %v4038_v29 = vmul.f32 %v3917_v12, %v6596_v0 }
 0x237   : > { %v9184_v56 = vrot.slane %v9182_v6, %v5064_v8  ;;  %v2005_v38 = vrot.slane %v9182_v6, %v5058_v4  ;;  %v3273_v52 = vmul.f32 %v3161_v61, %v6560_v62  ;;  %v3657_v2 = vmul.f32 %v3545_v45, %v6598_v20 }
 0x238   : > { %v1416_v63 = vmul.f32 %v9183_v37, %v6472_v54  ;;  %v2569_v28 = vadd.f32 %v2505_v59, %v2185_v21  ;;  %v3718_v46 = vadd.f32 %v3654_v60, %v3334_v35  ;;  %v2389_v9 = vrot.slane %v9182_v6, %v5062_v7 }
 0x239   : > { %v1736_v51 = vmul.f32 %v9184_v56, %v6470_v23  ;;  %v2120_v34 = vmul.f32 %v2005_v38, %v6522_v3  ;;  %v2773_v48 = vrot.slane %v9182_v6, %v5072_v14  ;;  %v3929_v31 = vrot.slane %v9179_v57, %v5074_v15 }
 0x23a   : > { %v2953_v53 = vadd.f32 %v2889_v25, %v2569_v28  ;;  %v4102_v33 = vadd.f32 %v4038_v29, %v3718_v46  ;;  %vm4635_vm10 = vcmp.gt.f32.partialorder %v4475_v39, 0.0  ;;  %v3157_v40 = vrot.slane %v9182_v6, %v5070_v13 }
 0x23b   : > { %v1800_v42 = vadd.f32 %v1736_v51, %v1416_v63  ;;  %v2504_v16 = vmul.f32 %v2389_v9, %v6520_v22  ;;  %v2888_v43 = vmul.f32 %v2773_v48, %v6562_v11  ;;  %v3541_v10 = vrot.slane %v9182_v6, %v5078_v18 }
 0x23c   : > { %v3337_v24 = vadd.f32 %v3273_v52, %v2953_v53  ;;  %v4696_v44 = vsel %vm4632_vm9, %v4102_v33, 0.0  ;;  %v9186_v58 = vrot.slane %v9185_v27, %v5060_v5  ;;  %v9187_v50 = vrot.slane %v9185_v27, %v5064_v8 }
 0x23d   : > { %v2184_v36 = vadd.f32 %v2120_v34, %v1800_v42  ;;  %4761 = vst.msk [vmem:[%s6647_s22 + $0x160] sm:$0xff] %vm4716_vm8, %v4696_v44  ;;  %v4041_v49 = vmul.f32 %v3929_v31, %v6596_v0  ;;  %v2017_v1 = vrot.slane %v9185_v27, %v5058_v4  ;;  %v3272_v30 = vmul.f32 %v3157_v40, %v6560_v62 }
 0x23e   : > { %v1419_v57 = vmul.f32 %v9186_v58, %v6472_v54  ;;  %v1739_v60 = vmul.f32 %v9187_v50, %v6470_v23  ;;  %v3721_v47 = vadd.f32 %v3657_v2, %v3337_v24  ;;  %v3656_v26 = vmul.f32 %v3541_v10, %v6598_v20 }
 0x23f   : > { %v2568_v32 = vadd.f32 %v2504_v16, %v2184_v36  ;;  %v2401_v21 = vrot.slane %v9185_v27, %v5062_v7  ;;  %v2123_v61 = vmul.f32 %v2017_v1, %v6522_v3  ;;  %v2785_v41 = vrot.slane %v9185_v27, %v5072_v14  ;;  %v4489_v36 = vpop.permute.xlu1 %4488  ;;  %v9191_v1 = vld [vmem:[#allocation27_spill] sm:$0xff] }
 0x240   : > { %v1803_v12 = vadd.f32 %v1739_v60, %v1419_v57  ;;  %v4105_v59 = vadd.f32 %v4041_v49, %v3721_v47  ;;  %v3925_v35 = vrot.slane %v9182_v6, %v5074_v15  ;;  %vm4634_vm11 = vcmp.gt.f32.partialorder %v4468_v55, 0.0  ;;  %v9188_v6 = vld [vmem:[#allocation26_spill] sm:$0xff] }
 0x241   : > { %v2952_v25 = vadd.f32 %v2888_v43, %v2568_v32  ;;  %v2507_v45 = vmul.f32 %v2401_v21, %v6520_v22  ;;  %v3169_v37 = vrot.slane %v9185_v27, %v5070_v13  ;;  %v2891_v56 = vmul.f32 %v2785_v41, %v6562_v11  ;;  %v4482_v32 = vpop.permute.xlu0 %4481 }
 0x242   : > { %v4699_v63 = vsel %vm4635_vm10, %v4105_v59, 0.0  ;;  %v2187_v28 = vadd.f32 %v2123_v61, %v1803_v12  ;;  %v4040_v51 = vmul.f32 %v3925_v35, %v6596_v0  ;;  %v3553_v38 = vrot.slane %v9185_v27, %v5078_v18 }
 0x243   : > { %v3336_v29 = vadd.f32 %v3272_v30, %v2952_v25  ;;  %4764 = vst.msk [vmem:[%s6647_s22 + $0x178] sm:$0xff] %vm4716_vm8, %v4699_v63  ;;  %v9189_v46 = vrot.slane %v9188_v6, %v5060_v5  ;;  %v9190_v39 = vrot.slane %v9188_v6, %v5064_v8  ;;  %v3275_v42 = vmul.f32 %v3169_v37, %v6560_v62 }
 0x244   : > { %v2571_v53 = vadd.f32 %v2507_v45, %v2187_v28  ;;  %v2013_v34 = vrot.slane %v9188_v6, %v5058_v4  ;;  %v3659_v48 = vmul.f32 %v3553_v38, %v6598_v20  ;;  %v3937_v33 = vrot.slane %v9185_v27, %v5074_v15 }
 0x245   : > { %v1418_v52 = vmul.f32 %v9189_v46, %v6472_v54  ;;  %v1738_v2 = vmul.f32 %v9190_v39, %v6470_v23  ;;  %v3720_v9 = vadd.f32 %v3656_v26, %v3336_v29  ;;  %v2397_v40 = vrot.slane %v9188_v6, %v5062_v7 }
 0x246   : > { %v2955_v16 = vadd.f32 %v2891_v56, %v2571_v53  ;;  %v2122_v43 = vmul.f32 %v2013_v34, %v6522_v3  ;;  %v2781_v44 = vrot.slane %v9188_v6, %v5072_v14  ;;  %v4043_v10 = vmul.f32 %v3937_v33, %v6596_v0  ;;  %v9194_v53 = vld [vmem:[#allocation28_spill] sm:$0xff] }
 0x247   : > { %v1802_v31 = vadd.f32 %v1738_v2, %v1418_v52  ;;  %v4104_v24 = vadd.f32 %v4040_v51, %v3720_v9  ;;  %v2506_v58 = vmul.f32 %v2397_v40, %v6520_v22  ;;  %v3165_v27 = vrot.slane %v9188_v6, %v5070_v13 }
 0x248   : > { %v3549_v57 = vrot.slane %v9188_v6, %v5078_v18  ;;  %v3339_v60 = vadd.f32 %v3275_v42, %v2955_v16  ;;  %v2890_v49 = vmul.f32 %v2781_v44, %v6562_v11  ;;  %vm4637_vm12 = vcmp.gt.f32.partialorder %v4489_v36, 0.0 }
 0x249   : > { %v4698_v50 = vsel %vm4634_vm11, %v4104_v24, 0.0  ;;  %v2186_v47 = vadd.f32 %v2122_v43, %v1802_v31  ;;  %v9192_v30 = vrot.slane %v9191_v1, %v5060_v5  ;;  %v9193_v12 = vrot.slane %v9191_v1, %v5064_v8 }
 0x24a   : > { %4763 = vst.msk [vmem:[%s6647_s22 + $0x170] sm:$0xff] %vm4716_vm8, %v4698_v50  ;;  %v2025_v55 = vrot.slane %v9191_v1, %v5058_v4  ;;  %v3723_v59 = vadd.f32 %v3659_v48, %v3339_v60  ;;  %v3274_v61 = vmul.f32 %v3165_v27, %v6560_v62  ;;  %v3658_v41 = vmul.f32 %v3549_v57, %v6598_v20  ;;  %v4503_v48 = vpop.permute.xlu1 %4502 }
 0x24b   : > { %v1421_v26 = vmul.f32 %v9192_v30, %v6472_v54  ;;  %v1741_v21 = vmul.f32 %v9193_v12, %v6470_v23  ;;  %v2570_v25 = vadd.f32 %v2506_v58, %v2186_v47  ;;  %v2409_v37 = vrot.slane %v9191_v1, %v5062_v7 }
 0x24c   : > { %v2125_v45 = vmul.f32 %v2025_v55, %v6522_v3  ;;  %v2793_v63 = vrot.slane %v9191_v1, %v5072_v14  ;;  %v4107_v29 = vadd.f32 %v4043_v10, %v3723_v59  ;;  %v3933_v56 = vrot.slane %v9188_v6, %v5074_v15  ;;  %v9197_v59 = vld [vmem:[#allocation29_spill] sm:$0xff] }
 0x24d   : > { %v1805_v35 = vadd.f32 %v1741_v21, %v1421_v26  ;;  %v2954_v28 = vadd.f32 %v2890_v49, %v2570_v25  ;;  %vm4636_vm13 = vcmp.gt.f32.partialorder %v4482_v32, 0.0  ;;  %v2509_v38 = vmul.f32 %v2409_v37, %v6520_v22  ;;  %v4496_v32 = vpop.permute.xlu0 %4495 }
 0x24e   : > { %v2893_v46 = vmul.f32 %v2793_v63, %v6562_v11  ;;  %v3177_v52 = vrot.slane %v9191_v1, %v5070_v13  ;;  %v4701_v39 = vsel %vm4637_vm12, %v4107_v29, 0.0  ;;  %v3561_v9 = vrot.slane %v9191_v1, %v5078_v18 }
 0x24f   : > { %v2189_v51 = vadd.f32 %v2125_v45, %v1805_v35  ;;  %v3338_v2 = vadd.f32 %v3274_v61, %v2954_v28  ;;  %v9195_v42 = vrot.slane %v9194_v53, %v5060_v5  ;;  %4766 = vst.msk [vmem:[%s6647_s22 + $0x188] sm:$0xff] %vm4716_vm8, %v4701_v39  ;;  %v4042_v34 = vmul.f32 %v3933_v56, %v6596_v0 }
 0x250   : > { %v9196_v31 = vrot.slane %v9194_v53, %v5064_v8  ;;  %v2021_v24 = vrot.slane %v9194_v53, %v5058_v4  ;;  %v3277_v16 = vmul.f32 %v3177_v52, %v6560_v62  ;;  %v3661_v43 = vmul.f32 %v3561_v9, %v6598_v20 }
 0x251   : > { %v1420_v6 = vmul.f32 %v9195_v42, %v6472_v54  ;;  %v2573_v33 = vadd.f32 %v2509_v38, %v2189_v51  ;;  %v3722_v36 = vadd.f32 %v3658_v41, %v3338_v2  ;;  %v2405_v44 = vrot.slane %v9194_v53, %v5062_v7 }
 0x252   : > { %v1740_v40 = vmul.f32 %v9196_v31, %v6470_v23  ;;  %v2124_v27 = vmul.f32 %v2021_v24, %v6522_v3  ;;  %v2789_v57 = vrot.slane %v9194_v53, %v5072_v14  ;;  %v3945_v60 = vrot.slane %v9191_v1, %v5074_v15 }
 0x253   : > { %v2957_v10 = vadd.f32 %v2893_v46, %v2573_v33  ;;  %v4106_v50 = vadd.f32 %v4042_v34, %v3722_v36  ;;  %vm4639_vm14 = vcmp.gt.f32.partialorder %v4503_v48, 0.0  ;;  %v3173_v47 = vrot.slane %v9194_v53, %v5070_v13 }
 0x254   : > { %v1804_v58 = vadd.f32 %v1740_v40, %v1420_v6  ;;  %v2508_v26 = vmul.f32 %v2405_v44, %v6520_v22  ;;  %v2892_v12 = vmul.f32 %v2789_v57, %v6562_v11  ;;  %v3557_v55 = vrot.slane %v9194_v53, %v5078_v18 }
 0x255   : > { %v3341_v49 = vadd.f32 %v3277_v16, %v2957_v10  ;;  %v4700_v21 = vsel %vm4636_vm13, %v4106_v50, 0.0  ;;  %v9198_v25 = vrot.slane %v9197_v59, %v5060_v5  ;;  %v9199_v61 = vrot.slane %v9197_v59, %v5064_v8 }
 0x256   : > { %v2188_v30 = vadd.f32 %v2124_v27, %v1804_v58  ;;  %4765 = vst.msk [vmem:[%s6647_s22 + $0x180] sm:$0xff] %vm4716_vm8, %v4700_v21  ;;  %v4045_v45 = vmul.f32 %v3945_v60, %v6596_v0  ;;  %v2033_v63 = vrot.slane %v9197_v59, %v5058_v4  ;;  %v3276_v29 = vmul.f32 %v3173_v47, %v6560_v62 }
 0x257   : > { %v1423_v1 = vmul.f32 %v9198_v25, %v6472_v54  ;;  %v1743_v41 = vmul.f32 %v9199_v61, %v6470_v23  ;;  %v3725_v35 = vadd.f32 %v3661_v43, %v3341_v49  ;;  %v3660_v28 = vmul.f32 %v3557_v55, %v6598_v20 }
 0x258   : > { %v2572_v37 = vadd.f32 %v2508_v26, %v2188_v30  ;;  %v2417_v51 = vrot.slane %v9197_v59, %v5062_v7  ;;  %v2127_v52 = vmul.f32 %v2033_v63, %v6522_v3  ;;  %v2801_v39 = vrot.slane %v9197_v59, %v5072_v14  ;;  %v4517_v30 = vpop.permute.xlu1 %4516  ;;  %v9203_v63 = vld [vmem:[#allocation31_spill] sm:$0xff] }
 0x259   : > { %v1807_v56 = vadd.f32 %v1743_v41, %v1423_v1  ;;  %v4109_v38 = vadd.f32 %v4045_v45, %v3725_v35  ;;  %v3941_v2 = vrot.slane %v9194_v53, %v5074_v15  ;;  %vm4638_vm15 = vcmp.gt.f32.partialorder %v4496_v32, 0.0  ;;  %v9200_v53 = vld [vmem:[#allocation30_spill] sm:$0xff] }
 0x25a   : > { %v2956_v46 = vadd.f32 %v2892_v12, %v2572_v37  ;;  %v2511_v9 = vmul.f32 %v2417_v51, %v6520_v22  ;;  %v3185_v42 = vrot.slane %v9197_v59, %v5070_v13  ;;  %v2895_v31 = vmul.f32 %v2801_v39, %v6562_v11  ;;  %v4510_v37 = vpop.permute.xlu0 %4509 }
 0x25b   : > { %v4703_v6 = vsel %vm4639_vm14, %v4109_v38, 0.0  ;;  %v2191_v33 = vadd.f32 %v2127_v52, %v1807_v56  ;;  %v4044_v40 = vmul.f32 %v3941_v2, %v6596_v0  ;;  %v3569_v24 = vrot.slane %v9197_v59, %v5078_v18 }
 0x25c   : > { %v3340_v34 = vadd.f32 %v3276_v29, %v2956_v46  ;;  %4768 = vst.msk [vmem:[%s6647_s22 + $0x198] sm:$0xff] %vm4716_vm8, %v4703_v6  ;;  %v9201_v36 = vrot.slane %v9200_v53, %v5060_v5  ;;  %v9202_v48 = vrot.slane %v9200_v53, %v5064_v8  ;;  %v3279_v58 = vmul.f32 %v3185_v42, %v6560_v62 }
 0x25d   : > { %v2575_v10 = vadd.f32 %v2511_v9, %v2191_v33  ;;  %v2029_v27 = vrot.slane %v9200_v53, %v5058_v4  ;;  %v3663_v57 = vmul.f32 %v3569_v24, %v6598_v20  ;;  %v3953_v50 = vrot.slane %v9197_v59, %v5074_v15 }
 0x25e   : > { %v1422_v16 = vmul.f32 %v9201_v36, %v6472_v54  ;;  %v1742_v43 = vmul.f32 %v9202_v48, %v6470_v23  ;;  %v3724_v44 = vadd.f32 %v3660_v28, %v3340_v34  ;;  %v2413_v47 = vrot.slane %v9200_v53, %v5062_v7 }
 0x25f   : > { %v2959_v26 = vadd.f32 %v2895_v31, %v2575_v10  ;;  %v2126_v12 = vmul.f32 %v2029_v27, %v6522_v3  ;;  %v2797_v21 = vrot.slane %v9200_v53, %v5072_v14  ;;  %v4047_v55 = vmul.f32 %v3953_v50, %v6596_v0  ;;  %v9206_v10 = vld [vmem:[#allocation32_spill] sm:$0xff] }
 0x260   : > { %v1806_v60 = vadd.f32 %v1742_v43, %v1422_v16  ;;  %v4108_v49 = vadd.f32 %v4044_v40, %v3724_v44  ;;  %v2510_v25 = vmul.f32 %v2413_v47, %v6520_v22  ;;  %v3181_v59 = vrot.slane %v9200_v53, %v5070_v13 }
 0x261   : > { %v3565_v1 = vrot.slane %v9200_v53, %v5078_v18  ;;  %v3343_v41 = vadd.f32 %v3279_v58, %v2959_v26  ;;  %v2894_v45 = vmul.f32 %v2797_v21, %v6562_v11  ;;  %vm4641_vm0 = vcmp.gt.f32.partialorder %v4517_v30, 0.0 }
 0x262   : > { %v4702_v61 = vsel %vm4638_vm15, %v4108_v49, 0.0  ;;  %v2190_v35 = vadd.f32 %v2126_v12, %v1806_v60  ;;  %v9204_v29 = vrot.slane %v9203_v63, %v5060_v5  ;;  %v9205_v56 = vrot.slane %v9203_v63, %v5064_v8 }
 0x263   : > { %4767 = vst.msk [vmem:[%s6647_s22 + $0x190] sm:$0xff] %vm4716_vm8, %v4702_v61  ;;  %v2041_v32 = vrot.slane %v9203_v63, %v5058_v4  ;;  %v3727_v38 = vadd.f32 %v3663_v57, %v3343_v41  ;;  %v3278_v52 = vmul.f32 %v3181_v59, %v6560_v62  ;;  %v3662_v39 = vmul.f32 %v3565_v1, %v6598_v20  ;;  %v4531_v57 = vpop.permute.xlu1 %4530 }
 0x264   : > { %v1425_v28 = vmul.f32 %v9204_v29, %v6472_v54  ;;  %v1745_v51 = vmul.f32 %v9205_v56, %v6470_v23  ;;  %v2574_v46 = vadd.f32 %v2510_v25, %v2190_v35  ;;  %v2425_v42 = vrot.slane %v9203_v63, %v5062_v7 }
 0x265   : > { %v2129_v9 = vmul.f32 %v2041_v32, %v6522_v3  ;;  %v2809_v6 = vrot.slane %v9203_v63, %v5072_v14  ;;  %v4111_v34 = vadd.f32 %v4047_v55, %v3727_v38  ;;  %v3949_v31 = vrot.slane %v9200_v53, %v5074_v15  ;;  %v9209_v38 = vld [vmem:[#allocation33_spill] sm:$0xff] }
 0x266   : > { %v1809_v2 = vadd.f32 %v1745_v51, %v1425_v28  ;;  %v2958_v33 = vadd.f32 %v2894_v45, %v2574_v46  ;;  %vm4640_vm1 = vcmp.gt.f32.partialorder %v4510_v37, 0.0  ;;  %v2513_v24 = vmul.f32 %v2425_v42, %v6520_v22  ;;  %v4524_v37 = vpop.permute.xlu0 %4523 }
 0x267   : > { %v2897_v36 = vmul.f32 %v2809_v6, %v6562_v11  ;;  %v3193_v16 = vrot.slane %v9203_v63, %v5070_v13  ;;  %v4705_v48 = vsel %vm4641_vm0, %v4111_v34, 0.0  ;;  %v3577_v44 = vrot.slane %v9203_v63, %v5078_v18 }
 0x268   : > { %v2193_v40 = vadd.f32 %v2129_v9, %v1809_v2  ;;  %v3342_v43 = vadd.f32 %v3278_v52, %v2958_v33  ;;  %v9207_v58 = vrot.slane %v9206_v10, %v5060_v5  ;;  %4770 = vst.msk [vmem:[%s6647_s22 + $0x1a8] sm:$0xff] %vm4716_vm8, %v4705_v48  ;;  %v4046_v27 = vmul.f32 %v3949_v31, %v6596_v0 }
 0x269   : > { %v9208_v60 = vrot.slane %v9206_v10, %v5064_v8  ;;  %v2037_v49 = vrot.slane %v9206_v10, %v5058_v4  ;;  %v3281_v26 = vmul.f32 %v3193_v16, %v6560_v62  ;;  %v3665_v12 = vmul.f32 %v3577_v44, %v6598_v20 }
 0x26a   : > { %v1424_v53 = vmul.f32 %v9207_v58, %v6472_v54  ;;  %v2577_v50 = vadd.f32 %v2513_v24, %v2193_v40  ;;  %v3726_v30 = vadd.f32 %v3662_v39, %v3342_v43  ;;  %v2421_v21 = vrot.slane %v9206_v10, %v5062_v7 }
 0x26b   : > { %v1744_v47 = vmul.f32 %v9208_v60, %v6470_v23  ;;  %v2128_v59 = vmul.f32 %v2037_v49, %v6522_v3  ;;  %v2805_v1 = vrot.slane %v9206_v10, %v5072_v14  ;;  %v3961_v41 = vrot.slane %v9203_v63, %v5074_v15 }
 0x26c   : > { %v2961_v55 = vadd.f32 %v2897_v36, %v2577_v50  ;;  %v4110_v61 = vadd.f32 %v4046_v27, %v3726_v30  ;;  %vm4643_vm2 = vcmp.gt.f32.partialorder %v4531_v57, 0.0  ;;  %v3189_v35 = vrot.slane %v9206_v10, %v5070_v13 }
 0x26d   : > { %v1808_v25 = vadd.f32 %v1744_v47, %v1424_v53  ;;  %v2512_v28 = vmul.f32 %v2421_v21, %v6520_v22  ;;  %v2896_v56 = vmul.f32 %v2805_v1, %v6562_v11  ;;  %v3573_v32 = vrot.slane %v9206_v10, %v5078_v18 }
 0x26e   : > { %v3345_v45 = vadd.f32 %v3281_v26, %v2961_v55  ;;  %v4704_v51 = vsel %vm4640_vm1, %v4110_v61, 0.0  ;;  %v9210_v46 = vrot.slane %v9209_v38, %v5060_v5  ;;  %v9211_v52 = vrot.slane %v9209_v38, %v5064_v8 }
 0x26f   : > { %v2192_v29 = vadd.f32 %v2128_v59, %v1808_v25  ;;  %4769 = vst.msk [vmem:[%s6647_s22 + $0x1a0] sm:$0xff] %vm4716_vm8, %v4704_v51  ;;  %v4049_v9 = vmul.f32 %v3961_v41, %v6596_v0  ;;  %v2049_v6 = vrot.slane %v9209_v38, %v5058_v4  ;;  %v3280_v34 = vmul.f32 %v3189_v35, %v6560_v62 }
 0x270   : > { %v1427_v63 = vmul.f32 %v9210_v46, %v6472_v54  ;;  %v1747_v39 = vmul.f32 %v9211_v52, %v6470_v23  ;;  %v3729_v2 = vadd.f32 %v3665_v12, %v3345_v45  ;;  %v3664_v33 = vmul.f32 %v3573_v32, %v6598_v20 }
 0x271   : > { %v2576_v42 = vadd.f32 %v2512_v28, %v2192_v29  ;;  %v2433_v40 = vrot.slane %v9209_v38, %v5062_v7  ;;  %v2131_v16 = vmul.f32 %v2049_v6, %v6522_v3  ;;  %v2817_v48 = vrot.slane %v9209_v38, %v5072_v14  ;;  %v4545_v29 = vpop.permute.xlu1 %4544  ;;  %v9215_v6 = vld [vmem:[#allocation35_spill] sm:$0xff] }
 0x272   : > { %v1811_v31 = vadd.f32 %v1747_v39, %v1427_v63  ;;  %v4113_v24 = vadd.f32 %v4049_v9, %v3729_v2  ;;  %v3957_v43 = vrot.slane %v9206_v10, %v5074_v15  ;;  %vm4642_vm3 = vcmp.gt.f32.partialorder %v4524_v37, 0.0  ;;  %v9212_v10 = vld [vmem:[#allocation34_spill] sm:$0xff] }
 0x273   : > { %v2960_v36 = vadd.f32 %v2896_v56, %v2576_v42  ;;  %v2515_v44 = vmul.f32 %v2433_v40, %v6520_v22  ;;  %v3201_v58 = vrot.slane %v9209_v38, %v5070_v13  ;;  %v2899_v60 = vmul.f32 %v2817_v48, %v6562_v11  ;;  %v4538_v42 = vpop.permute.xlu0 %4537 }
 0x274   : > { %v4707_v53 = vsel %vm4643_vm2, %v4113_v24, 0.0  ;;  %v2195_v50 = vadd.f32 %v2131_v16, %v1811_v31  ;;  %v4048_v47 = vmul.f32 %v3957_v43, %v6596_v0  ;;  %v3585_v49 = vrot.slane %v9209_v38, %v5078_v18 }
 0x275   : > { %v3344_v27 = vadd.f32 %v3280_v34, %v2960_v36  ;;  %4772 = vst.msk [vmem:[%s6647_s22 + $0x1b8] sm:$0xff] %vm4716_vm8, %v4707_v53  ;;  %v9213_v30 = vrot.slane %v9212_v10, %v5060_v5  ;;  %v9214_v57 = vrot.slane %v9212_v10, %v5064_v8  ;;  %v3283_v25 = vmul.f32 %v3201_v58, %v6560_v62 }
 0x276   : > { %v2579_v55 = vadd.f32 %v2515_v44, %v2195_v50  ;;  %v2045_v59 = vrot.slane %v9212_v10, %v5058_v4  ;;  %v3667_v1 = vmul.f32 %v3585_v49, %v6598_v20  ;;  %v3969_v61 = vrot.slane %v9209_v38, %v5074_v15 }
 0x277   : > { %v1426_v26 = vmul.f32 %v9213_v30, %v6472_v54  ;;  %v1746_v12 = vmul.f32 %v9214_v57, %v6470_v23  ;;  %v3728_v21 = vadd.f32 %v3664_v33, %v3344_v27  ;;  %v2429_v35 = vrot.slane %v9212_v10, %v5062_v7 }
 0x278   : > { %v2963_v28 = vadd.f32 %v2899_v60, %v2579_v55  ;;  %v2130_v56 = vmul.f32 %v2045_v59, %v6522_v3  ;;  %v2813_v51 = vrot.slane %v9212_v10, %v5072_v14  ;;  %v4051_v32 = vmul.f32 %v3969_v61, %v6596_v0  ;;  %v9218_v55 = vld [vmem:[#allocation36_spill] sm:$0xff] }
 0x279   : > { %v1810_v41 = vadd.f32 %v1746_v12, %v1426_v26  ;;  %v4112_v45 = vadd.f32 %v4048_v47, %v3728_v21  ;;  %v2514_v46 = vmul.f32 %v2429_v35, %v6520_v22  ;;  %v3197_v38 = vrot.slane %v9212_v10, %v5070_v13 }
 0x27a   : > { %v3581_v63 = vrot.slane %v9212_v10, %v5078_v18  ;;  %v3347_v39 = vadd.f32 %v3283_v25, %v2963_v28  ;;  %v2898_v9 = vmul.f32 %v2813_v51, %v6562_v11  ;;  %vm4645_vm4 = vcmp.gt.f32.partialorder %v4545_v29, 0.0 }
 0x27b   : > { %v4706_v52 = vsel %vm4642_vm3, %v4112_v45, 0.0  ;;  %v2194_v2 = vadd.f32 %v2130_v56, %v1810_v41  ;;  %v9216_v34 = vrot.slane %v9215_v6, %v5060_v5  ;;  %v9217_v31 = vrot.slane %v9215_v6, %v5064_v8 }
 0x27c   : > { %4771 = vst.msk [vmem:[%s6647_s22 + $0x1b0] sm:$0xff] %vm4716_vm8, %v4706_v52  ;;  %v2057_v37 = vrot.slane %v9215_v6, %v5058_v4  ;;  %v3731_v24 = vadd.f32 %v3667_v1, %v3347_v39  ;;  %v3282_v16 = vmul.f32 %v3197_v38, %v6560_v62  ;;  %v3666_v48 = vmul.f32 %v3581_v63, %v6598_v20  ;;  %v4559_v1 = vpop.permute.xlu1 %4558 }
 0x27d   : > { %v1429_v33 = vmul.f32 %v9216_v34, %v6472_v54  ;;  %v1749_v40 = vmul.f32 %v9217_v31, %v6470_v23  ;;  %v2578_v36 = vadd.f32 %v2514_v46, %v2194_v2  ;;  %v2441_v58 = vrot.slane %v9215_v6, %v5062_v7 }
 0x27e   : > { %v2133_v44 = vmul.f32 %v2057_v37, %v6522_v3  ;;  %v2825_v53 = vrot.slane %v9215_v6, %v5072_v14  ;;  %v4115_v27 = vadd.f32 %v4051_v32, %v3731_v24  ;;  %v3965_v60 = vrot.slane %v9212_v10, %v5074_v15  ;;  %v9221_v24 = vld [vmem:[#allocation37_spill] sm:$0xff] }
 0x27f   : > { %v1813_v43 = vadd.f32 %v1749_v40, %v1429_v33  ;;  %v2962_v50 = vadd.f32 %v2898_v9, %v2578_v36  ;;  %vm4644_vm5 = vcmp.gt.f32.partialorder %v4538_v42, 0.0  ;;  %v2517_v49 = vmul.f32 %v2441_v58, %v6520_v22  ;;  %v4552_v42 = vpop.permute.xlu0 %4551 }
 0x280   : > { %v2901_v30 = vmul.f32 %v2825_v53, %v6562_v11  ;;  %v3209_v26 = vrot.slane %v9215_v6, %v5070_v13  ;;  %v4709_v57 = vsel %vm4645_vm4, %v4115_v27, 0.0  ;;  %v3593_v21 = vrot.slane %v9215_v6, %v5078_v18 }
 0x281   : > { %v2197_v47 = vadd.f32 %v2133_v44, %v1813_v43  ;;  %v3346_v12 = vadd.f32 %v3282_v16, %v2962_v50  ;;  %v9219_v25 = vrot.slane %v9218_v55, %v5060_v5  ;;  %4774 = vst.msk [vmem:[%s6647_s22 + $0x1c8] sm:$0xff] %vm4716_vm8, %v4709_v57  ;;  %v4050_v59 = vmul.f32 %v3965_v60, %v6596_v0 }
 0x282   : > { %v9220_v41 = vrot.slane %v9218_v55, %v5064_v8  ;;  %v2053_v45 = vrot.slane %v9218_v55, %v5058_v4  ;;  %v3285_v28 = vmul.f32 %v3209_v26, %v6560_v62  ;;  %v3669_v56 = vmul.f32 %v3593_v21, %v6598_v20 }
 0x283   : > { %v1428_v10 = vmul.f32 %v9219_v25, %v6472_v54  ;;  %v2581_v61 = vadd.f32 %v2517_v49, %v2197_v47  ;;  %v3730_v29 = vadd.f32 %v3666_v48, %v3346_v12  ;;  %v2437_v51 = vrot.slane %v9218_v55, %v5062_v7 }
 0x284   : > { %v1748_v35 = vmul.f32 %v9220_v41, %v6470_v23  ;;  %v2132_v38 = vmul.f32 %v2053_v45, %v6522_v3  ;;  %v2821_v63 = vrot.slane %v9218_v55, %v5072_v14  ;;  %v3977_v39 = vrot.slane %v9215_v6, %v5074_v15 }
 0x285   : > { %v2965_v32 = vadd.f32 %v2901_v30, %v2581_v61  ;;  %v4114_v52 = vadd.f32 %v4050_v59, %v3730_v29  ;;  %vm4647_vm6 = vcmp.gt.f32.partialorder %v4559_v1, 0.0  ;;  %v3205_v2 = vrot.slane %v9218_v55, %v5070_v13 }
 0x286   : > { %v1812_v46 = vadd.f32 %v1748_v35, %v1428_v10  ;;  %v2516_v33 = vmul.f32 %v2437_v51, %v6520_v22  ;;  %v2900_v31 = vmul.f32 %v2821_v63, %v6562_v11  ;;  %v3589_v37 = vrot.slane %v9218_v55, %v5078_v18 }
 0x287   : > { %v3349_v9 = vadd.f32 %v3285_v28, %v2965_v32  ;;  %v4708_v40 = vsel %vm4644_vm5, %v4114_v52, 0.0  ;;  %v9222_v36 = vrot.slane %v9221_v24, %v5060_v5  ;;  %v9223_v16 = vrot.slane %v9221_v24, %v5064_v8 }
 0x288   : > { %v2196_v34 = vadd.f32 %v2132_v38, %v1812_v46  ;;  %4773 = vst.msk [vmem:[%s6647_s22 + $0x1c0] sm:$0xff] %vm4716_vm8, %v4708_v40  ;;  %v4053_v44 = vmul.f32 %v3977_v39, %v6596_v0  ;;  %v2065_v53 = vrot.slane %v9221_v24, %v5058_v4  ;;  %v3284_v27 = vmul.f32 %v3205_v2, %v6560_v62 }
 0x289   : > { %v1431_v6 = vmul.f32 %v9222_v36, %v6472_v54  ;;  %v1751_v48 = vmul.f32 %v9223_v16, %v6470_v23  ;;  %v3733_v43 = vadd.f32 %v3669_v56, %v3349_v9  ;;  %v3668_v50 = vmul.f32 %v3589_v37, %v6598_v20 }
 0x28a   : > { %v2580_v58 = vadd.f32 %v2516_v33, %v2196_v34  ;;  %v2449_v47 = vrot.slane %v9221_v24, %v5062_v7  ;;  %v2135_v26 = vmul.f32 %v2065_v53, %v6522_v3  ;;  %v2833_v57 = vrot.slane %v9221_v24, %v5072_v14  ;;  %v4573_v34 = vpop.permute.xlu1 %4572  ;;  %v9227_v53 = vld [vmem:[#allocation39_spill] sm:$0xff] }
 0x28b   : > { %v1815_v60 = vadd.f32 %v1751_v48, %v1431_v6  ;;  %v4117_v49 = vadd.f32 %v4053_v44, %v3733_v43  ;;  %v3973_v12 = vrot.slane %v9218_v55, %v5074_v15  ;;  %vm4646_vm7 = vcmp.gt.f32.partialorder %v4552_v42, 0.0  ;;  %v9224_v55 = vld [vmem:[#allocation38_spill] sm:$0xff] }
 0x28c   : > { %v2964_v30 = vadd.f32 %v2900_v31, %v2580_v58  ;;  %v2519_v21 = vmul.f32 %v2449_v47, %v6520_v22  ;;  %v3217_v25 = vrot.slane %v9221_v24, %v5070_v13  ;;  %v2903_v41 = vmul.f32 %v2833_v57, %v6562_v11  ;;  %v4566_v58 = vpop.permute.xlu0 %4565 }
 0x28d   : > { %v4711_v10 = vsel %vm4647_vm6, %v4117_v49, 0.0  ;;  %v2199_v61 = vadd.f32 %v2135_v26, %v1815_v60  ;;  %v4052_v35 = vmul.f32 %v3973_v12, %v6596_v0  ;;  %v3601_v45 = vrot.slane %v9221_v24, %v5078_v18 }
 0x28e   : > { %v3348_v59 = vadd.f32 %v3284_v27, %v2964_v30  ;;  %4776 = vst.msk [vmem:[%s6647_s22 + $0x1d8] sm:$0xff] %vm4716_vm8, %v4711_v10  ;;  %v9225_v29 = vrot.slane %v9224_v55, %v5060_v5  ;;  %v9226_v1 = vrot.slane %v9224_v55, %v5064_v8  ;;  %v3287_v46 = vmul.f32 %v3217_v25, %v6560_v62 }
 0x28f   : > { %v2583_v32 = vadd.f32 %v2519_v21, %v2199_v61  ;;  %v2061_v38 = vrot.slane %v9224_v55, %v5058_v4  ;;  %v3671_v63 = vmul.f32 %v3601_v45, %v6598_v20  ;;  %v3985_v52 = vrot.slane %v9221_v24, %v5074_v15 }
 0x290   : > { %v1430_v28 = vmul.f32 %v9225_v29, %v6472_v54  ;;  %v1750_v56 = vmul.f32 %v9226_v1, %v6470_v23  ;;  %v3732_v51 = vadd.f32 %v3668_v50, %v3348_v59  ;;  %v2445_v2 = vrot.slane %v9224_v55, %v5062_v7 }
 0x291   : > { %v2967_v33 = vadd.f32 %v2903_v41, %v2583_v32  ;;  %v2134_v31 = vmul.f32 %v2061_v38, %v6522_v3  ;;  %v2829_v40 = vrot.slane %v9224_v55, %v5072_v14  ;;  %v4055_v37 = vmul.f32 %v3985_v52, %v6596_v0 }
 0x292   : > { %v1814_v39 = vadd.f32 %v1750_v56, %v1430_v28  ;;  %v4116_v9 = vadd.f32 %v4052_v35, %v3732_v51  ;;  %v2518_v36 = vmul.f32 %v2445_v2, %v6520_v22  ;;  %v3213_v24 = vrot.slane %v9224_v55, %v5070_v13 }
 0x293   : > { %v3597_v6 = vrot.slane %v9224_v55, %v5078_v18  ;;  %v3351_v48 = vadd.f32 %v3287_v46, %v2967_v33  ;;  %v2902_v44 = vmul.f32 %v2829_v40, %v6562_v11  ;;  %vm4649_vm9 = vcmp.gt.f32.partialorder %v4573_v34, 0.0 }
 0x294   : > { %v4710_v16 = vsel %vm4646_vm7, %v4116_v9, 0.0  ;;  %v2198_v43 = vadd.f32 %v2134_v31, %v1814_v39  ;;  %v9228_v27 = vrot.slane %v9227_v53, %v5060_v5  ;;  %v9229_v60 = vrot.slane %v9227_v53, %v5064_v8 }
 0x295   : > { %4775 = vst.msk [vmem:[%s6647_s22 + $0x1d0] sm:$0xff] %vm4716_vm8, %v4710_v16  ;;  %v2073_v42 = vrot.slane %v9227_v53, %v5058_v4  ;;  %v3735_v49 = vadd.f32 %v3671_v63, %v3351_v48  ;;  %v3286_v26 = vmul.f32 %v3213_v24, %v6560_v62  ;;  %v3670_v57 = vmul.f32 %v3597_v6, %v6598_v20 }
 0x296   : > { %v1433_v50 = vmul.f32 %v9228_v27, %v6472_v54  ;;  %v1753_v47 = vmul.f32 %v9229_v60, %v6470_v23  ;;  %v2582_v30 = vadd.f32 %v2518_v36, %v2198_v43  ;;  %v2457_v25 = vrot.slane %v9227_v53, %v5062_v7 }
 0x297   : > { %v2137_v21 = vmul.f32 %v2073_v42, %v6522_v3  ;;  %v2841_v10 = vrot.slane %v9227_v53, %v5072_v14  ;;  %v4119_v59 = vadd.f32 %v4055_v37, %v3735_v49  ;;  %v3981_v41 = vrot.slane %v9224_v55, %v5074_v15 }
 0x298   : > { %v1817_v12 = vadd.f32 %v1753_v47, %v1433_v50  ;;  %v2966_v61 = vadd.f32 %v2902_v44, %v2582_v30  ;;  %vm4648_vm10 = vcmp.gt.f32.partialorder %v4566_v58, 0.0  ;;  %v2521_v45 = vmul.f32 %v2457_v25, %v6520_v22  ;;  %v4580_v58 = vpop.permute.xlu0 %4579 }
 0x299   : > { %v2905_v29 = vmul.f32 %v2841_v10, %v6562_v11  ;;  %v3225_v28 = vrot.slane %v9227_v53, %v5070_v13  ;;  %v4713_v1 = vsel %vm4649_vm9, %v4119_v59, 0.0  ;;  %v3609_v51 = vrot.slane %v9227_v53, %v5078_v18 }
 0x29a   : > { %v2201_v35 = vadd.f32 %v2137_v21, %v1817_v12  ;;  %v3350_v56 = vadd.f32 %v3286_v26, %v2966_v61  ;;  %v9230_v32 = vrot.slane %v9166_v17, %v5060_v5  ;;  %4778 = vst.msk [vmem:[%s6647_s22 + $0x1e8] sm:$0xff] %vm4716_vm8, %v4713_v1  ;;  %v4054_v46 = vmul.f32 %v3981_v41, %v6596_v0 }
 0x29b   : > { %v1752_v63 = vmul.f32 %v1685_v19, %v6470_v23  ;;  %v2069_v52 = vrot.slane %v9166_v17, %v5058_v4  ;;  %v3289_v2 = vmul.f32 %v3225_v28, %v6560_v62  ;;  %v3673_v5 = vmul.f32 %v3609_v51, %v6598_v20  ;;  %v4587_v19 = vpop.permute.xlu1 %4586 }
 0x29c   : > { %v1432_v55 = vmul.f32 %v9230_v32, %v6472_v54  ;;  %v2585_v38 = vadd.f32 %v2521_v45, %v2201_v35  ;;  %v3734_v39 = vadd.f32 %v3670_v57, %v3350_v56  ;;  %v2453_v54 = vrot.slane %v9166_v17, %v5062_v7 }
 0x29d   : > { %v2136_v33 = vmul.f32 %v2069_v52, %v6522_v3  ;;  %v2837_v8 = vrot.slane %v9166_v17, %v5072_v14  ;;  %v3993_v4 = vrot.slane %v9227_v53, %v5074_v15  ;;  %v3221_v6 = vrot.slane %v9166_v17, %v5070_v13 }
 0x29e   : > { %v2969_v9 = vadd.f32 %v2905_v29, %v2585_v38  ;;  %v1816_v34 = vadd.f32 %v1752_v63, %v1432_v55  ;;  %v4118_v23 = vadd.f32 %v4054_v46, %v3734_v39  ;;  %v2520_v37 = vmul.f32 %v2453_v54, %v6520_v22 }
 0x29f   : > { %v2904_v36 = vmul.f32 %v2837_v8, %v6562_v11  ;;  %v4057_v24 = vmul.f32 %v3993_v4, %v6596_v0  ;;  %v3605_v16 = vrot.slane %v9166_v17, %v5078_v18  ;;  %vm4651_vm11 = vcmp.gt.f32.partialorder %v4587_v19, 0.0 }
 0x2a0   : > { %v3353_v31 = vadd.f32 %v3289_v2, %v2969_v9  ;;  %v2200_v40 = vadd.f32 %v2136_v33, %v1816_v34  ;;  %v4712_v7 = vsel %vm4648_vm10, %v4118_v23, 0.0  ;;  %v3288_v11 = vmul.f32 %v3221_v6, %v6560_v62 }
 0x2a1   : > { %4777 = vst.msk [vmem:[%s6647_s22 + $0x1e0] sm:$0xff] %vm4716_vm8, %v4712_v7  ;;  %v3672_v43 = vmul.f32 %v3605_v16, %v6598_v20  ;;  %v3989_v27 = vrot.slane %v9166_v17, %v5074_v15  ;;  %vm4650_vm12 = vcmp.gt.f32.partialorder %v4580_v58, 0.0 }
 0x2a2   : > { %v3737_v3 = vadd.f32 %v3673_v5, %v3353_v31  ;;  %v2584_v14 = vadd.f32 %v2520_v37, %v2200_v40 }
 0x2a3   : > { %v4056_v50 = vmul.f32 %v3989_v27, %v6596_v0 }
 0x2a4   : > { %v4121_v22 = vadd.f32 %v4057_v24, %v3737_v3  ;;  %v2968_v48 = vadd.f32 %v2904_v36, %v2584_v14 }
 0x2a6   : > { %v4715_v44 = vsel %vm4651_vm11, %v4121_v22, 0.0  ;;  %v3352_v53 = vadd.f32 %v3288_v11, %v2968_v48 }
 0x2a7   : > { %4780 = vst.msk [vmem:[%s6647_s22 + $0x1f8] sm:$0xff] %vm4716_vm8, %v4715_v44 }
 0x2a8   : > { %v3736_v13 = vadd.f32 %v3672_v43, %v3352_v53 }
 0x2aa   : > { %v4120_v18 = vadd.f32 %v4056_v50, %v3736_v13 }
 0x2ac   : > { %v4714_v60 = vsel %vm4650_vm12, %v4120_v18, 0.0 }
 0x2ad   : > { %4779 = vst.msk [vmem:[%s6647_s22 + $0x1f0] sm:$0xff] %vm4716_vm8, %v4714_v60 }
 0x2ae PF: > { %s15_s20 = sadd.s32 1, %s4997_s20   ;;  %s9231_s18 = smov %s4993_s19 }
 0x2af   : > { %p12_p5 = scmp.ge.s32.totalorder %s15_s20, 4   ;;  %s9232_s19 = smov %s9234_s21 }
 0x2b1   :  { %14 = sbr.rel (!%p12_p5) target bundleno = 2 (0x2), region = 82 }

</bundles_post_ra>
